<compile_context>
chip_gen: v6e
topology: v6e:2x2x1
jax: 0.10.0
libtpu: 0.0.40
codegen_flags: <defaults>
</compile_context>

<pallas_src>
import functools

import jax
import jax.numpy as jnp
from jax.experimental import pallas as pl
from jax.experimental.pallas import tpu as pltpu


def _layernorm(x, w, b, eps=1e-5):
    """Single-pass LayerNorm; variance clamped >= 0 against cancellation."""
    mean = jnp.mean(x, axis=-1, keepdims=True)
    mean_sq = jnp.mean(x * x, axis=-1, keepdims=True)
    var = jnp.maximum(mean_sq - mean * mean, 0.0)
    return (x - mean) * jax.lax.rsqrt(var + eps) * w + b


def _split_heads(x, heads, head_dim):
    # (T, heads*head_dim) -> (heads, T, head_dim); feeds one batched MXU contraction.
    t = x.shape[0]
    return jnp.swapaxes(x.reshape(t, heads, head_dim), 0, 1)


def _merge_heads(x):
    # (heads, T, head_dim) -> (T, heads*head_dim)
    h, t, d = x.shape
    return jnp.swapaxes(x, 0, 1).reshape(t, h * d)


def _transformer_block_kernel(heads, head_dim, q_scale, add_pos, exp_bf16, *refs):
    if add_pos:
        (q_ref, kv_ref, posq_ref, poskv_ref,
         fc_wt_ref, w1t_ref, b1_ref, w2t_ref, vec_ref,
         o_ref, m_sc, l_sc, acc_sc, qh_sc) = refs
    else:
        (q_ref, kv_ref,
         fc_wt_ref, w1t_ref, b1_ref, w2t_ref, vec_ref,
         o_ref, m_sc, l_sc, acc_sc, qh_sc) = refs
        posq_ref = poskv_ref = None

    kv_i = pl.program_id(2)
    cdt = q_ref.dtype  # matmul compute dtype (bf16 by default)

    @pl.when(kv_i == 0)
    def _init():
        m_sc[...] = jnp.full_like(m_sc, -jnp.inf)
        l_sc[...] = jnp.zeros_like(l_sc)
        acc_sc[...] = jnp.zeros_like(acc_sc)
        # Hoisted once per q tile: scale by 1/sqrt(embed_size) (module semantics)
        # and split heads; reused for all kv steps.
        q = q_ref[0].astype(jnp.float32)
        if add_pos:
            q = q + posq_ref[...]
        qh_sc[...] = _split_heads((q * q_scale).astype(cdt), heads, head_dim)

    # --- self-attention: key tile == value tile == the single kv tile ------------
    kv = kv_ref[0]
    if add_pos:
        kv = (kv.astype(jnp.float32) + poskv_ref[...]).astype(cdt)
    kvh = _split_heads(kv, heads, head_dim)                        # (H, TK, D)

    # one batched QK^T for all heads (bf16 in, f32 accumulation on the MXU)
    s = jnp.einsum("hqd,hkd->hqk", qh_sc[...], kvh,
                   preferred_element_type=jnp.float32)             # (H, TQ, TK)

    m_prev = m_sc[...]
    m_new = jnp.maximum(m_prev, jnp.max(s, axis=-1, keepdims=True))
    alpha = jnp.exp(m_prev - m_new)                                # (H, TQ, 1)
    s_shift = s - m_new
    if exp_bf16:
        # v6e/v7x: packed bf16 EUP exp; row-sum stays in f32.
        p = jnp.exp(s_shift.astype(jnp.bfloat16))
        p_sum = jnp.sum(p.astype(jnp.float32), axis=-1, keepdims=True)
    else:
        p = jnp.exp(s_shift)
        p_sum = jnp.sum(p, axis=-1, keepdims=True)
    l_sc[...] = alpha * l_sc[...] + p_sum
    m_sc[...] = m_new
    acc_sc[...] = alpha * acc_sc[...] + jnp.einsum(
        "hqk,hkd->hqd", p.astype(cdt), kvh,
        preferred_element_type=jnp.float32)                        # (H, TQ, D)

    # --- epilogue on the last kv tile: fc_out, res+LN1, MLP, res+LN2 -------------
    @pl.when(kv_i == pl.num_programs(2) - 1)
    def _finish():
        fc_b, ln1_w, ln1_b = vec_ref[0:1, :], vec_ref[1:2, :], vec_ref[2:3, :]
        b2, ln2_w, ln2_b = vec_ref[3:4, :], vec_ref[4:5, :], vec_ref[5:6, :]

        inv_l = pl.reciprocal(l_sc[...], approx=True)   # EUP; frees VALU slots
        ctx = _merge_heads(acc_sc[...] * inv_l)                    # (TQ, E) f32

        attn = jnp.dot(ctx.astype(cdt), fc_wt_ref[...],
                       preferred_element_type=jnp.float32) + fc_b

        x_in = q_ref[0].astype(jnp.float32)
        if add_pos:
            x_in = x_in + posq_ref[...]
        # residual + LayerNorm1 (dropout == identity in eval mode)
        x = _layernorm(attn + x_in, ln1_w, ln1_b)

        # feed-forward: Linear -> ReLU -> Linear.  ReLU output kept in bf16 to cut
        # f32 live pressure in the epilogue.
        h1 = jnp.maximum(
            jnp.dot(x.astype(cdt), w1t_ref[...],
                    preferred_element_type=jnp.float32) + b1_ref[...],
            0.0).astype(cdt)
        ff = jnp.dot(h1, w2t_ref[...], preferred_element_type=jnp.float32) + b2

        out = _layernorm(ff + x, ln2_w, ln2_b)
        o_ref[0] = out.astype(o_ref.dtype)


def _ceil_to(x, m):
    return ((x + m - 1) // m) * m


def _estimate_vmem_bytes(E, hidden, heads, head_dim, block_q, block_k, cdt, add_pos):
    """Explicit VMEM budget: weights single-buffered + 2x activation tiles + scratch."""
    w = jnp.dtype(cdt).itemsize
    weights = (E * E + E * hidden + hidden * E) * w                 # fc_wt, w1t, w2t
    weights += 8 * _ceil_to(hidden, 128) * 4                        # b1 (sublane/lane-padded)
    weights += 8 * _ceil_to(E, 128) * 4                             # packed bias/LN vectors
    act = 2 * (block_q * E + block_k * E + block_q * E) * w         # q, kv, out (double-buffered)
    if add_pos:
        act += 2 * (block_q * E + block_k * E) * 4                  # pos tiles (f32)
    scratch = 2 * heads * _ceil_to(block_q, 8) * 128 * 4            # m, l (lane-padded)
    scratch += heads * _ceil_to(block_q, 8) * _ceil_to(head_dim, 128) * (4 + w)  # acc + qh
    temps = 2 * heads * block_q * _ceil_to(block_k, 128) * 4        # s, p
    temps += 2 * block_q * max(_ceil_to(hidden, 128), _ceil_to(E, 128)) * 4  # epilogue f32
    est = weights + act + scratch + temps
    # 1.5x headroom for compiler temporaries; clamp to a range that is safe on
    # v5e (128 MiB), v6e (128 MiB) and — for realistic tile choices — v7x (64 MiB/TC).
    return int(min(max(int(est * 1.5), 32 * 1024 * 1024), 100 * 1024 * 1024))


def _weight_spec(shape, single_buffer):
    idx = lambda n, qi, ki: (0, 0)
    if single_buffer:
        try:
            # Constant index_map -> the tile never changes; single-buffering halves
            # its VMEM footprint (critical for v7x 64 MiB / v5e 16 MiB default).
            return pl.BlockSpec(shape, idx, pipeline_mode=pl.Buffered(1))
        except (TypeError, AttributeError):
            pass
    return pl.BlockSpec(shape, idx)


def transformer_self_attn_block(x, params, *, heads, pos_embed=None,
                                block_q=256, block_k=256,
                                compute_dtype=jnp.bfloat16, exp_in_bf16=False,
                                vmem_limit_bytes=None, single_buffer_weights=True):
    """Fused TransformerBlock forward for self-attention (eval mode, mask=None).

    TODO(synk): cross-attention (value/key != query) would need separate k/v operands.
    """
    N, L, E = x.shape
    assert E % heads == 0, "embed must be divisible by heads"
    head_dim = E // heads
    hidden = params["w1t"].shape[1]

    block_q = min(block_q, L)
    block_k = min(block_k, L)
    assert L % block_q == 0 and L % block_k == 0, "L must divide by block sizes"
    nq, nk = L // block_q, L // block_k

    cdt = compute_dtype
    xc = x.astype(cdt)
    fc_wt = params["fc_wt"].astype(cdt)
    w1t = params["w1t"].astype(cdt)
    w2t = params["w2t"].astype(cdt)
    b1 = params["b1"].astype(jnp.float32)
    # pack the six (1, E) vectors into one (8, E) f32 VMEM operand (rows 6,7 pad)
    vecs = jnp.concatenate(
        [params["fc_b"], params["ln1_w"], params["ln1_b"],
         params["b2"], params["ln2_w"], params["ln2_b"],
         jnp.zeros((2, E), jnp.float32)], axis=0).astype(jnp.float32)

    add_pos = pos_embed is not None
    use_bf16_exp = bool(exp_in_bf16) and jnp.dtype(cdt) == jnp.dtype(jnp.bfloat16)

    if vmem_limit_bytes is None:
        vmem_limit_bytes = _estimate_vmem_bytes(
            E, hidden, heads, head_dim, block_q, block_k, cdt, add_pos)

    kernel = functools.partial(
        _transformer_block_kernel, heads, head_dim, 1.0 / (E ** 0.5),
        add_pos, use_bf16_exp)

    q_spec = pl.BlockSpec((1, block_q, E), lambda n, qi, ki: (n, qi, 0))
    kv_spec = pl.BlockSpec((1, block_k, E), lambda n, qi, ki: (n, ki, 0))
    posq_spec = pl.BlockSpec((block_q, E), lambda n, qi, ki: (qi, 0))
    poskv_spec = pl.BlockSpec((block_k, E), lambda n, qi, ki: (ki, 0))

    def build_and_call(single_buffer):
        in_specs = [q_spec, kv_spec]
        operands = [xc, xc]           # same tensor: q view + kv view (self-attention)
        if add_pos:
            pos_f32 = pos_embed.astype(jnp.float32)
            in_specs += [posq_spec, poskv_spec]
            operands += [pos_f32, pos_f32]
        in_specs += [
            _weight_spec((E, E), single_buffer),        # fc_out weight (pre-transposed), bf16
            _weight_spec((E, hidden), single_buffer),   # ffn W1 (pre-transposed), bf16
            _weight_spec((1, hidden), single_buffer),   # ffn b1, f32
            _weight_spec((hidden, E), single_buffer),   # ffn W2 (pre-transposed), bf16
            _weight_spec((8, E), single_buffer),        # packed biases + LayerNorm params, f32
        ]
        operands += [fc_wt, w1t, b1, w2t, vecs]

        return pl.pallas_call(
            kernel,
            out_shape=jax.ShapeDtypeStruct((N, L, E), cdt),
            grid=(N, nq, nk),
            in_specs=in_specs,
            out_specs=q_spec,
            scratch_shapes=[
                pltpu.VMEM((heads, block_q, 1), jnp.float32),         # m (running max)
                pltpu.VMEM((heads, block_q, 1), jnp.float32),         # l (running sum)
                pltpu.VMEM((heads, block_q, head_dim), jnp.float32),  # acc
                pltpu.VMEM((heads, block_q, head_dim), cdt),          # hoisted scaled q heads
            ],
            compiler_params=pltpu.CompilerParams(
                dimension_semantics=("parallel", "parallel", "arbitrary"),
                vmem_limit_bytes=vmem_limit_bytes,
            ),
        )(*operands)

    if single_buffer_weights:
        try:
            return build_and_call(True)
        except Exception:
            # Fallback if this JAX build rejects pipeline_mode=pl.Buffered(1)
            # on the grid pipeline; correctness is unchanged, only VMEM use grows.
            pass
    return build_and_call(False)


def transformer_encoder(x, params, *, heads, block_q=256, block_k=256,
                        compute_dtype=jnp.bfloat16, exp_in_bf16=False,
                        vmem_limit_bytes=None):
    """TransformerEncoder forward (eval mode, mask=None, extra_len=None)."""
    N, L, E = x.shape
    # TODO(synk): merge_flag Linear and extra_len positional path not exercised.
    pos = params["pos_embed"][:L]          # (L, E) f32; fused into layer 0's kernel
    h = x
    for li, layer_params in enumerate(params["layers"]):
        h = transformer_self_attn_block(
            h, layer_params, heads=heads,
            pos_embed=pos if li == 0 else None,
            block_q=block_q, block_k=block_k,
            compute_dtype=compute_dtype, exp_in_bf16=exp_in_bf16,
            vmem_limit_bytes=vmem_limit_bytes)
    return h.astype(x.dtype)


# ----------------------------- pure-JAX reference ----------------------------

def _block_reference(value, key, query, p, *, heads):
    N, L, E = query.shape
    D = E // heads
    q = query.reshape(N, L, heads, D)
    k = key.reshape(N, L, heads, D)
    v = value.reshape(N, L, heads, D)
    energy = jnp.einsum("nqhd,nkhd->nhqk", q, k)
    attn = jax.nn.softmax(energy / (E ** 0.5), axis=-1)
    out = jnp.einsum("nhqk,nkhd->nqhd", attn, v).reshape(N, L, E)
    out = out @ p["fc_wt"] + p["fc_b"]
    x = _layernorm(out + query, p["ln1_w"], p["ln1_b"])
    h1 = jax.nn.relu(x @ p["w1t"] + p["b1"])
    ff = h1 @ p["w2t"] + p["b2"]
    return _layernorm(ff + x, p["ln2_w"], p["ln2_b"])


def reference_forward(x, params, *, heads):
    N, L, E = x.shape
    h = x + params["pos_embed"][:L][None]
    for layer in params["layers"]:
        h = _block_reference(h, h, h, layer, heads=heads)
    return h


def init_params(rng, embed, heads, forward_expansion, num_layers, max_length):
    hidden = forward_expansion * embed

    def init_layer(key):
        ks = jax.random.split(key, 8)
        return {
            # Linear weights stored transposed so the kernel does x @ W^T directly.
            "fc_wt": jax.random.normal(ks[0], (embed, embed), jnp.float32) * 0.05,
            "fc_b": jax.random.normal(ks[1], (1, embed), jnp.float32) * 0.05,
            "ln1_w": 1.0 + jax.random.normal(ks[2], (1, embed), jnp.float32) * 0.05,
            "ln1_b": jax.random.normal(ks[3], (1, embed), jnp.float32) * 0.05,
            "w1t": jax.random.normal(ks[4], (embed, hidden), jnp.float32) * 0.05,
            "b1": jax.random.normal(ks[5], (1, hidden), jnp.float32) * 0.05,
            "w2t": jax.random.normal(ks[6], (hidden, embed), jnp.float32) * 0.05,
            "b2": jax.random.normal(ks[7], (1, embed), jnp.float32) * 0.05,
            "ln2_w": jnp.ones((1, embed), jnp.float32),
            "ln2_b": jnp.zeros((1, embed), jnp.float32),
        }

    keys = jax.random.split(rng, num_layers + 1)
    return {
        "pos_embed": jax.random.normal(keys[0], (max_length, embed), jnp.float32) * 0.02,
        "layers": [init_layer(k) for k in keys[1:]],
    }


if __name__ == "__main__":
    batch, seq, embed, heads = 2, 8, 32, 4
    forward_expansion, num_layers, max_length = 2, 2, 16

    root = jax.random.PRNGKey(0)
    kx, kp = jax.random.split(root)
    x = jax.random.normal(kx, (batch, seq, embed), jnp.float32)
    params = init_params(kp, embed, heads, forward_expansion, num_layers, max_length)

    out = transformer_encoder(x, params, heads=heads)
    out = jax.block_until_ready(out)

    ref = reference_forward(x, params, heads=heads)
    assert out.shape == ref.shape == (batch, seq, embed)
    max_err = jnp.max(jnp.abs(out.astype(jnp.float32) - ref))
    # bf16 matmul inputs (f32 accumulation) + approx reciprocal -> loose tolerance
    assert max_err < 5e-2, f"mismatch vs reference: max abs err {max_err}"

    print("KERNEL_OK")
</pallas_src>

<mosaic_0001>
module attributes {stable_mosaic.version = 11 : i64} {
  func.func @_transformer_block_kernel(%arg0: i32, %arg1: i32, %arg2: i32, %arg3: memref<1x8x32xbf16, #tpu.memory_space<vmem>>, %arg4: memref<1x8x32xbf16, #tpu.memory_space<vmem>>, %arg5: memref<8x32xf32, #tpu.memory_space<vmem>>, %arg6: memref<8x32xf32, #tpu.memory_space<vmem>>, %arg7: memref<32x32xbf16, #tpu.memory_space<vmem>>, %arg8: memref<32x64xbf16, #tpu.memory_space<vmem>>, %arg9: memref<1x64xf32, #tpu.memory_space<vmem>>, %arg10: memref<64x32xbf16, #tpu.memory_space<vmem>>, %arg11: memref<8x32xf32, #tpu.memory_space<vmem>>, %arg12: memref<1x8x32xbf16, #tpu.memory_space<vmem>>, %arg13: memref<4x8x1xf32, #tpu.memory_space<vmem>>, %arg14: memref<4x8x1xf32, #tpu.memory_space<vmem>>, %arg15: memref<4x8x8xf32, #tpu.memory_space<vmem>>, %arg16: memref<4x8x8xbf16, #tpu.memory_space<vmem>>) attributes {dimension_semantics = [#tpu.dimension_semantics<parallel>, #tpu.dimension_semantics<parallel>, #tpu.dimension_semantics<arbitrary>], iteration_bounds = array<i64: 2, 1, 1>, scalar_prefetch = 0 : i64, scratch_operands = 4 : i64, tpu.core_type = #tpu.core_type<tc>, window_params = [{transform_indices = @transform_0, window_bounds = array<i64: 1, 8, 32>}, {transform_indices = @transform_1, window_bounds = array<i64: 1, 8, 32>}, {transform_indices = @transform_2, window_bounds = array<i64: 8, 32>}, {transform_indices = @transform_3, window_bounds = array<i64: 8, 32>}, {pipeline_mode = #tpu.pipeline_mode<synchronous>, transform_indices = @transform_4, window_bounds = array<i64: 32, 32>}, {pipeline_mode = #tpu.pipeline_mode<synchronous>, transform_indices = @transform_5, window_bounds = array<i64: 32, 64>}, {pipeline_mode = #tpu.pipeline_mode<synchronous>, transform_indices = @transform_6, window_bounds = array<i64: 1, 64>}, {pipeline_mode = #tpu.pipeline_mode<synchronous>, transform_indices = @transform_7, window_bounds = array<i64: 64, 32>}, {pipeline_mode = #tpu.pipeline_mode<synchronous>, transform_indices = @transform_8, window_bounds = array<i64: 8, 32>}, {transform_indices = @transform_9, window_bounds = array<i64: 1, 8, 32>}]} {
    %c0_i32 = arith.constant 0 : i32
    %0 = arith.cmpi eq, %arg2, %c0_i32 : i32
    %1 = arith.extui %0 : i1 to i32
    %c0_i32_0 = arith.constant 0 : i32
    %2 = arith.cmpi ne, %1, %c0_i32_0 : i32
    scf.if %2 {
      %cst_31 = arith.constant 0xFF800000 : f32
      %39 = vector.broadcast %cst_31 : f32 to vector<4x8x1xf32>
      %c0_32 = arith.constant 0 : index
      %c0_33 = arith.constant 0 : index
      %c0_34 = arith.constant 0 : index
      %40 = vector.load %arg13[%c0_32, %c0_33, %c0_34] : memref<4x8x1xf32, #tpu.memory_space<vmem>>, vector<4x8x1xf32>
      tpu.vector_store %arg13[%c0_32, %c0_33, %c0_34], %39 {strides = array<i32>} : memref<4x8x1xf32, #tpu.memory_space<vmem>>, vector<4x8x1xf32>,
      %cst_35 = arith.constant 0.000000e+00 : f32
      %41 = vector.broadcast %cst_35 : f32 to vector<4x8x1xf32>
      %c0_36 = arith.constant 0 : index
      %c0_37 = arith.constant 0 : index
      %c0_38 = arith.constant 0 : index
      %42 = vector.load %arg14[%c0_36, %c0_37, %c0_38] : memref<4x8x1xf32, #tpu.memory_space<vmem>>, vector<4x8x1xf32>
      tpu.vector_store %arg14[%c0_36, %c0_37, %c0_38], %41 {strides = array<i32>} : memref<4x8x1xf32, #tpu.memory_space<vmem>>, vector<4x8x1xf32>,
      %cst_39 = arith.constant 0.000000e+00 : f32
      %43 = vector.broadcast %cst_39 : f32 to vector<4x8x8xf32>
      %c0_40 = arith.constant 0 : index
      %c0_41 = arith.constant 0 : index
      %c0_42 = arith.constant 0 : index
      %44 = vector.load %arg15[%c0_40, %c0_41, %c0_42] : memref<4x8x8xf32, #tpu.memory_space<vmem>>, vector<4x8x8xf32>
      tpu.vector_store %arg15[%c0_40, %c0_41, %c0_42], %43 {strides = array<i32>} : memref<4x8x8xf32, #tpu.memory_space<vmem>>, vector<4x8x8xf32>,
      %c0_43 = arith.constant 0 : index
      %c0_44 = arith.constant 0 : index
      %c0_45 = arith.constant 0 : index
      %45 = vector.load %arg3[%c0_43, %c0_44, %c0_45] : memref<1x8x32xbf16, #tpu.memory_space<vmem>>, vector<1x8x32xbf16>
      %46 = vector.shape_cast %45 : vector<1x8x32xbf16> to vector<8x32xbf16>
      %47 = arith.extf %46 : vector<8x32xbf16> to vector<8x32xf32>
      %c0_46 = arith.constant 0 : index
      %c0_47 = arith.constant 0 : index
      %48 = vector.load %arg5[%c0_46, %c0_47] : memref<8x32xf32, #tpu.memory_space<vmem>>, vector<8x32xf32>
      %49 = arith.addf %47, %48 : vector<8x32xf32>
      %cst_48 = arith.constant 0.176776692 : f32
      %50 = vector.broadcast %cst_48 : f32 to vector<8x32xf32>
      %51 = arith.mulf %49, %50 : vector<8x32xf32>
      %52 = arith.truncf %51 : vector<8x32xf32> to vector<8x32xbf16>
      %53 = vector.shape_cast %52 : vector<8x32xbf16> to vector<8x4x8xbf16>
      %54 = tpu.transpose %53, [1, 0, 2] : vector<8x4x8xbf16> -> vector<4x8x8xbf16>
      %c0_49 = arith.constant 0 : index
      %c0_50 = arith.constant 0 : index
      %c0_51 = arith.constant 0 : index
      %55 = vector.load %arg16[%c0_49, %c0_50, %c0_51] : memref<4x8x8xbf16, #tpu.memory_space<vmem>>, vector<4x8x8xbf16>
      tpu.vector_store %arg16[%c0_49, %c0_50, %c0_51], %54 {strides = array<i32>} : memref<4x8x8xbf16, #tpu.memory_space<vmem>>, vector<4x8x8xbf16>,
    } else {
    }
    %c0 = arith.constant 0 : index
    %c0_1 = arith.constant 0 : index
    %c0_2 = arith.constant 0 : index
    %3 = vector.load %arg4[%c0, %c0_1, %c0_2] : memref<1x8x32xbf16, #tpu.memory_space<vmem>>, vector<1x8x32xbf16>
    %4 = vector.shape_cast %3 : vector<1x8x32xbf16> to vector<8x32xbf16>
    %5 = arith.extf %4 : vector<8x32xbf16> to vector<8x32xf32>
    %c0_3 = arith.constant 0 : index
    %c0_4 = arith.constant 0 : index
    %6 = vector.load %arg6[%c0_3, %c0_4] : memref<8x32xf32, #tpu.memory_space<vmem>>, vector<8x32xf32>
    %7 = arith.addf %5, %6 : vector<8x32xf32>
    %8 = arith.truncf %7 : vector<8x32xf32> to vector<8x32xbf16>
    %9 = vector.shape_cast %8 : vector<8x32xbf16> to vector<8x4x8xbf16>
    %10 = tpu.transpose %9, [1, 0, 2] : vector<8x4x8xbf16> -> vector<4x8x8xbf16>
    %c0_5 = arith.constant 0 : index
    %c0_6 = arith.constant 0 : index
    %c0_7 = arith.constant 0 : index
    %11 = vector.load %arg16[%c0_5, %c0_6, %c0_7] : memref<4x8x8xbf16, #tpu.memory_space<vmem>>, vector<4x8x8xbf16>
    "tpu.trace_start"() <{level = 10 : i32, message = "hqd,hkd->hqk"}> : () -> ()
    %cst = arith.constant dense<0.000000e+00> : vector<4x8x8xf32>
    %12 = tpu.matmul %11, %10, %cst {dimension_numbers = #tpu.dot_dimension_numbers<[2], [2], [1], [1], [0, 0, 0, 1, 1, 1], [0], [0]>} : vector<4x8x8xbf16>, vector<4x8x8xbf16>, vector<4x8x8xf32> -> vector<4x8x8xf32>
    "tpu.trace_stop"() : () -> ()
    %c0_8 = arith.constant 0 : index
    %c0_9 = arith.constant 0 : index
    %c0_10 = arith.constant 0 : index
    %13 = vector.load %arg13[%c0_8, %c0_9, %c0_10] : memref<4x8x1xf32, #tpu.memory_space<vmem>>, vector<4x8x1xf32>
    %cst_11 = arith.constant dense<0xFF800000> : vector<4x8xf32>
    %14 = vector.multi_reduction <maximumf>, %12, %cst_11 [2] : vector<4x8x8xf32> to vector<4x8xf32>
    %15 = vector.shape_cast %14 : vector<4x8xf32> to vector<4x8x1xf32>
    %16 = arith.maximumf %13, %15 : vector<4x8x1xf32>
    %17 = arith.subf %13, %16 : vector<4x8x1xf32>
    %18 = math.exp %17 : vector<4x8x1xf32>
    %19 = vector.broadcast %16 : vector<4x8x1xf32> to vector<4x8x8xf32>
    %20 = arith.subf %12, %19 : vector<4x8x8xf32>
    %21 = math.exp %20 : vector<4x8x8xf32>
    %cst_12 = arith.constant dense<0.000000e+00> : vector<4x8xf32>
    %22 = vector.multi_reduction <add>, %21, %cst_12 [2] : vector<4x8x8xf32> to vector<4x8xf32>
    %23 = vector.shape_cast %22 : vector<4x8xf32> to vector<4x8x1xf32>
    %c0_13 = arith.constant 0 : index
    %c0_14 = arith.constant 0 : index
    %c0_15 = arith.constant 0 : index
    %24 = vector.load %arg14[%c0_13, %c0_14, %c0_15] : memref<4x8x1xf32, #tpu.memory_space<vmem>>, vector<4x8x1xf32>
    %25 = arith.mulf %18, %24 : vector<4x8x1xf32>
    %26 = arith.addf %25, %23 : vector<4x8x1xf32>
    %c0_16 = arith.constant 0 : index
    %c0_17 = arith.constant 0 : index
    %c0_18 = arith.constant 0 : index
    %27 = vector.load %arg14[%c0_16, %c0_17, %c0_18] : memref<4x8x1xf32, #tpu.memory_space<vmem>>, vector<4x8x1xf32>
    tpu.vector_store %arg14[%c0_16, %c0_17, %c0_18], %26 {strides = array<i32>} : memref<4x8x1xf32, #tpu.memory_space<vmem>>, vector<4x8x1xf32>,
    %c0_19 = arith.constant 0 : index
    %c0_20 = arith.constant 0 : index
    %c0_21 = arith.constant 0 : index
    %28 = vector.load %arg13[%c0_19, %c0_20, %c0_21] : memref<4x8x1xf32, #tpu.memory_space<vmem>>, vector<4x8x1xf32>
    tpu.vector_store %arg13[%c0_19, %c0_20, %c0_21], %16 {strides = array<i32>} : memref<4x8x1xf32, #tpu.memory_space<vmem>>, vector<4x8x1xf32>,
    %c0_22 = arith.constant 0 : index
    %c0_23 = arith.constant 0 : index
    %c0_24 = arith.constant 0 : index
    %29 = vector.load %arg15[%c0_22, %c0_23, %c0_24] : memref<4x8x8xf32, #tpu.memory_space<vmem>>, vector<4x8x8xf32>
    %30 = vector.broadcast %18 : vector<4x8x1xf32> to vector<4x8x8xf32>
    %31 = arith.mulf %30, %29 : vector<4x8x8xf32>
    %32 = arith.truncf %21 : vector<4x8x8xf32> to vector<4x8x8xbf16>
    "tpu.trace_start"() <{level = 10 : i32, message = "hqk,hkd->hqd"}> : () -> ()
    %cst_25 = arith.constant dense<0.000000e+00> : vector<4x8x8xf32>
    %33 = tpu.matmul %32, %10, %cst_25 {dimension_numbers = #tpu.dot_dimension_numbers<[2], [1], [1], [2], [0, 0, 0, 1, 1, 2], [0], [0]>} : vector<4x8x8xbf16>, vector<4x8x8xbf16>, vector<4x8x8xf32> -> vector<4x8x8xf32>
    "tpu.trace_stop"() : () -> ()
    %34 = arith.addf %31, %33 : vector<4x8x8xf32>
    %c0_26 = arith.constant 0 : index
    %c0_27 = arith.constant 0 : index
    %c0_28 = arith.constant 0 : index
    %35 = vector.load %arg15[%c0_26, %c0_27, %c0_28] : memref<4x8x8xf32, #tpu.memory_space<vmem>>, vector<4x8x8xf32>
    tpu.vector_store %arg15[%c0_26, %c0_27, %c0_28], %34 {strides = array<i32>} : memref<4x8x8xf32, #tpu.memory_space<vmem>>, vector<4x8x8xf32>,
    %c0_i32_29 = arith.constant 0 : i32
    %36 = arith.cmpi eq, %arg2, %c0_i32_29 : i32
    %37 = arith.extui %36 : i1 to i32
    %c0_i32_30 = arith.constant 0 : i32
    %38 = arith.cmpi ne, %37, %c0_i32_30 : i32
    scf.if %38 {
      %c0_31 = arith.constant 0 : index
      %c0_32 = arith.constant 0 : index
      %39 = vector.load %arg11[%c0_31, %c0_32] : memref<8x32xf32, #tpu.memory_space<vmem>>, vector<1x32xf32>
      %c1 = arith.constant 1 : index
      %c0_33 = arith.constant 0 : index
      %40 = vector.load %arg11[%c1, %c0_33] : memref<8x32xf32, #tpu.memory_space<vmem>>, vector<1x32xf32>
      %c2 = arith.constant 2 : index
      %c0_34 = arith.constant 0 : index
      %41 = vector.load %arg11[%c2, %c0_34] : memref<8x32xf32, #tpu.memory_space<vmem>>, vector<1x32xf32>
      %c3 = arith.constant 3 : index
      %c0_35 = arith.constant 0 : index
      %42 = vector.load %arg11[%c3, %c0_35] : memref<8x32xf32, #tpu.memory_space<vmem>>, vector<1x32xf32>
      %c4 = arith.constant 4 : index
      %c0_36 = arith.constant 0 : index
      %43 = vector.load %arg11[%c4, %c0_36] : memref<8x32xf32, #tpu.memory_space<vmem>>, vector<1x32xf32>
      %c5 = arith.constant 5 : index
      %c0_37 = arith.constant 0 : index
      %44 = vector.load %arg11[%c5, %c0_37] : memref<8x32xf32, #tpu.memory_space<vmem>>, vector<1x32xf32>
      %c0_38 = arith.constant 0 : index
      %c0_39 = arith.constant 0 : index
      %c0_40 = arith.constant 0 : index
      %45 = vector.load %arg14[%c0_38, %c0_39, %c0_40] : memref<4x8x1xf32, #tpu.memory_space<vmem>>, vector<4x8x1xf32>
      %46 = tpu.reciprocal %45 {approx = true} : vector<4x8x1xf32> -> vector<4x8x1xf32>
      %c0_41 = arith.constant 0 : index
      %c0_42 = arith.constant 0 : index
      %c0_43 = arith.constant 0 : index
      %47 = vector.load %arg15[%c0_41, %c0_42, %c0_43] : memref<4x8x8xf32, #tpu.memory_space<vmem>>, vector<4x8x8xf32>
      %48 = vector.broadcast %46 : vector<4x8x1xf32> to vector<4x8x8xf32>
      %49 = arith.mulf %47, %48 : vector<4x8x8xf32>
      %50 = tpu.transpose %49, [1, 0, 2] : vector<4x8x8xf32> -> vector<8x4x8xf32>
      %51 = vector.shape_cast %50 : vector<8x4x8xf32> to vector<8x32xf32>
      %52 = arith.truncf %51 : vector<8x32xf32> to vector<8x32xbf16>
      %c0_44 = arith.constant 0 : index
      %c0_45 = arith.constant 0 : index
      %53 = vector.load %arg7[%c0_44, %c0_45] : memref<32x32xbf16, #tpu.memory_space<vmem>>, vector<32x32xbf16>
      %cst_46 = arith.constant dense<0.000000e+00> : vector<8x32xf32>
      %54 = tpu.matmul %52, %53, %cst_46 {dimension_numbers = #tpu.dot_dimension_numbers<[1], [0], [0], [1], [0, 0, 1, 1], [], []>} : vector<8x32xbf16>, vector<32x32xbf16>, vector<8x32xf32> -> vector<8x32xf32>
      %55 = vector.broadcast %39 : vector<1x32xf32> to vector<8x32xf32>
      %56 = arith.addf %54, %55 : vector<8x32xf32>
      %c0_47 = arith.constant 0 : index
      %c0_48 = arith.constant 0 : index
      %c0_49 = arith.constant 0 : index
      %57 = vector.load %arg3[%c0_47, %c0_48, %c0_49] : memref<1x8x32xbf16, #tpu.memory_space<vmem>>, vector<1x8x32xbf16>
      %58 = vector.shape_cast %57 : vector<1x8x32xbf16> to vector<8x32xbf16>
      %59 = arith.extf %58 : vector<8x32xbf16> to vector<8x32xf32>
      %c0_50 = arith.constant 0 : index
      %c0_51 = arith.constant 0 : index
      %60 = vector.load %arg5[%c0_50, %c0_51] : memref<8x32xf32, #tpu.memory_space<vmem>>, vector<8x32xf32>
      %61 = arith.addf %59, %60 : vector<8x32xf32>
      %62 = arith.addf %56, %61 : vector<8x32xf32>
      %cst_52 = arith.constant dense<0.000000e+00> : vector<8xf32>
      %63 = vector.multi_reduction <add>, %62, %cst_52 [1] : vector<8x32xf32> to vector<8xf32>
      %64 = vector.shape_cast %63 : vector<8xf32> to vector<8x1xf32>
      %cst_53 = arith.constant 3.200000e+01 : f32
      %65 = vector.broadcast %cst_53 : f32 to vector<8x1xf32>
      %66 = arith.divf %64, %65 : vector<8x1xf32>
      %67 = arith.mulf %62, %62 : vector<8x32xf32>
      %cst_54 = arith.constant dense<0.000000e+00> : vector<8xf32>
      %68 = vector.multi_reduction <add>, %67, %cst_54 [1] : vector<8x32xf32> to vector<8xf32>
      %69 = vector.shape_cast %68 : vector<8xf32> to vector<8x1xf32>
      %cst_55 = arith.constant 3.200000e+01 : f32
      %70 = vector.broadcast %cst_55 : f32 to vector<8x1xf32>
      %71 = arith.divf %69, %70 : vector<8x1xf32>
      %72 = arith.mulf %66, %66 : vector<8x1xf32>
      %73 = arith.subf %71, %72 : vector<8x1xf32>
      %cst_56 = arith.constant 0.000000e+00 : f32
      %74 = vector.broadcast %cst_56 : f32 to vector<8x1xf32>
      %75 = arith.maximumf %73, %74 : vector<8x1xf32>
      %76 = vector.broadcast %66 : vector<8x1xf32> to vector<8x32xf32>
      %77 = arith.subf %62, %76 : vector<8x32xf32>
      %cst_57 = arith.constant 9.99999974E-6 : f32
      %78 = vector.broadcast %cst_57 : f32 to vector<8x1xf32>
      %79 = arith.addf %75, %78 : vector<8x1xf32>
      %80 = math.rsqrt %79 : vector<8x1xf32>
      %81 = vector.broadcast %80 : vector<8x1xf32> to vector<8x32xf32>
      %82 = arith.mulf %77, %81 : vector<8x32xf32>
      %83 = vector.broadcast %40 : vector<1x32xf32> to vector<8x32xf32>
      %84 = arith.mulf %82, %83 : vector<8x32xf32>
      %85 = vector.broadcast %41 : vector<1x32xf32> to vector<8x32xf32>
      %86 = arith.addf %84, %85 : vector<8x32xf32>
      %87 = arith.truncf %86 : vector<8x32xf32> to vector<8x32xbf16>
      %c0_58 = arith.constant 0 : index
      %c0_59 = arith.constant 0 : index
      %88 = vector.load %arg8[%c0_58, %c0_59] : memref<32x64xbf16, #tpu.memory_space<vmem>>, vector<32x64xbf16>
      %cst_60 = arith.constant dense<0.000000e+00> : vector<8x64xf32>
      %89 = tpu.matmul %87, %88, %cst_60 {dimension_numbers = #tpu.dot_dimension_numbers<[1], [0], [0], [1], [0, 0, 1, 1], [], []>} : vector<8x32xbf16>, vector<32x64xbf16>, vector<8x64xf32> -> vector<8x64xf32>
      %c0_61 = arith.constant 0 : index
      %c0_62 = arith.constant 0 : index
      %90 = vector.load %arg9[%c0_61, %c0_62] : memref<1x64xf32, #tpu.memory_space<vmem>>, vector<1x64xf32>
      %91 = vector.broadcast %90 : vector<1x64xf32> to vector<8x64xf32>
      %92 = arith.addf %89, %91 : vector<8x64xf32>
      %cst_63 = arith.constant 0.000000e+00 : f32
      %93 = vector.broadcast %cst_63 : f32 to vector<8x64xf32>
      %94 = arith.maximumf %92, %93 : vector<8x64xf32>
      %95 = arith.truncf %94 : vector<8x64xf32> to vector<8x64xbf16>
      %c0_64 = arith.constant 0 : index
      %c0_65 = arith.constant 0 : index
      %96 = vector.load %arg10[%c0_64, %c0_65] : memref<64x32xbf16, #tpu.memory_space<vmem>>, vector<64x32xbf16>
      %cst_66 = arith.constant dense<0.000000e+00> : vector<8x32xf32>
      %97 = tpu.matmul %95, %96, %cst_66 {dimension_numbers = #tpu.dot_dimension_numbers<[1], [0], [0], [1], [0, 0, 1, 1], [], []>} : vector<8x64xbf16>, vector<64x32xbf16>, vector<8x32xf32> -> vector<8x32xf32>
      %98 = vector.broadcast %42 : vector<1x32xf32> to vector<8x32xf32>
      %99 = arith.addf %97, %98 : vector<8x32xf32>
      %100 = arith.addf %99, %86 : vector<8x32xf32>
      %cst_67 = arith.constant dense<0.000000e+00> : vector<8xf32>
      %101 = vector.multi_reduction <add>, %100, %cst_67 [1] : vector<8x32xf32> to vector<8xf32>
      %102 = vector.shape_cast %101 : vector<8xf32> to vector<8x1xf32>
      %cst_68 = arith.constant 3.200000e+01 : f32
      %103 = vector.broadcast %cst_68 : f32 to vector<8x1xf32>
      %104 = arith.divf %102, %103 : vector<8x1xf32>
      %105 = arith.mulf %100, %100 : vector<8x32xf32>
      %cst_69 = arith.constant dense<0.000000e+00> : vector<8xf32>
      %106 = vector.multi_reduction <add>, %105, %cst_69 [1] : vector<8x32xf32> to vector<8xf32>
      %107 = vector.shape_cast %106 : vector<8xf32> to vector<8x1xf32>
      %cst_70 = arith.constant 3.200000e+01 : f32
      %108 = vector.broadcast %cst_70 : f32 to vector<8x1xf32>
      %109 = arith.divf %107, %108 : vector<8x1xf32>
      %110 = arith.mulf %104, %104 : vector<8x1xf32>
      %111 = arith.subf %109, %110 : vector<8x1xf32>
      %cst_71 = arith.constant 0.000000e+00 : f32
      %112 = vector.broadcast %cst_71 : f32 to vector<8x1xf32>
      %113 = arith.maximumf %111, %112 : vector<8x1xf32>
      %114 = vector.broadcast %104 : vector<8x1xf32> to vector<8x32xf32>
      %115 = arith.subf %100, %114 : vector<8x32xf32>
      %cst_72 = arith.constant 9.99999974E-6 : f32
      %116 = vector.broadcast %cst_72 : f32 to vector<8x1xf32>
      %117 = arith.addf %113, %116 : vector<8x1xf32>
      %118 = math.rsqrt %117 : vector<8x1xf32>
      %119 = vector.broadcast %118 : vector<8x1xf32> to vector<8x32xf32>
      %120 = arith.mulf %115, %119 : vector<8x32xf32>
      %121 = vector.broadcast %43 : vector<1x32xf32> to vector<8x32xf32>
      %122 = arith.mulf %120, %121 : vector<8x32xf32>
      %123 = vector.broadcast %44 : vector<1x32xf32> to vector<8x32xf32>
      %124 = arith.addf %122, %123 : vector<8x32xf32>
      %125 = arith.truncf %124 : vector<8x32xf32> to vector<8x32xbf16>
      %c0_73 = arith.constant 0 : index
      %c0_74 = arith.constant 0 : index
      %c0_75 = arith.constant 0 : index
      %126 = vector.load %arg12[%c0_73, %c0_74, %c0_75] : memref<1x8x32xbf16, #tpu.memory_space<vmem>>, vector<1x8x32xbf16>
      %127 = vector.shape_cast %126 : vector<1x8x32xbf16> to vector<8x32xbf16>
      %128 = vector.shape_cast %125 : vector<8x32xbf16> to vector<1x8x32xbf16>
      tpu.vector_store %arg12[%c0_73, %c0_74, %c0_75], %128 {strides = array<i32>} : memref<1x8x32xbf16, #tpu.memory_space<vmem>>, vector<1x8x32xbf16>,
    } else {
    }
    return
  }
  func.func @transform_0(%arg0: i32, %arg1: i32, %arg2: i32) -> (i32, i32, i32) {
    %c0_i32 = arith.constant 0 : i32
    %c0_i32_0 = arith.constant 0 : i32
    return %arg0, %arg1, %c0_i32 : i32, i32, i32
  }
  func.func @transform_1(%arg0: i32, %arg1: i32, %arg2: i32) -> (i32, i32, i32) {
    %c0_i32 = arith.constant 0 : i32
    %c0_i32_0 = arith.constant 0 : i32
    return %arg0, %arg2, %c0_i32 : i32, i32, i32
  }
  func.func @transform_2(%arg0: i32, %arg1: i32, %arg2: i32) -> (i32, i32) {
    %c0_i32 = arith.constant 0 : i32
    %c0_i32_0 = arith.constant 0 : i32
    return %arg1, %c0_i32 : i32, i32
  }
  func.func @transform_3(%arg0: i32, %arg1: i32, %arg2: i32) -> (i32, i32) {
    %c0_i32 = arith.constant 0 : i32
    %c0_i32_0 = arith.constant 0 : i32
    return %arg2, %c0_i32 : i32, i32
  }
  func.func @transform_4(%arg0: i32, %arg1: i32, %arg2: i32) -> (i32, i32) {
    %c0_i32 = arith.constant 0 : i32
    %c0_i32_0 = arith.constant 0 : i32
    %c0_i32_1 = arith.constant 0 : i32
    return %c0_i32, %c0_i32_0 : i32, i32
  }
  func.func @transform_5(%arg0: i32, %arg1: i32, %arg2: i32) -> (i32, i32) {
    %c0_i32 = arith.constant 0 : i32
    %c0_i32_0 = arith.constant 0 : i32
    %c0_i32_1 = arith.constant 0 : i32
    return %c0_i32, %c0_i32_0 : i32, i32
  }
  func.func @transform_6(%arg0: i32, %arg1: i32, %arg2: i32) -> (i32, i32) {
    %c0_i32 = arith.constant 0 : i32
    %c0_i32_0 = arith.constant 0 : i32
    %c0_i32_1 = arith.constant 0 : i32
    return %c0_i32, %c0_i32_0 : i32, i32
  }
  func.func @transform_7(%arg0: i32, %arg1: i32, %arg2: i32) -> (i32, i32) {
    %c0_i32 = arith.constant 0 : i32
    %c0_i32_0 = arith.constant 0 : i32
    %c0_i32_1 = arith.constant 0 : i32
    return %c0_i32, %c0_i32_0 : i32, i32
  }
  func.func @transform_8(%arg0: i32, %arg1: i32, %arg2: i32) -> (i32, i32) {
    %c0_i32 = arith.constant 0 : i32
    %c0_i32_0 = arith.constant 0 : i32
    %c0_i32_1 = arith.constant 0 : i32
    return %c0_i32, %c0_i32_0 : i32, i32
  }
  func.func @transform_9(%arg0: i32, %arg1: i32, %arg2: i32) -> (i32, i32, i32) {
    %c0_i32 = arith.constant 0 : i32
    %c0_i32_0 = arith.constant 0 : i32
    return %arg0, %arg1, %c0_i32 : i32, i32, i32
  }
}

module attributes {stable_mosaic.version = 11 : i64} {
  func.func @_transformer_block_kernel(%arg0: i32, %arg1: i32, %arg2: i32, %arg3: memref<1x8x32xbf16, #tpu.memory_space<vmem>>, %arg4: memref<1x8x32xbf16, #tpu.memory_space<vmem>>, %arg5: memref<8x32xf32, #tpu.memory_space<vmem>>, %arg6: memref<8x32xf32, #tpu.memory_space<vmem>>, %arg7: memref<32x32xbf16, #tpu.memory_space<vmem>>, %arg8: memref<32x64xbf16, #tpu.memory_space<vmem>>, %arg9: memref<1x64xf32, #tpu.memory_space<vmem>>, %arg10: memref<64x32xbf16, #tpu.memory_space<vmem>>, %arg11: memref<8x32xf32, #tpu.memory_space<vmem>>, %arg12: memref<1x8x32xbf16, #tpu.memory_space<vmem>>, %arg13: memref<4x8x1xf32, #tpu.memory_space<vmem>>, %arg14: memref<4x8x1xf32, #tpu.memory_space<vmem>>, %arg15: memref<4x8x8xf32, #tpu.memory_space<vmem>>, %arg16: memref<4x8x8xbf16, #tpu.memory_space<vmem>>) attributes {dimension_semantics = [#tpu.dimension_semantics<parallel>, #tpu.dimension_semantics<parallel>, #tpu.dimension_semantics<arbitrary>], iteration_bounds = array<i64: 2, 1, 1>, scalar_prefetch = 0 : i64, scratch_operands = 4 : i64, tpu.core_type = #tpu.core_type<tc>, window_params = [{transform_indices = @transform_0, window_bounds = array<i64: 1, 8, 32>}, {transform_indices = @transform_1, window_bounds = array<i64: 1, 8, 32>}, {transform_indices = @transform_2, window_bounds = array<i64: 8, 32>}, {transform_indices = @transform_3, window_bounds = array<i64: 8, 32>}, {pipeline_mode = #tpu.pipeline_mode<synchronous>, transform_indices = @transform_4, window_bounds = array<i64: 32, 32>}, {pipeline_mode = #tpu.pipeline_mode<synchronous>, transform_indices = @transform_5, window_bounds = array<i64: 32, 64>}, {pipeline_mode = #tpu.pipeline_mode<synchronous>, transform_indices = @transform_6, window_bounds = array<i64: 1, 64>}, {pipeline_mode = #tpu.pipeline_mode<synchronous>, transform_indices = @transform_7, window_bounds = array<i64: 64, 32>}, {pipeline_mode = #tpu.pipeline_mode<synchronous>, transform_indices = @transform_8, window_bounds = array<i64: 8, 32>}, {transform_indices = @transform_9, window_bounds = array<i64: 1, 8, 32>}]} {
    %c0_i32 = arith.constant 0 : i32
    %0 = arith.cmpi eq, %arg2, %c0_i32 : i32
    %1 = arith.extui %0 : i1 to i32
    %c0_i32_0 = arith.constant 0 : i32
    %2 = arith.cmpi ne, %1, %c0_i32_0 : i32
    scf.if %2 {
      %cst_31 = arith.constant 0xFF800000 : f32
      %39 = vector.broadcast %cst_31 : f32 to vector<4x8x1xf32>
      %c0_32 = arith.constant 0 : index
      %c0_33 = arith.constant 0 : index
      %c0_34 = arith.constant 0 : index
      %40 = vector.load %arg13[%c0_32, %c0_33, %c0_34] : memref<4x8x1xf32, #tpu.memory_space<vmem>>, vector<4x8x1xf32>
      tpu.vector_store %arg13[%c0_32, %c0_33, %c0_34], %39 {strides = array<i32>} : memref<4x8x1xf32, #tpu.memory_space<vmem>>, vector<4x8x1xf32>,
      %cst_35 = arith.constant 0.000000e+00 : f32
      %41 = vector.broadcast %cst_35 : f32 to vector<4x8x1xf32>
      %c0_36 = arith.constant 0 : index
      %c0_37 = arith.constant 0 : index
      %c0_38 = arith.constant 0 : index
      %42 = vector.load %arg14[%c0_36, %c0_37, %c0_38] : memref<4x8x1xf32, #tpu.memory_space<vmem>>, vector<4x8x1xf32>
      tpu.vector_store %arg14[%c0_36, %c0_37, %c0_38], %41 {strides = array<i32>} : memref<4x8x1xf32, #tpu.memory_space<vmem>>, vector<4x8x1xf32>,
      %cst_39 = arith.constant 0.000000e+00 : f32
      %43 = vector.broadcast %cst_39 : f32 to vector<4x8x8xf32>
      %c0_40 = arith.constant 0 : index
      %c0_41 = arith.constant 0 : index
      %c0_42 = arith.constant 0 : index
      %44 = vector.load %arg15[%c0_40, %c0_41, %c0_42] : memref<4x8x8xf32, #tpu.memory_space<vmem>>, vector<4x8x8xf32>
      tpu.vector_store %arg15[%c0_40, %c0_41, %c0_42], %43 {strides = array<i32>} : memref<4x8x8xf32, #tpu.memory_space<vmem>>, vector<4x8x8xf32>,
      %c0_43 = arith.constant 0 : index
      %c0_44 = arith.constant 0 : index
      %c0_45 = arith.constant 0 : index
      %45 = vector.load %arg3[%c0_43, %c0_44, %c0_45] : memref<1x8x32xbf16, #tpu.memory_space<vmem>>, vector<1x8x32xbf16>
      %46 = vector.shape_cast %45 : vector<1x8x32xbf16> to vector<8x32xbf16>
      %47 = arith.extf %46 : vector<8x32xbf16> to vector<8x32xf32>
      %c0_46 = arith.constant 0 : index
      %c0_47 = arith.constant 0 : index
      %48 = vector.load %arg5[%c0_46, %c0_47] : memref<8x32xf32, #tpu.memory_space<vmem>>, vector<8x32xf32>
      %49 = arith.addf %47, %48 : vector<8x32xf32>
      %cst_48 = arith.constant 0.176776692 : f32
      %50 = vector.broadcast %cst_48 : f32 to vector<8x32xf32>
      %51 = arith.mulf %49, %50 : vector<8x32xf32>
      %52 = arith.truncf %51 : vector<8x32xf32> to vector<8x32xbf16>
      %53 = vector.shape_cast %52 : vector<8x32xbf16> to vector<8x4x8xbf16>
      %54 = tpu.transpose %53, [1, 0, 2] : vector<8x4x8xbf16> -> vector<4x8x8xbf16>
      %c0_49 = arith.constant 0 : index
      %c0_50 = arith.constant 0 : index
      %c0_51 = arith.constant 0 : index
      %55 = vector.load %arg16[%c0_49, %c0_50, %c0_51] : memref<4x8x8xbf16, #tpu.memory_space<vmem>>, vector<4x8x8xbf16>
      tpu.vector_store %arg16[%c0_49, %c0_50, %c0_51], %54 {strides = array<i32>} : memref<4x8x8xbf16, #tpu.memory_space<vmem>>, vector<4x8x8xbf16>,
    } else {
    }
    %c0 = arith.constant 0 : index
    %c0_1 = arith.constant 0 : index
    %c0_2 = arith.constant 0 : index
    %3 = vector.load %arg4[%c0, %c0_1, %c0_2] : memref<1x8x32xbf16, #tpu.memory_space<vmem>>, vector<1x8x32xbf16>
    %4 = vector.shape_cast %3 : vector<1x8x32xbf16> to vector<8x32xbf16>
    %5 = arith.extf %4 : vector<8x32xbf16> to vector<8x32xf32>
    %c0_3 = arith.constant 0 : index
    %c0_4 = arith.constant 0 : index
    %6 = vector.load %arg6[%c0_3, %c0_4] : memref<8x32xf32, #tpu.memory_space<vmem>>, vector<8x32xf32>
    %7 = arith.addf %5, %6 : vector<8x32xf32>
    %8 = arith.truncf %7 : vector<8x32xf32> to vector<8x32xbf16>
    %9 = vector.shape_cast %8 : vector<8x32xbf16> to vector<8x4x8xbf16>
    %10 = tpu.transpose %9, [1, 0, 2] : vector<8x4x8xbf16> -> vector<4x8x8xbf16>
    %c0_5 = arith.constant 0 : index
    %c0_6 = arith.constant 0 : index
    %c0_7 = arith.constant 0 : index
    %11 = vector.load %arg16[%c0_5, %c0_6, %c0_7] : memref<4x8x8xbf16, #tpu.memory_space<vmem>>, vector<4x8x8xbf16>
    "tpu.trace_start"() <{level = 10 : i32, message = "hqd,hkd->hqk"}> : () -> ()
    %cst = arith.constant dense<0.000000e+00> : vector<4x8x8xf32>
    %12 = tpu.matmul %11, %10, %cst {dimension_numbers = #tpu.dot_dimension_numbers<[2], [2], [1], [1], [0, 0, 0, 1, 1, 1], [0], [0]>} : vector<4x8x8xbf16>, vector<4x8x8xbf16>, vector<4x8x8xf32> -> vector<4x8x8xf32>
    "tpu.trace_stop"() : () -> ()
    %c0_8 = arith.constant 0 : index
    %c0_9 = arith.constant 0 : index
    %c0_10 = arith.constant 0 : index
    %13 = vector.load %arg13[%c0_8, %c0_9, %c0_10] : memref<4x8x1xf32, #tpu.memory_space<vmem>>, vector<4x8x1xf32>
    %cst_11 = arith.constant dense<0xFF800000> : vector<4x8xf32>
    %14 = vector.multi_reduction <maximumf>, %12, %cst_11 [2] : vector<4x8x8xf32> to vector<4x8xf32>
    %15 = vector.shape_cast %14 : vector<4x8xf32> to vector<4x8x1xf32>
    %16 = arith.maximumf %13, %15 : vector<4x8x1xf32>
    %17 = arith.subf %13, %16 : vector<4x8x1xf32>
    %18 = math.exp %17 : vector<4x8x1xf32>
    %19 = vector.broadcast %16 : vector<4x8x1xf32> to vector<4x8x8xf32>
    %20 = arith.subf %12, %19 : vector<4x8x8xf32>
    %21 = math.exp %20 : vector<4x8x8xf32>
    %cst_12 = arith.constant dense<0.000000e+00> : vector<4x8xf32>
    %22 = vector.multi_reduction <add>, %21, %cst_12 [2] : vector<4x8x8xf32> to vector<4x8xf32>
    %23 = vector.shape_cast %22 : vector<4x8xf32> to vector<4x8x1xf32>
    %c0_13 = arith.constant 0 : index
    %c0_14 = arith.constant 0 : index
    %c0_15 = arith.constant 0 : index
    %24 = vector.load %arg14[%c0_13, %c0_14, %c0_15] : memref<4x8x1xf32, #tpu.memory_space<vmem>>, vector<4x8x1xf32>
    %25 = arith.mulf %18, %24 : vector<4x8x1xf32>
    %26 = arith.addf %25, %23 : vector<4x8x1xf32>
    %c0_16 = arith.constant 0 : index
    %c0_17 = arith.constant 0 : index
    %c0_18 = arith.constant 0 : index
    %27 = vector.load %arg14[%c0_16, %c0_17, %c0_18] : memref<4x8x1xf32, #tpu.memory_space<vmem>>, vector<4x8x1xf32>
    tpu.vector_store %arg14[%c0_16, %c0_17, %c0_18], %26 {strides = array<i32>} : memref<4x8x1xf32, #tpu.memory_space<vmem>>, vector<4x8x1xf32>,
    %c0_19 = arith.constant 0 : index
    %c0_20 = arith.constant 0 : index
    %c0_21 = arith.constant 0 : index
    %28 = vector.load %arg13[%c0_19, %c0_20, %c0_21] : memref<4x8x1xf32, #tpu.memory_space<vmem>>, vector<4x8x1xf32>
    tpu.vector_store %arg13[%c0_19, %c0_20, %c0_21], %16 {strides = array<i32>} : memref<4x8x1xf32, #tpu.memory_space<vmem>>, vector<4x8x1xf32>,
    %c0_22 = arith.constant 0 : index
    %c0_23 = arith.constant 0 : index
    %c0_24 = arith.constant 0 : index
    %29 = vector.load %arg15[%c0_22, %c0_23, %c0_24] : memref<4x8x8xf32, #tpu.memory_space<vmem>>, vector<4x8x8xf32>
    %30 = vector.broadcast %18 : vector<4x8x1xf32> to vector<4x8x8xf32>
    %31 = arith.mulf %30, %29 : vector<4x8x8xf32>
    %32 = arith.truncf %21 : vector<4x8x8xf32> to vector<4x8x8xbf16>
    "tpu.trace_start"() <{level = 10 : i32, message = "hqk,hkd->hqd"}> : () -> ()
    %cst_25 = arith.constant dense<0.000000e+00> : vector<4x8x8xf32>
    %33 = tpu.matmul %32, %10, %cst_25 {dimension_numbers = #tpu.dot_dimension_numbers<[2], [1], [1], [2], [0, 0, 0, 1, 1, 2], [0], [0]>} : vector<4x8x8xbf16>, vector<4x8x8xbf16>, vector<4x8x8xf32> -> vector<4x8x8xf32>
    "tpu.trace_stop"() : () -> ()
    %34 = arith.addf %31, %33 : vector<4x8x8xf32>
    %c0_26 = arith.constant 0 : index
    %c0_27 = arith.constant 0 : index
    %c0_28 = arith.constant 0 : index
    %35 = vector.load %arg15[%c0_26, %c0_27, %c0_28] : memref<4x8x8xf32, #tpu.memory_space<vmem>>, vector<4x8x8xf32>
    tpu.vector_store %arg15[%c0_26, %c0_27, %c0_28], %34 {strides = array<i32>} : memref<4x8x8xf32, #tpu.memory_space<vmem>>, vector<4x8x8xf32>,
    %c0_i32_29 = arith.constant 0 : i32
    %36 = arith.cmpi eq, %arg2, %c0_i32_29 : i32
    %37 = arith.extui %36 : i1 to i32
    %c0_i32_30 = arith.constant 0 : i32
    %38 = arith.cmpi ne, %37, %c0_i32_30 : i32
    scf.if %38 {
      %c0_31 = arith.constant 0 : index
      %c0_32 = arith.constant 0 : index
      %39 = vector.load %arg11[%c0_31, %c0_32] : memref<8x32xf32, #tpu.memory_space<vmem>>, vector<1x32xf32>
      %c1 = arith.constant 1 : index
      %c0_33 = arith.constant 0 : index
      %40 = vector.load %arg11[%c1, %c0_33] : memref<8x32xf32, #tpu.memory_space<vmem>>, vector<1x32xf32>
      %c2 = arith.constant 2 : index
      %c0_34 = arith.constant 0 : index
      %41 = vector.load %arg11[%c2, %c0_34] : memref<8x32xf32, #tpu.memory_space<vmem>>, vector<1x32xf32>
      %c3 = arith.constant 3 : index
      %c0_35 = arith.constant 0 : index
      %42 = vector.load %arg11[%c3, %c0_35] : memref<8x32xf32, #tpu.memory_space<vmem>>, vector<1x32xf32>
      %c4 = arith.constant 4 : index
      %c0_36 = arith.constant 0 : index
      %43 = vector.load %arg11[%c4, %c0_36] : memref<8x32xf32, #tpu.memory_space<vmem>>, vector<1x32xf32>
      %c5 = arith.constant 5 : index
      %c0_37 = arith.constant 0 : index
      %44 = vector.load %arg11[%c5, %c0_37] : memref<8x32xf32, #tpu.memory_space<vmem>>, vector<1x32xf32>
      %c0_38 = arith.constant 0 : index
      %c0_39 = arith.constant 0 : index
      %c0_40 = arith.constant 0 : index
      %45 = vector.load %arg14[%c0_38, %c0_39, %c0_40] : memref<4x8x1xf32, #tpu.memory_space<vmem>>, vector<4x8x1xf32>
      %46 = tpu.reciprocal %45 {approx = true} : vector<4x8x1xf32> -> vector<4x8x1xf32>
      %c0_41 = arith.constant 0 : index
      %c0_42 = arith.constant 0 : index
      %c0_43 = arith.constant 0 : index
      %47 = vector.load %arg15[%c0_41, %c0_42, %c0_43] : memref<4x8x8xf32, #tpu.memory_space<vmem>>, vector<4x8x8xf32>
      %48 = vector.broadcast %46 : vector<4x8x1xf32> to vector<4x8x8xf32>
      %49 = arith.mulf %47, %48 : vector<4x8x8xf32>
      %50 = tpu.transpose %49, [1, 0, 2] : vector<4x8x8xf32> -> vector<8x4x8xf32>
      %51 = vector.shape_cast %50 : vector<8x4x8xf32> to vector<8x32xf32>
      %52 = arith.truncf %51 : vector<8x32xf32> to vector<8x32xbf16>
      %c0_44 = arith.constant 0 : index
      %c0_45 = arith.constant 0 : index
      %53 = vector.load %arg7[%c0_44, %c0_45] : memref<32x32xbf16, #tpu.memory_space<vmem>>, vector<32x32xbf16>
      %cst_46 = arith.constant dense<0.000000e+00> : vector<8x32xf32>
      %54 = tpu.matmul %52, %53, %cst_46 {dimension_numbers = #tpu.dot_dimension_numbers<[1], [0], [0], [1], [0, 0, 1, 1], [], []>} : vector<8x32xbf16>, vector<32x32xbf16>, vector<8x32xf32> -> vector<8x32xf32>
      %55 = vector.broadcast %39 : vector<1x32xf32> to vector<8x32xf32>
      %56 = arith.addf %54, %55 : vector<8x32xf32>
      %c0_47 = arith.constant 0 : index
      %c0_48 = arith.constant 0 : index
      %c0_49 = arith.constant 0 : index
      %57 = vector.load %arg3[%c0_47, %c0_48, %c0_49] : memref<1x8x32xbf16, #tpu.memory_space<vmem>>, vector<1x8x32xbf16>
      %58 = vector.shape_cast %57 : vector<1x8x32xbf16> to vector<8x32xbf16>
      %59 = arith.extf %58 : vector<8x32xbf16> to vector<8x32xf32>
      %c0_50 = arith.constant 0 : index
      %c0_51 = arith.constant 0 : index
      %60 = vector.load %arg5[%c0_50, %c0_51] : memref<8x32xf32, #tpu.memory_space<vmem>>, vector<8x32xf32>
      %61 = arith.addf %59, %60 : vector<8x32xf32>
      %62 = arith.addf %56, %61 : vector<8x32xf32>
      %cst_52 = arith.constant dense<0.000000e+00> : vector<8xf32>
      %63 = vector.multi_reduction <add>, %62, %cst_52 [1] : vector<8x32xf32> to vector<8xf32>
      %64 = vector.shape_cast %63 : vector<8xf32> to vector<8x1xf32>
      %cst_53 = arith.constant 3.200000e+01 : f32
      %65 = vector.broadcast %cst_53 : f32 to vector<8x1xf32>
      %66 = arith.divf %64, %65 : vector<8x1xf32>
      %67 = arith.mulf %62, %62 : vector<8x32xf32>
      %cst_54 = arith.constant dense<0.000000e+00> : vector<8xf32>
      %68 = vector.multi_reduction <add>, %67, %cst_54 [1] : vector<8x32xf32> to vector<8xf32>
      %69 = vector.shape_cast %68 : vector<8xf32> to vector<8x1xf32>
      %cst_55 = arith.constant 3.200000e+01 : f32
      %70 = vector.broadcast %cst_55 : f32 to vector<8x1xf32>
      %71 = arith.divf %69, %70 : vector<8x1xf32>
      %72 = arith.mulf %66, %66 : vector<8x1xf32>
      %73 = arith.subf %71, %72 : vector<8x1xf32>
      %cst_56 = arith.constant 0.000000e+00 : f32
      %74 = vector.broadcast %cst_56 : f32 to vector<8x1xf32>
      %75 = arith.maximumf %73, %74 : vector<8x1xf32>
      %76 = vector.broadcast %66 : vector<8x1xf32> to vector<8x32xf32>
      %77 = arith.subf %62, %76 : vector<8x32xf32>
      %cst_57 = arith.constant 9.99999974E-6 : f32
      %78 = vector.broadcast %cst_57 : f32 to vector<8x1xf32>
      %79 = arith.addf %75, %78 : vector<8x1xf32>
      %80 = math.rsqrt %79 : vector<8x1xf32>
      %81 = vector.broadcast %80 : vector<8x1xf32> to vector<8x32xf32>
      %82 = arith.mulf %77, %81 : vector<8x32xf32>
      %83 = vector.broadcast %40 : vector<1x32xf32> to vector<8x32xf32>
      %84 = arith.mulf %82, %83 : vector<8x32xf32>
      %85 = vector.broadcast %41 : vector<1x32xf32> to vector<8x32xf32>
      %86 = arith.addf %84, %85 : vector<8x32xf32>
      %87 = arith.truncf %86 : vector<8x32xf32> to vector<8x32xbf16>
      %c0_58 = arith.constant 0 : index
      %c0_59 = arith.constant 0 : index
      %88 = vector.load %arg8[%c0_58, %c0_59] : memref<32x64xbf16, #tpu.memory_space<vmem>>, vector<32x64xbf16>
      %cst_60 = arith.constant dense<0.000000e+00> : vector<8x64xf32>
      %89 = tpu.matmul %87, %88, %cst_60 {dimension_numbers = #tpu.dot_dimension_numbers<[1], [0], [0], [1], [0, 0, 1, 1], [], []>} : vector<8x32xbf16>, vector<32x64xbf16>, vector<8x64xf32> -> vector<8x64xf32>
      %c0_61 = arith.constant 0 : index
      %c0_62 = arith.constant 0 : index
      %90 = vector.load %arg9[%c0_61, %c0_62] : memref<1x64xf32, #tpu.memory_space<vmem>>, vector<1x64xf32>
      %91 = vector.broadcast %90 : vector<1x64xf32> to vector<8x64xf32>
      %92 = arith.addf %89, %91 : vector<8x64xf32>
      %cst_63 = arith.constant 0.000000e+00 : f32
      %93 = vector.broadcast %cst_63 : f32 to vector<8x64xf32>
      %94 = arith.maximumf %92, %93 : vector<8x64xf32>
      %95 = arith.truncf %94 : vector<8x64xf32> to vector<8x64xbf16>
      %c0_64 = arith.constant 0 : index
      %c0_65 = arith.constant 0 : index
      %96 = vector.load %arg10[%c0_64, %c0_65] : memref<64x32xbf16, #tpu.memory_space<vmem>>, vector<64x32xbf16>
      %cst_66 = arith.constant dense<0.000000e+00> : vector<8x32xf32>
      %97 = tpu.matmul %95, %96, %cst_66 {dimension_numbers = #tpu.dot_dimension_numbers<[1], [0], [0], [1], [0, 0, 1, 1], [], []>} : vector<8x64xbf16>, vector<64x32xbf16>, vector<8x32xf32> -> vector<8x32xf32>
      %98 = vector.broadcast %42 : vector<1x32xf32> to vector<8x32xf32>
      %99 = arith.addf %97, %98 : vector<8x32xf32>
      %100 = arith.addf %99, %86 : vector<8x32xf32>
      %cst_67 = arith.constant dense<0.000000e+00> : vector<8xf32>
      %101 = vector.multi_reduction <add>, %100, %cst_67 [1] : vector<8x32xf32> to vector<8xf32>
      %102 = vector.shape_cast %101 : vector<8xf32> to vector<8x1xf32>
      %cst_68 = arith.constant 3.200000e+01 : f32
      %103 = vector.broadcast %cst_68 : f32 to vector<8x1xf32>
      %104 = arith.divf %102, %103 : vector<8x1xf32>
      %105 = arith.mulf %100, %100 : vector<8x32xf32>
      %cst_69 = arith.constant dense<0.000000e+00> : vector<8xf32>
      %106 = vector.multi_reduction <add>, %105, %cst_69 [1] : vector<8x32xf32> to vector<8xf32>
      %107 = vector.shape_cast %106 : vector<8xf32> to vector<8x1xf32>
      %cst_70 = arith.constant 3.200000e+01 : f32
      %108 = vector.broadcast %cst_70 : f32 to vector<8x1xf32>
      %109 = arith.divf %107, %108 : vector<8x1xf32>
      %110 = arith.mulf %104, %104 : vector<8x1xf32>
      %111 = arith.subf %109, %110 : vector<8x1xf32>
      %cst_71 = arith.constant 0.000000e+00 : f32
      %112 = vector.broadcast %cst_71 : f32 to vector<8x1xf32>
      %113 = arith.maximumf %111, %112 : vector<8x1xf32>
      %114 = vector.broadcast %104 : vector<8x1xf32> to vector<8x32xf32>
      %115 = arith.subf %100, %114 : vector<8x32xf32>
      %cst_72 = arith.constant 9.99999974E-6 : f32
      %116 = vector.broadcast %cst_72 : f32 to vector<8x1xf32>
      %117 = arith.addf %113, %116 : vector<8x1xf32>
      %118 = math.rsqrt %117 : vector<8x1xf32>
      %119 = vector.broadcast %118 : vector<8x1xf32> to vector<8x32xf32>
      %120 = arith.mulf %115, %119 : vector<8x32xf32>
      %121 = vector.broadcast %43 : vector<1x32xf32> to vector<8x32xf32>
      %122 = arith.mulf %120, %121 : vector<8x32xf32>
      %123 = vector.broadcast %44 : vector<1x32xf32> to vector<8x32xf32>
      %124 = arith.addf %122, %123 : vector<8x32xf32>
      %125 = arith.truncf %124 : vector<8x32xf32> to vector<8x32xbf16>
      %c0_73 = arith.constant 0 : index
      %c0_74 = arith.constant 0 : index
      %c0_75 = arith.constant 0 : index
      %126 = vector.load %arg12[%c0_73, %c0_74, %c0_75] : memref<1x8x32xbf16, #tpu.memory_space<vmem>>, vector<1x8x32xbf16>
      %127 = vector.shape_cast %126 : vector<1x8x32xbf16> to vector<8x32xbf16>
      %128 = vector.shape_cast %125 : vector<8x32xbf16> to vector<1x8x32xbf16>
      tpu.vector_store %arg12[%c0_73, %c0_74, %c0_75], %128 {strides = array<i32>} : memref<1x8x32xbf16, #tpu.memory_space<vmem>>, vector<1x8x32xbf16>,
    } else {
    }
    return
  }
  func.func @transform_0(%arg0: i32, %arg1: i32, %arg2: i32) -> (i32, i32, i32) {
    %c0_i32 = arith.constant 0 : i32
    %c0_i32_0 = arith.constant 0 : i32
    return %arg0, %arg1, %c0_i32 : i32, i32, i32
  }
  func.func @transform_1(%arg0: i32, %arg1: i32, %arg2: i32) -> (i32, i32, i32) {
    %c0_i32 = arith.constant 0 : i32
    %c0_i32_0 = arith.constant 0 : i32
    return %arg0, %arg2, %c0_i32 : i32, i32, i32
  }
  func.func @transform_2(%arg0: i32, %arg1: i32, %arg2: i32) -> (i32, i32) {
    %c0_i32 = arith.constant 0 : i32
    %c0_i32_0 = arith.constant 0 : i32
    return %arg1, %c0_i32 : i32, i32
  }
  func.func @transform_3(%arg0: i32, %arg1: i32, %arg2: i32) -> (i32, i32) {
    %c0_i32 = arith.constant 0 : i32
    %c0_i32_0 = arith.constant 0 : i32
    return %arg2, %c0_i32 : i32, i32
  }
  func.func @transform_4(%arg0: i32, %arg1: i32, %arg2: i32) -> (i32, i32) {
    %c0_i32 = arith.constant 0 : i32
    %c0_i32_0 = arith.constant 0 : i32
    %c0_i32_1 = arith.constant 0 : i32
    return %c0_i32, %c0_i32_0 : i32, i32
  }
  func.func @transform_5(%arg0: i32, %arg1: i32, %arg2: i32) -> (i32, i32) {
    %c0_i32 = arith.constant 0 : i32
    %c0_i32_0 = arith.constant 0 : i32
    %c0_i32_1 = arith.constant 0 : i32
    return %c0_i32, %c0_i32_0 : i32, i32
  }
  func.func @transform_6(%arg0: i32, %arg1: i32, %arg2: i32) -> (i32, i32) {
    %c0_i32 = arith.constant 0 : i32
    %c0_i32_0 = arith.constant 0 : i32
    %c0_i32_1 = arith.constant 0 : i32
    return %c0_i32, %c0_i32_0 : i32, i32
  }
  func.func @transform_7(%arg0: i32, %arg1: i32, %arg2: i32) -> (i32, i32) {
    %c0_i32 = arith.constant 0 : i32
    %c0_i32_0 = arith.constant 0 : i32
    %c0_i32_1 = arith.constant 0 : i32
    return %c0_i32, %c0_i32_0 : i32, i32
  }
  func.func @transform_8(%arg0: i32, %arg1: i32, %arg2: i32) -> (i32, i32) {
    %c0_i32 = arith.constant 0 : i32
    %c0_i32_0 = arith.constant 0 : i32
    %c0_i32_1 = arith.constant 0 : i32
    return %c0_i32, %c0_i32_0 : i32, i32
  }
  func.func @transform_9(%arg0: i32, %arg1: i32, %arg2: i32) -> (i32, i32, i32) {
    %c0_i32 = arith.constant 0 : i32
    %c0_i32_0 = arith.constant 0 : i32
    return %arg0, %arg1, %c0_i32 : i32, i32, i32
  }
}

</mosaic_0001>

<bundles_post_ra>
// kernel: tpu_custom_call.1
= control target key start
LH: loop header
LB: loop body
LE: loop exit
PB: predicated region body
PF: predicated region fallthrough
CT: control target
= control target key end

     0   :  { %s2775_s0 = inlined_call_operand.vmem [shape: bf16[2,8,32], index: 0, kind: input, shape index: {}]   ;;  %s2776_s1 = inlined_call_operand.vmem [shape: bf16[2,8,32], index: 1, kind: input, shape index: {}]   ;;  %s2777_s2 = inlined_call_operand.hbm [shape: f32[8,32], index: 2, kind: input, shape index: {}]   ;;  %s2778_s3 = inlined_call_operand.hbm [shape: f32[8,32], index: 3, kind: input, shape index: {}]   ;;  %s2779_s4 = inlined_call_operand.vmem [shape: bf16[32,32], index: 4, kind: input, shape index: {}]   ;;  %s2780_s5 = inlined_call_operand.vmem [shape: bf16[32,64], index: 5, kind: input, shape index: {}]   ;;  %s2781_s6 = inlined_call_operand.vmem [shape: f32[1,64], index: 6, kind: input, shape index: {}]   ;;  %s2782_s7 = inlined_call_operand.vmem [shape: bf16[64,32], index: 7, kind: input, shape index: {}]   ;;  %s2783_s8 = inlined_call_operand.vmem [shape: f32[8,32], index: 8, kind: input, shape index: {}]   ;;  %s2784_s9 = inlined_call_operand.hbm [shape: bf16[2,8,32], index: 9, kind: output, shape index: {}]  }
   0x1   :  { %2789 = sst [smem:[#allocation15_spill]] %s2775_s0 }
   0x2   :  { %14 = vsyncpa [#allocation7], 0 }
   0x3   :  { %15 = vsyncpa [#allocation10], 0 }
   0x4   :  { %16 = vsyncpa [#allocation8], 0 }
   0x5   :  { %18 = vsyncpa [#allocation8 + $0x1], 0  ;;  %s2390_s30 = smov 0   ;;  %s2392_s10 = smov 0  }
   0x6   :  { %s2394_s11 = smov 0   ;;  %s2396_s12 = smov 0  }
   0x7   :  { %s2398_s13 = smov 0   ;;  %s2400_s14 = smov 0  }
   0x8 LB: > { %s1914_s15 = sadd.s32 4294967295, %s2323_s14   ;;  %s1915_s16 = sadd.s32 4294967294, %s2323_s14   ;;  %s2323_s14 = sphi %s2400_s14, %s24_s14   ;;  %s2319_s13 = sphi %s2398_s13, %s2804_s13   ;;  %s2315_s12 = sphi %s2396_s12, %s2803_s12   ;;  %s2311_s11 = sphi %s2394_s11, %s2802_s11   ;;  %s2307_s10 = sphi %s2392_s10, %s2801_s10   ;;  %s2303_s30 = sphi %s2390_s30, %s2800_s30  }
   0x9   : > { %s43_s17 = sadd.s32 1, %s2319_s13  ;;  %s265_s18 = sadd.s32 1, %s2311_s11 }
   0xa   : > { %p45_p0 = scmp.ge.s32.totalorder %s43_s17, 2  ;;  %p275_p1 = scmp.ne.s32.totalorder %s2311_s11, %s2307_s10 }
   0xb   : > { %p276_p2 = scmp.eq.s32.totalorder %s1914_s15, 1  ;;  %p281_p3 = scmp.ne.s32.totalorder %s2307_s10, %s2303_s30 }
   0xc   : > { %s2806_s17 = smov (%p45_p0, %s43_s17), 0  ;;  %p282_p5 = scmp.eq.s32.totalorder %s1915_s16, 1 }
   0xd   : > { %p2430_p4 = por %p276_p2, %p275_p1  ;;  %s260_s20 = ssub.s32 %s2319_s13, %s2806_s17 }
   0xe   : > { %p1916_p6 = scmp.ge.s32.totalorder %s2323_s14, 1  ;;  %p263_p7 = scmp.eq.s32.totalorder %s260_s20, 0 }
   0xf   : > { %s2790_s19 = scalar_select %p2430_p4, 1, 0 }
  0x10   : > { %p2437_p8 = por %p282_p5, %p281_p3  ;;  %p289_p9 = scmp.lt.s32.totalorder %s2323_s14, 3 }
  0x11   : > { %s2443_s22 = scalar_select %p263_p7, %s2311_s11, %s265_s18  }
  0x12   : > { %s2791_s21 = scalar_select %p2437_p8, 1, 0 }
  0x13   : > { %p2445_p10 = pnand %p1916_p6, %p289_p9  ;;  %p2449_p11 = scmp.eq.s32.totalorder %s1914_s15, 0 }
  0x14   : > { %s2325_s25 = smov [#allocation6]   ;;  %s2326_s27 = smov [#allocation9]  }
  0x15   : > { %s2792_s23 = scalar_select %p2445_p10, 1, 0 }
  0x16   : > { %s2793_s24 = scalar_select %p2449_p11, 1, 0 }
  0x17   : > { %p2071_p12 = pneg %p2445_p10  ;;  %s304_s26 = sshll.u32 %s2325_s25, 4  ;;  %s305_s26 = int_to_ptr.vmem [resolvable:$true] %s304_s26 }
  0x18   : > { %s317_s28 = sshll.u32 %s2326_s27, 4  ;;  %s2198_s15 = scalar_lea.vmem %s305_s26, 128  ;;  %s318_s28 = int_to_ptr.vmem [resolvable:$true] %s317_s28 }
  0x19   : > { %p2457_p13 = pnand %p2449_p11, %p2071_p12  ;;  %p2199_p1 = scmp.ne.s32.totalorder %s305_s26, %s2198_s15 }
  0x1a   : > { %p2206_p5 = scmp.lt.s32.totalorder %s305_s26, %s305_s26  ;;  %p2207_p6 = scmp.lt.s32.totalorder %s2198_s15, %s2198_s15 }
  0x1b   : > { %p2189_p0 = pneg %p2457_p13 }
  0x1c   : > { %p2208_p7 = por %p2207_p6, %p2206_p5 }
  0x1d   : > { %p2201_p2 = pnand %p2199_p1, %p2189_p0 }
  0x1f   : > { %p2202_p3 = pneg %p2201_p2 }
  0x21   : > { %p2209_p9 = pnand %p2208_p7, %p2202_p3 }
  0x23   : > { %2212 = shalt.err (!%p2209_p9)
}
  0x24   : > { %2074 = dma.hbm_to_vmem [thread:$0]  (!%p2457_p13), %s2777_s2, 128, %s305_s26, [#allocation7]  }
  0x25   : > { %s2224_s20 = scalar_lea.vmem %s318_s28, 128  ;;  %p2232_p1 = scmp.lt.s32.totalorder %s318_s28, %s318_s28 }
  0x26   : > { %p2225_p12 = scmp.ne.s32.totalorder %s318_s28, %s2224_s20  ;;  %p2233_p2 = scmp.lt.s32.totalorder %s2224_s20, %s2224_s20 }
  0x28   : > { %p2227_p8 = pnand %p2225_p12, %p2189_p0  ;;  %p2234_p11 = por %p2233_p2, %p2232_p1 }
  0x2a   : > { %p2228_p4 = pneg %p2227_p8 }
  0x2c   : > { %p2235_p10 = pnand %p2234_p11, %p2228_p4 }
  0x2e   : > { %2238 = shalt.err (!%p2235_p10)
}
  0x2f   : > { %2077 = dma.hbm_to_vmem [thread:$0]  (!%p2457_p13), %s2778_s3, 128, %s318_s28, [#allocation10]  }
  0x30   : > { %p2795_p3 = scmp.ne.s32.totalorder %s2792_s23, 0 }
  0x31   : > { %p2796_p5 = scmp.ne.s32.totalorder (!%p2795_p3), %s2793_s24, 0 }
  0x32   : > { %365 = sbr.rel (%p2795_p3) target bundleno = 2102 (0x836), region = 56 }
  0x37   : > { %2290 = dma.done.wait (%p2796_p5), [#allocation7], 128  }
  0x38   : > { %2292 = vsyncadd (%p2796_p5), [#allocation7], 4294967168 }
  0x39   : > { %2294 = dma.done.wait (%p2796_p5), [#allocation10], 128  }
  0x3a   : > { %2296 = vsyncadd (%p2796_p5), [#allocation10], 4294967168  ;;  %p414_p4 = scmp.lt.s32.totalorder %s2315_s12, 1  ;;  %v2327_v0 = vmov 0   ;;  %s2797_s0 = sld [smem:[#allocation15_spill]]  ;;  %v632_v2 = vld [vmem:[#allocation9] sm:$0xff]  ;;  %v463_v15 = vlaneseq }
  0x3b   : > { %2149 = vset.pattern.permute.xlu1 %v2327_v0  ;;  %2150 = vset.pattern.permute.xlu0 %v2327_v0  ;;  %v2502_v6 = vld [vmem:[#allocation6] sm:$0xff]  ;;  %s2328_s24 = smov 120   ;;  %s2329_s25 = smov 104   ;;  %vm442_vm0 = vcmask 64512   ;;  %v2331_v12 = vmov 0.0   ;;  %vm2332_vm1 = vmmov 0  }
  0x3c   : > { %s415_s26 = scalar_select %p414_p4, %s2315_s12, 1  ;;  %1985 = vmatprep.subr.bf16.mxu1 %v2331_v12  ;;  %443 = vst.msk [vmem:[#allocation4] sm:$0xff] %vm442_vm0, %v2331_v12  ;;  %444 = vst.msk [vmem:[#allocation4 + $0x8] sm:$0xff] %vm442_vm0, %v2331_v12  ;;  %1997 = vmatprep.subr.bf16.mxu0 %v2331_v12  ;;  %v2333_v13 = vmov 1983009808   ;;  %v464_v17 = vshrl.u32 %v463_v15, 7 }
  0x3d   : > { %s2330_s27 = smov 112   ;;  %445 = vst.msk [vmem:[#allocation4 + $0x10] sm:$0xff] %vm442_vm0, %v2331_v12  ;;  %446 = vst.msk [vmem:[#allocation4 + $0x18] sm:$0xff] %vm442_vm0, %v2331_v12  ;;  %1987 = vmatprep.mubr.msk.bf16.mxu1 %vm2332_vm1, %v2331_v12  ;;  %1999 = vmatprep.mubr.msk.bf16.mxu0 %vm2332_vm1, %v2331_v12  ;;  %v461_v14 = vunpack.c.l.s4 %v2333_v13  ;;  %v2334_v18 = vmov 1934713408   ;;  %vm625_vm2 = vcmask 60416  }
  0x3e   : > { %s1924_s28 = sshll.u32 %s415_s26, 2  ;;  %v478_v19 = vunpack.c.l.s4 %v2334_v18  ;;  %vm1124_vm3 = vcmask 1043456   ;;  %vm433_vm4 = vcmask 7168   ;;  %s2337_s16 = smov 8   ;;  %vm1504_vm5 = vcmask 130048  }
  0x3f   : > { %s427_s15 = scalar_lea.vmem %s2776_s1, %s1924_s28  ;;  %v462_v16 = vunpack.c.0.s8 %v461_v14  ;;  %438 = vst.msk [vmem:[#allocation3] sm:$0xff] %vm433_vm4, %v2331_v12  ;;  %439 = vst.msk [vmem:[#allocation3 + $0x8] sm:$0xff] %vm433_vm4, %v2331_v12  ;;  %s2338_s18 = smov 24   ;;  %vm1506_vm6 = vcmask 195584   ;;  %vm1529_vm7 = vcmask 261120   ;;  %vm1710_vm8 = vcmask 523264  }
  0x40   : > { %s2499_s20 = scalar_lea.vmem %s2797_s0, %s1924_s28  ;;  %v630_v1 = vld [vmem:[%s427_s15] sm:$0xf]  ;;  %v479_v22 = vunpack.c.0.s8 %v478_v19  ;;  %440 = vst.msk [vmem:[#allocation3 + $0x10] sm:$0xff] %vm433_vm4, %v2331_v12  ;;  %441 = vst.msk [vmem:[#allocation3 + $0x18] sm:$0xff] %vm433_vm4, %v2331_v12  ;;  %s2336_s15 = smov 16   ;;  %vm1782_vm9 = vcmask 257024  }
  0x41   : > { %v447_v3 = vld [vmem:[%s2499_s20] sm:$0xf]  ;;  %v631_v4 = vunpack.c.l.bf16 %v630_v1  ;;  %v2519_v21 = vsub.s32 %v462_v16, %v464_v17  ;;  %s1955_s23 = sshll.u32 %s2315_s12, 6  ;;  %p2798_p10 = scmp.ne.s32.totalorder %s2790_s19, 0 }
  0x42   : > { %v448_v5 = vunpack.c.l.bf16 %v447_v3  ;;  %v2522_v26 = vsub.s32 %v479_v22, %v464_v17  ;;  %s1797_s0 = scalar_lea.hbm %s2784_s9, %s1955_s23  ;;  %s2339_s26 = smov [#allocation11]  }
  0x43   : > { %v633_v7 = vadd.f32 %v632_v2, %v631_v4  ;;  %s2243_s28 = sshll.u32 %s2339_s26, 4  ;;  %s2244_s28 = int_to_ptr.vmem [resolvable:$false] %s2243_s28 }
  0x44   : > { %v450_v8 = vadd.f32 %v2502_v6, %v448_v5  ;;  %s2245_s12 = scalar_lea.vmem %s2244_s28, 128 }
  0x45   : > { %v634_v9 = vpack.c.bf16 %v633_v7, %v633_v7 }
  0x46   : > { %v451_v10 = vmul.f32 0.17677669, %v450_v8 }
  0x47   : > { %636 = vrot.lane.b32.xlu1 %v634_v9, %s2328_s24  ;;  %v648_v45 = vrot.slane %v634_v9, %v2519_v21 }
  0x48   : > { %v452_v11 = vpack.c.bf16 %v451_v10, %v451_v10 }
  0x4a   : > { %454 = vrot.lane.b32.xlu0 %v452_v11, %s2328_s24  ;;  %v466_v28 = vrot.slane %v452_v11, %v2519_v21  ;;  %s411_s24 = sand.u32 1, %s2307_s10  }
  0x4b   : > { %458 = vrot.lane.b32.xlu1 %v452_v11, %s2329_s25 }
  0x4e   : > { %456 = vrot.lane.b32.xlu0 %v452_v11, %s2330_s27 }
  0x4f   : > { %640 = vrot.lane.b32.xlu1 %v634_v9, %s2329_s25  ;;  %s1923_s25 = sshll.u32 %s411_s24, 2 }
  0x50   : > { %s413_s29 = scalar_lea.vmem [#allocation11], %s1923_s25 }
  0x52   : > { %638 = vrot.lane.b32.xlu0 %v634_v9, %s2330_s27 }
  0xb9   : > { %v637_v20 = vpop.permute.xlu1 %636 }
  0xba   : > { %v682_v39 = vrot.slane %v637_v20, %v2519_v21 }
  0xbc   : > { %v455_v23 = vpop.permute.xlu0 %454 }
  0xbd   : > { %v459_v24 = vpop.permute.xlu1 %458  ;;  %v500_v25 = vrot.slane %v455_v23, %v2519_v21 }
  0xbe   : > { %v508_v27 = vrot.slane %v459_v24, %v2519_v21 }
  0xc0   : > { %v457_v29 = vpop.permute.xlu0 %456  ;;  %v509_v30 = vcombine.low %v500_v25, %v508_v27  ;;  %v510_v31 = vcombine.high %v500_v25, %v508_v27 }
  0xc1   : > { %v474_v32 = vrot.slane %v457_v29, %v2519_v21  ;;  %v641_v33 = vpop.permute.xlu1 %640 }
  0xc2   : > { %v517_v34 = vrot.slane %v509_v30, %v2522_v26  ;;  %v524_v35 = vrot.slane %v510_v31, %v2522_v26  ;;  %v690_v38 = vrot.slane %v641_v33, %v2519_v21 }
  0xc3   : > { %v475_v36 = vcombine.low %v466_v28, %v474_v32  ;;  %v476_v37 = vcombine.high %v466_v28, %v474_v32 }
  0xc4   : > { %v525_v40 = vcombine.high %v517_v34, %v2327_v0  ;;  %v526_v41 = vcombine.high %v524_v35, %v2327_v0  ;;  %v532_v42 = vshrl.u32 %v517_v34, 16  ;;  %v639_v46 = vpop.permute.xlu0 %638  ;;  %v548_v48 = vshrl.u32 %v524_v35, 16 }
  0xc5   : > { %v483_v43 = vrot.slane %v475_v36, %v2522_v26  ;;  %v490_v44 = vrot.slane %v476_v37, %v2522_v26  ;;  %v691_v49 = vcombine.low %v682_v39, %v690_v38  ;;  %v692_v50 = vcombine.high %v682_v39, %v690_v38 }
  0xc6   : > { %v540_v47 = vshrl.u32 %v525_v40, 16  ;;  %v556_v55 = vshrl.u32 %v526_v41, 16  ;;  %v656_v58 = vrot.slane %v639_v46, %v2519_v21 }
  0xc7   : > { %v491_v51 = vcombine.high %v483_v43, %v2327_v0  ;;  %v492_v52 = vcombine.high %v490_v44, %v2327_v0  ;;  %v529_v53 = vpack.i.b16 %v517_v34, %v483_v43  ;;  %v531_v54 = vshrl.u32 %v483_v43, 16 }
  0xc8   : > { %v545_v56 = vpack.i.b16 %v524_v35, %v490_v44  ;;  %v547_v57 = vshrl.u32 %v490_v44, 16  ;;  %v699_v3 = vrot.slane %v691_v49, %v2522_v26  ;;  %v706_v7 = vrot.slane %v692_v50, %v2522_v26 }
  0xc9   : > { %v533_v59 = vpack.i.b16 %v532_v42, %v531_v54  ;;  %v537_v60 = vpack.i.b16 %v525_v40, %v491_v51  ;;  %v539_v61 = vshrl.u32 %v491_v51, 16  ;;  %v553_v62 = vpack.i.b16 %v526_v41, %v492_v52 }
  0xca   : > { %v549_v63 = vpack.i.b16 %v548_v48, %v547_v57  ;;  %v555_v1 = vshrl.u32 %v492_v52, 16  ;;  %v559_v2 = vcombine.low %v529_v53, %v545_v56  ;;  %v657_v13 = vcombine.low %v648_v45, %v656_v58 }
  0xcb   : > { %v541_v4 = vpack.i.b16 %v540_v47, %v539_v61  ;;  %v567_v5 = vcombine.low %v537_v60, %v553_v62  ;;  %v707_v15 = vcombine.high %v699_v3, %v2327_v0  ;;  %v658_v16 = vcombine.high %v648_v45, %v656_v58 }
  0xcc   : > { %v557_v8 = vpack.i.b16 %v556_v55, %v555_v1  ;;  %v584_v9 = vcombine.low %v533_v59, %v549_v63  ;;  %v566_v10 = vrot.slane %v559_v2, %v2519_v21  ;;  %v708_v18 = vcombine.high %v706_v7, %v2327_v0 }
  0xcd   : > { %v574_v11 = vrot.slane %v567_v5, %v2519_v21  ;;  %v714_v19 = vshrl.u32 %v699_v3, 16  ;;  %v665_v20 = vrot.slane %v657_v13, %v2522_v26  ;;  %v730_v24 = vshrl.u32 %v706_v7, 16 }
  0xce   : > { %v592_v14 = vcombine.low %v541_v4, %v557_v8  ;;  %v591_v22 = vrot.slane %v584_v9, %v2519_v21  ;;  %v672_v25 = vrot.slane %v658_v16, %v2522_v26  ;;  %v722_v36 = vshrl.u32 %v707_v15, 16 }
  0xcf   : > { %v575_v17 = vcombine.low %v566_v10, %v574_v11  ;;  %v673_v28 = vcombine.high %v665_v20, %v2327_v0  ;;  %v711_v29 = vpack.i.b16 %v699_v3, %v665_v20  ;;  %v713_v30 = vshrl.u32 %v665_v20, 16 }
  0xd0   : > { %v599_v23 = vrot.slane %v592_v14, %v2519_v21  ;;  %v674_v32 = vcombine.high %v672_v25, %v2327_v0  ;;  %v727_v33 = vpack.i.b16 %v706_v7, %v672_v25  ;;  %v729_v34 = vshrl.u32 %v672_v25, 16 }
  0xd1   : > { %v582_v27 = vrot.slane %v575_v17, %v2522_v26  ;;  %v715_v37 = vpack.i.b16 %v714_v19, %v713_v30  ;;  %v719_v38 = vpack.i.b16 %v707_v15, %v673_v28  ;;  %v721_v40 = vshrl.u32 %v673_v28, 16 }
  0xd2   : > { %v600_v31 = vcombine.low %v591_v22, %v599_v23  ;;  %v731_v41 = vpack.i.b16 %v730_v24, %v729_v34  ;;  %v735_v42 = vpack.i.b16 %v708_v18, %v674_v32  ;;  %v738_v44 = vshrl.u32 %v708_v18, 16 }
  0xd3   : > { %v583_v35 = vcombine.high %v582_v27, %v2327_v0  ;;  %v613_v43 = vshrl.u32 %v582_v27, 16  ;;  %v737_v45 = vshrl.u32 %v674_v32, 16  ;;  %v741_v46 = vcombine.low %v711_v29, %v727_v33 }
  0xd4   : > { %v607_v39 = vrot.slane %v600_v31, %v2522_v26  ;;  %v723_v50 = vpack.i.b16 %v722_v36, %v721_v40  ;;  %v749_v52 = vcombine.low %v719_v38, %v735_v42  ;;  %v766_v53 = vcombine.low %v715_v37, %v731_v41 }
  0xd5   : > { %v739_v51 = vpack.i.b16 %v738_v44, %v737_v45  ;;  %v621_v56 = vshrl.u32 %v583_v35, 16  ;;  %v748_v58 = vrot.slane %v741_v46, %v2519_v21  ;;  %v2335_v30 = vmov -inf  }
  0xd6   : > { %v608_v47 = vcombine.high %v607_v39, %v2327_v0  ;;  %v611_v48 = vpack.i.b16 %v607_v39, %v582_v27  ;;  %v614_v49 = vshrl.u32 %v607_v39, 16  ;;  %v756_v59 = vrot.slane %v749_v52, %v2519_v21  ;;  %434 = vst.msk [vmem:[#allocation2] sm:$0xff] %vm433_vm4, %v2335_v30  ;;  %435 = vst.msk [vmem:[#allocation2 + $0x8] sm:$0xff] %vm433_vm4, %v2335_v30 }
  0xd7   : > { %v774_v60 = vcombine.low %v723_v50, %v739_v51  ;;  %v773_v63 = vrot.slane %v766_v53, %v2519_v21  ;;  %436 = vst.msk [vmem:[#allocation2 + $0x10] sm:$0xff] %vm433_vm4, %v2335_v30  ;;  %437 = vst.msk [vmem:[#allocation2 + $0x18] sm:$0xff] %vm433_vm4, %v2335_v30 }
  0xd8   : > { %v615_v54 = vpack.i.b16 %v614_v49, %v613_v43  ;;  %v619_v55 = vpack.i.b16 %v608_v47, %v583_v35  ;;  %v622_v57 = vshrl.u32 %v608_v47, 16  ;;  %626 = vst.msk [vmem:[#allocation5] sm:$0xf] %vm625_vm2, %v611_v48  ;;  %v757_v62 = vcombine.low %v748_v58, %v756_v59 }
  0xd9   : > { %v781_v1 = vrot.slane %v774_v60, %v2519_v21 }
  0xda   : > { %v623_v61 = vpack.i.b16 %v622_v57, %v621_v56  ;;  %627 = vst.msk [vmem:[#allocation5 + $0x4] sm:$0xf] %vm625_vm2, %v615_v54  ;;  %628 = vst.msk [vmem:[#allocation5 + $0x8] sm:$0xf] %vm625_vm2, %v619_v55  ;;  %v764_v2 = vrot.slane %v757_v62, %v2522_v26 }
  0xdb   : > { %v782_v3 = vcombine.low %v773_v63, %v781_v1 }
  0xdc   : > { %629 = vst.msk [vmem:[#allocation5 + $0xc] sm:$0xf] %vm625_vm2, %v623_v61  ;;  %v765_v5 = vcombine.high %v764_v2, %v2327_v0  ;;  %v794_v16 = vshrl.u32 %v764_v2, 16 }
  0xdd   : > { %v789_v4 = vrot.slane %v782_v3, %v2522_v26  ;;  %v2613_v51 = vld [vmem:[#allocation2] sm:$0xff]  ;;  %v993_v58 = vld [vmem:[#allocation2 + $0x8] sm:$0xff] }
  0xde   : > { %v800_v9 = vshrl.u32 %v765_v5, 16  ;;  %v2616_v54 = vld [vmem:[#allocation2 + $0x10] sm:$0xff]  ;;  %v995_v63 = vld [vmem:[#allocation2 + $0x18] sm:$0xff] }
  0xdf   : > { %v793_v7 = vpack.i.b16 %v789_v4, %v764_v2  ;;  %v790_v8 = vcombine.high %v789_v4, %v2327_v0  ;;  %v795_v14 = vshrl.u32 %v789_v4, 16  ;;  %v803_v20 = vld [vmem:[#allocation5] sm:$0xf] }
  0xe1   : > { %v812_v10 = vsel %vm442_vm0, %v793_v7, 0  ;;  %v799_v11 = vpack.i.b16 %v790_v8, %v765_v5  ;;  %v801_v13 = vshrl.u32 %v790_v8, 16  ;;  %v796_v19 = vpack.i.b16 %v795_v14, %v794_v16  ;;  %v805_v23 = vld [vmem:[#allocation5 + $0x8] sm:$0xf]  ;;  %v804_v25 = vld [vmem:[#allocation5 + $0x4] sm:$0xf] }
  0xe2   : > { %1986 = vmatpush3.bf16.xpose.msra.mxu1 %v812_v10  ;;  %v1125_v24 = vsel %vm1124_vm3, %v793_v7, 0 }
  0xe3   : > { %v904_v15 = vsel %vm442_vm0, %v799_v11, 0  ;;  %1991 = vmatprep.subr.bf16.mxu1 %v2331_v12  ;;  %v802_v17 = vpack.i.b16 %v801_v13, %v800_v9  ;;  %v2571_v18 = vsel %vm1124_vm3, %v799_v11, 0  ;;  %v858_v22 = vsel %vm442_vm0, %v796_v19, 0  ;;  %v806_v28 = vld [vmem:[#allocation5 + $0xc] sm:$0xf] }
  0xe4   : > { %1998 = vmatpush3.bf16.xpose.msra.mxu0 %v904_v15  ;;  %v1170_v29 = vsel %vm1124_vm3, %v796_v19, 0 }
  0xe5   : > { %2009 = vmatprep.subr.bf16.mxu0 %v2331_v12  ;;  %v2575_v0 = vsel %vm1124_vm3, %v802_v17, 0  ;;  %v950_v27 = vsel %vm442_vm0, %v802_v17, 0 }
  0xe9   : > { %1988 = vmatmul.mubr.msk.bf16.vlgmr.msra.gmra.mxu1 %vm442_vm0, %v803_v20 }
  0xea   : > { %1992 = vmatpush3.bf16.xpose.msra.mxu1 %v858_v22  ;;  %1993 = vmatprep.mubr.msk.bf16.mxu1 %vm2332_vm1, %v2331_v12 }
  0xeb   : > { %2000 = vmatmul.mubr.msk.bf16.vlgmr.msra.gmra.mxu0 %vm442_vm0, %v805_v23  ;;  %2003 = vmatprep.subr.bf16.mxu1 %v2331_v12 }
  0xec   : > { %2010 = vmatpush3.bf16.msra.mxu0 %v1125_v24  ;;  %2011 = vmatprep.mubr.msk.bf16.mxu0 %vm2332_vm1, %v2331_v12 }
  0xed   : > { %2021 = vmatprep.subr.bf16.mxu0 %v2331_v12 }
  0xf1   : > { %1994 = vmatmul.mubr.msk.bf16.vlgmr.msra.gmra.mxu1 %vm442_vm0, %v804_v25 }
  0xf2   : > { %2004 = vmatpush3.bf16.xpose.msra.mxu1 %v950_v27  ;;  %2005 = vmatprep.mubr.msk.bf16.mxu1 %vm2332_vm1, %v2331_v12 }
  0xf3   : > { %2015 = vmatprep.subr.bf16.mxu1 %v2331_v12 }
  0xf9   : > { %2006 = vmatmul.mubr.msk.bf16.vlgmr.msra.gmra.mxu1 %vm442_vm0, %v806_v28 }
  0xfa   : > { %2016 = vmatpush3.bf16.msra.mxu1 %v1170_v29  ;;  %2017 = vmatprep.mubr.msk.bf16.mxu1 %vm2332_vm1, %v2331_v12 }
  0xfb   : > { %2027 = vmatprep.subr.bf16.mxu1 %v2331_v12 }
 0x1a9   : > { %v848_v31 = vpop.f32.mrf.mxu1 }
 0x1aa   : > { %v996_v32 = vsel %vm442_vm0, %v848_v31, -inf }
 0x1ab   : > { %997 = vmax.xlane.f32.xlu0 %v996_v32  ;;  %v1989_v33 = vpop.f32.mrf.mxu1  ;;  %v940_v34 = vpop.f32.mrf.mxu0 }
 0x1ac   : > { %v1002_v37 = vsel %vm442_vm0, %v940_v34, -inf }
 0x1ad   : > { %v851_v35 = vpop.f32.mrf.mxu1  ;;  %v2001_v36 = vpop.f32.mrf.mxu0 }
 0x1af   : > { %v1990_v38 = vpop.f32.mrf.mxu1  ;;  %1003 = vmax.xlane.f32.xlu0 %v1002_v37  ;;  %v943_v39 = vpop.f32.mrf.mxu0 }
 0x1b0   : > { %v1068_v39 = vld [vmem:[#allocation3] sm:$0xff] }
 0x1b1   : > { %v894_v40 = vpop.f32.mrf.mxu1  ;;  %v2002_v41 = vpop.f32.mrf.mxu0 }
 0x1b2   : > { %v999_v42 = vsel %vm442_vm0, %v894_v40, -inf }
 0x1b3   : > { %1000 = vmax.xlane.f32.xlu1 %v999_v42  ;;  %v1995_v43 = vpop.f32.mrf.mxu1  ;;  %v1070_v42 = vld [vmem:[#allocation3 + $0x10] sm:$0xff] }
 0x1b5   : > { %v897_v44 = vpop.f32.mrf.mxu1 }
 0x1b7   : > { %v1996_v45 = vpop.f32.mrf.mxu1 }
 0x1b9   : > { %v986_v46 = vpop.f32.mrf.mxu1 }
 0x1ba   : > { %v1005_v47 = vsel %vm442_vm0, %v986_v46, -inf }
 0x1bb   : > { %v2007_v48 = vpop.f32.mrf.mxu1  ;;  %1006 = vmax.xlane.f32.xlu0 %v1005_v47 }
 0x1bd   : > { %v989_v49 = vpop.f32.mrf.mxu1 }
 0x1bf   : > { %v2008_v50 = vpop.f32.mrf.mxu1 }
 0x234   : > { %v998_v52 = vpop.xlane.xlu0 %997 }
 0x235   : > { %v1008_v53 = vmax.f32 %v2613_v51, %v998_v52  ;;  %v1071_v52 = vld [vmem:[#allocation3 + $0x18] sm:$0xff] }
 0x237   : > { %v1012_v55 = vsub.f32 %v2613_v51, %v1008_v53  ;;  %1085 = vst.msk [vmem:[#allocation2] sm:$0xff] %vm433_vm4, %v1008_v53  ;;  %1026 = vperm.xlu1 %2149, %v1008_v53  }
 0x238   : > { %v1004_v56 = vpop.xlane.xlu0 %1003 }
 0x239   : > { %v2621_v57 = vmax.f32 %v2616_v54, %v1004_v56 }
 0x23b   : > { %v1014_v59 = vsub.f32 %v2616_v54, %v2621_v57  ;;  %1087 = vst.msk [vmem:[#allocation2 + $0x10] sm:$0xff] %vm433_vm4, %v2621_v57  ;;  %1036 = vperm.xlu1 %2149, %v2621_v57  }
 0x23c   : > { %v1001_v60 = vpop.xlane.xlu1 %1000 }
 0x23d   : > { %v1009_v61 = vmax.f32 %v993_v58, %v1001_v60 }
 0x23f   : > { %v1013_v62 = vsub.f32 %v993_v58, %v1009_v61  ;;  %1086 = vst.msk [vmem:[#allocation2 + $0x8] sm:$0xff] %vm433_vm4, %v1009_v61  ;;  %1031 = vperm.xlu0 %2150, %v1009_v61  }
 0x244   : > { %v1007_v1 = vpop.xlane.xlu0 %1006 }
 0x245   : > { %v1011_v2 = vmax.f32 %v995_v63, %v1007_v1 }
 0x247   : > { %v1015_v3 = vsub.f32 %v995_v63, %v1011_v2  ;;  %1088 = vst.msk [vmem:[#allocation2 + $0x18] sm:$0xff] %vm433_vm4, %v1011_v2  ;;  %1041 = vperm.xlu1 %2149, %v1011_v2   ;;  %v1089_v63 = vld [vmem:[#allocation4] sm:$0xff] }
 0x2b2   : > { %v1027_v4 = vpop.permute.xlu1 %1026 }
 0x2b3   : > { %v1044_v5 = vsub.f32 %v848_v31, %v1027_v4  ;;  %v1016_v31 = vmul.f32 1.442695, %v1012_v55 }
 0x2b5   : > { %v1048_v7 = vmul.f32 1.442695, %v1044_v5 }
 0x2b6   : > { %v1037_v8 = vpop.permute.xlu1 %1036 }
 0x2b7   : > { %2159 = vpow2.f32 %v1048_v7  ;;  %v1046_v9 = vsub.f32 %v940_v34, %v1037_v8  ;;  %v1022_v34 = vmul.f32 1.442695, %v1015_v3  ;;  %v1090_v8 = vld [vmem:[#allocation4 + $0x8] sm:$0xff] }
 0x2b9   : > { %v1052_v10 = vmul.f32 1.442695, %v1046_v9  ;;  %v1091_v9 = vld [vmem:[#allocation4 + $0x10] sm:$0xff] }
 0x2ba   : > { %v1032_v11 = vpop.permute.xlu0 %1031 }
 0x2bb   : > { %2161 = vpow2.f32 %v1052_v10  ;;  %v1045_v13 = vsub.f32 %v894_v40, %v1032_v11 }
 0x2bd   : > { %v1050_v14 = vmul.f32 1.442695, %v1045_v13 }
 0x2bf   : > { %2163 = vpow2.f32 %v1050_v14 }
 0x2c2   : > { %v1042_v15 = vpop.permute.xlu1 %1041 }
 0x2c3   : > { %v1047_v16 = vsub.f32 %v986_v46, %v1042_v15  ;;  %v1069_v46 = vld [vmem:[#allocation3 + $0x8] sm:$0xff] }
 0x2c4   : > { %v2160_v17 = vpop.eup %2159 }
 0x2c5   : > { %v1054_v19 = vmul.f32 1.442695, %v1047_v16  ;;  %v1056_v20 = vsel %vm442_vm0, %v2160_v17, 0.0  ;;  %v1117_v22 = vpack.c.bf16 %v2160_v17, %v2160_v17 }
 0x2c6   : > { %1057 = vadd.xlane.f32.xlu1 %v1056_v20 }
 0x2c7   : > { %2165 = vpow2.f32 %v1054_v19  ;;  %2012 = vmatmul.mubr.msk.bf16.vlgmr.msra.gmra.mxu0 %vm442_vm0, %v1117_v22 }
 0x2c8   : > { %v2162_v23 = vpop.eup %2161  ;;  %2022 = vmatpush3.bf16.msra.mxu0 %v2571_v18  ;;  %2023 = vmatprep.mubr.msk.bf16.mxu0 %vm2332_vm1, %v2331_v12  ;;  %v1018_v18 = vmul.f32 1.442695, %v1013_v62 }
 0x2c9   : > { %v1062_v24 = vsel %vm442_vm0, %v2162_v23, 0.0  ;;  %2033 = vmatprep.subr.bf16.mxu0 %v2331_v12  ;;  %v1119_v29 = vpack.c.bf16 %v2162_v23, %v2162_v23 }
 0x2ca   : > { %1063 = vadd.xlane.f32.xlu1 %v1062_v24  ;;  %2167 = vpow2.f32 %v1018_v18 }
 0x2cb   : > { %2169 = vpow2.f32 %v1016_v31 }
 0x2cc   : > { %v2164_v25 = vpop.eup %2163 }
 0x2cd   : > { %v1059_v27 = vsel %vm442_vm0, %v2164_v25, 0.0  ;;  %v1118_v28 = vpack.c.bf16 %v2164_v25, %v2164_v25  ;;  %v1092_v25 = vld [vmem:[#allocation4 + $0x18] sm:$0xff] }
 0x2ce   : > { %1060 = vadd.xlane.f32.xlu0 %v1059_v27 }
 0x2cf   : > { %2018 = vmatmul.mubr.msk.bf16.vlgmr.msra.gmra.mxu1 %vm442_vm0, %v1118_v28  ;;  %2024 = vmatmul.mubr.msk.bf16.vlgmr.msra.gmra.mxu0 %vm442_vm0, %v1119_v29 }
 0x2d0   : > { %2028 = vmatpush3.bf16.msra.mxu1 %v2575_v0  ;;  %2029 = vmatprep.mubr.msk.bf16.mxu1 %vm2332_vm1, %v2331_v12  ;;  %v1020_v0 = vmul.f32 1.442695, %v1014_v59 }
 0x2d1   : > { %2037 = vmatprep.mubr.msk.bf16.mxu0 %vm2332_vm1, %v2331_v12  ;;  %2041 = vmatprep.subr.bf16.mxu1 %v2331_v12 }
 0x2d2   : > { %2171 = vpow2.f32 %v1020_v0 }
 0x2d3   : > { %2173 = vpow2.f32 %v1022_v34 }
 0x2d4   : > { %v2166_v30 = vpop.eup %2165 }
 0x2d5   : > { %v1065_v32 = vsel %vm442_vm0, %v2166_v30, 0.0  ;;  %v1120_v33 = vpack.c.bf16 %v2166_v30, %v2166_v30 }
 0x2d6   : > { %1066 = vadd.xlane.f32.xlu1 %v1065_v32 }
 0x2d7   : > { %2030 = vmatmul.mubr.msk.bf16.vlgmr.msra.gmra.mxu1 %vm442_vm0, %v1120_v33  ;;  %v2168_v35 = vpop.eup %2167 }
 0x2d8   : > { %2045 = vmatprep.mubr.msk.bf16.mxu1 %vm2332_vm1, %v2331_v12  ;;  %v2170_v36 = vpop.eup %2169  ;;  %v1073_v48 = vmul.f32 %v2168_v35, %v1069_v46 }
 0x2d9   : > { %v1072_v40 = vmul.f32 %v2170_v36, %v1068_v39 }
 0x2df   : > { %v2172_v37 = vpop.eup %2171 }
 0x2e0   : > { %v2174_v38 = vpop.eup %2173  ;;  %v1074_v44 = vmul.f32 %v2172_v37, %v1070_v42 }
 0x2e1   : > { %v1075_v54 = vmul.f32 %v2174_v38, %v1071_v52 }
 0x2e4   : > { %1100 = vperm.xlu0 %2150, %v2168_v35  }
 0x2e7   : > { %1095 = vperm.xlu1 %2149, %v2170_v36  }
 0x2eb   : > { %1105 = vperm.xlu1 %2149, %v2172_v37  }
 0x2ef   : > { %1110 = vperm.xlu1 %2149, %v2174_v38  }
 0x34f   : > { %v1058_v41 = vpop.xlane.xlu1 %1057 }
 0x350   : > { %v1076_v43 = vadd.f32 %v1072_v40, %v1058_v41 }
 0x352   : > { %1081 = vst.msk [vmem:[#allocation3] sm:$0xff] %vm433_vm4, %v1076_v43 }
 0x353   : > { %v1064_v45 = vpop.xlane.xlu1 %1063 }
 0x354   : > { %v1078_v47 = vadd.f32 %v1074_v44, %v1064_v45 }
 0x356   : > { %1083 = vst.msk [vmem:[#allocation3 + $0x10] sm:$0xff] %vm433_vm4, %v1078_v47 }
 0x357   : > { %v1061_v49 = vpop.xlane.xlu0 %1060 }
 0x358   : > { %v1077_v50 = vadd.f32 %v1073_v48, %v1061_v49 }
 0x359   : > { %v1319_v51 = vld [vmem:[#allocation3] sm:$0xff] }
 0x35a   : > { %1082 = vst.msk [vmem:[#allocation3 + $0x8] sm:$0xff] %vm433_vm4, %v1077_v50  ;;  %2175 = vrcp.f32 %v1319_v51 }
 0x35d   : > { %v1321_v53 = vld [vmem:[#allocation3 + $0x10] sm:$0xff] }
 0x35e   : > { %2177 = vrcp.f32 %v1321_v53 }
 0x35f   : > { %v1067_v55 = vpop.xlane.xlu1 %1066  ;;  %v1101_v7 = vpop.permute.xlu0 %1100 }
 0x360   : > { %v1079_v56 = vadd.f32 %v1075_v54, %v1067_v55  ;;  %v1114_v14 = vmul.f32 %v1101_v7, %v1090_v8 }
 0x361   : > { %v1320_v57 = vld [vmem:[#allocation3 + $0x8] sm:$0xff] }
 0x362   : > { %1084 = vst.msk [vmem:[#allocation3 + $0x18] sm:$0xff] %vm433_vm4, %v1079_v56  ;;  %2179 = vrcp.f32 %v1320_v57 }
 0x363   : > { %v1096_v1 = vpop.permute.xlu1 %1095 }
 0x364   : > { %v1113_v2 = vmul.f32 %v1096_v1, %v1089_v63 }
 0x367   : > { %v2176_v58 = vpop.eup %2175  ;;  %v1106_v10 = vpop.permute.xlu1 %1105 }
 0x368   : > { %1333 = vperm.xlu1 %2149, %v2176_v58   ;;  %v1115_v15 = vmul.f32 %v1106_v10, %v1091_v9 }
 0x369   : > { %v1322_v59 = vld [vmem:[#allocation3 + $0x18] sm:$0xff] }
 0x36a   : > { %2181 = vrcp.f32 %v1322_v59  ;;  %v2151_v59 = vld [vmem:[%s2779_s4 + $0x8] sm:$0xff]  }
 0x36b   : > { %v2178_v60 = vpop.eup %2177  ;;  %v1111_v24 = vpop.permute.xlu1 %1110  ;;  %2034 = vmatpush3.bf16.msra.mxu0 %v2151_v59 }
 0x36c   : > { %1343 = vperm.xlu0 %2150, %v2178_v60   ;;  %v1116_v30 = vmul.f32 %v1111_v24, %v1092_v25  ;;  %2035 = vmatprep.subr.bf16.mxu0 %v2331_v12 }
 0x36f   : > { %v2180_v61 = vpop.eup %2179 }
 0x370   : > { %1338 = vperm.xlu1 %2149, %v2180_v61  }
 0x377   : > { %v2182_v62 = vpop.eup %2181 }
 0x378   : > { %1348 = vperm.xlu1 %2149, %v2182_v62  }
 0x387   : > { %v1161_v3 = vpop.f32.mrf.mxu0 }
 0x388   : > { %v1302_v4 = vadd.f32 %v1161_v3, %v1113_v2 }
 0x389   : > { %v2013_v5 = vpop.f32.mrf.mxu0 }
 0x38a   : > { %1306 = vst.msk [vmem:[#allocation4] sm:$0xff] %vm442_vm0, %v1302_v4  ;;  %v2152_v5 = vld [vmem:[%s2779_s4] sm:$0xff]  }
 0x38b   : > { %v1164_v11 = vpop.f32.mrf.mxu0  ;;  %2036 = vmatpush3.bf16.msra.mxu0 %v2152_v5 }
 0x38c   : > { %2049 = vmatprep.subr.bf16.mxu0 %v2331_v12 }
 0x38d   : > { %v2014_v13 = vpop.f32.mrf.mxu0 }
 0x38f   : > { %v1206_v16 = vpop.f32.mrf.mxu1  ;;  %v1251_v17 = vpop.f32.mrf.mxu0 }
 0x390   : > { %v1303_v19 = vadd.f32 %v1206_v16, %v1114_v14  ;;  %v1304_v20 = vadd.f32 %v1251_v17, %v1115_v15 }
 0x391   : > { %v2019_v22 = vpop.f32.mrf.mxu1  ;;  %v2025_v23 = vpop.f32.mrf.mxu0  ;;  %v1327_v40 = vld [vmem:[#allocation4] sm:$0xff] }
 0x392   : > { %1307 = vst.msk [vmem:[#allocation4 + $0x8] sm:$0xff] %vm442_vm0, %v1303_v19  ;;  %1308 = vst.msk [vmem:[#allocation4 + $0x10] sm:$0xff] %vm442_vm0, %v1304_v20 }
 0x393   : > { %v1209_v27 = vpop.f32.mrf.mxu1  ;;  %v1254_v28 = vpop.f32.mrf.mxu0 }
 0x395   : > { %v2020_v29 = vpop.f32.mrf.mxu1  ;;  %v2026_v18 = vpop.f32.mrf.mxu0 }
 0x397   : > { %v1296_v31 = vpop.f32.mrf.mxu1 }
 0x398   : > { %v1305_v32 = vadd.f32 %v1296_v31, %v1116_v30  ;;  %v1573_v31 = vld [vmem:[%s2499_s20] sm:$0xf]  ;;  %s1785_s20 = scalar_lea.sflag [#allocation8], %s411_s24 }
 0x399   : > { %v2031_v33 = vpop.f32.mrf.mxu1  ;;  %v1329_v37 = vld [vmem:[#allocation4 + $0x10] sm:$0xff]  ;;  %v1328_v42 = vld [vmem:[#allocation4 + $0x8] sm:$0xff] }
 0x39a   : > { %1309 = vst.msk [vmem:[#allocation4 + $0x18] sm:$0xff] %vm442_vm0, %v1305_v32  ;;  %v1574_v32 = vunpack.c.l.bf16 %v1573_v31  ;;  %v1936_v33 = vld [vmem:[%s2783_s8] ss:$0 sm:$0xff] }
 0x39b   : > { %v1299_v0 = vpop.f32.mrf.mxu1 }
 0x39c   : > { %v1576_v0 = vadd.f32 %v1574_v32, %v2502_v6  ;;  %v2154_v6 = vld [vmem:[%s2780_s5] sm:$0xff]  }
 0x39d   : > { %v2032_v34 = vpop.f32.mrf.mxu1  ;;  %v1953_v32 = vld [vmem:[%s2783_s8 + $0x5] ss:$0 sm:$0xff] }
 0x3a1   : > { %v1330_v43 = vld [vmem:[#allocation4 + $0x18] sm:$0xff] }
 0x3e3   : > { %v1334_v35 = vpop.permute.xlu1 %1333 }
 0x3e4   : > { %v1351_v41 = vmul.f32 %v1334_v35, %v1327_v40 }
 0x3e7   : > { %v1344_v36 = vpop.permute.xlu0 %1343 }
 0x3e8   : > { %v1353_v39 = vmul.f32 %v1344_v36, %v1329_v37 }
 0x3ea   : > { %v1355_v45 = vcombine.low %v1351_v41, %v1353_v39  ;;  %v1356_v46 = vcombine.high %v1351_v41, %v1353_v39 }
 0x3eb   : > { %v1339_v38 = vpop.permute.xlu1 %1338 }
 0x3ec   : > { %v1352_v47 = vmul.f32 %v1339_v38, %v1328_v42  ;;  %v1363_v51 = vrot.slane %v1355_v45, %v2519_v21  ;;  %v1370_v52 = vrot.slane %v1356_v46, %v2519_v21  ;;  %v2156_v45 = vld [vmem:[%s2782_s7 + $0x10] sm:$0xff]  }
 0x3f3   : > { %v1349_v44 = vpop.permute.xlu1 %1348 }
 0x3f4   : > { %v1354_v48 = vmul.f32 %v1349_v44, %v1330_v43  ;;  %v2153_v43 = vld [vmem:[%s2780_s5 + $0x8] sm:$0xff]   ;;  %v2155_v44 = vld [vmem:[%s2782_s7 + $0x18] sm:$0xff]  }
 0x3f5   : > { %2042 = vmatpush3.bf16.msra.mxu1 %v2153_v43 }
 0x3f6   : > { %v1371_v49 = vcombine.low %v1352_v47, %v1354_v48  ;;  %v1372_v50 = vcombine.high %v1352_v47, %v1354_v48  ;;  %2043 = vmatprep.subr.bf16.mxu1 %v2331_v12 }
 0x3f8   : > { %v1379_v53 = vrot.slane %v1371_v49, %v2519_v21  ;;  %v1386_v54 = vrot.slane %v1372_v50, %v2519_v21 }
 0x3f9   : > { %2044 = vmatpush3.bf16.msra.mxu1 %v2154_v6 }
 0x3fa   : > { %v1387_v55 = vcombine.low %v1363_v51, %v1379_v53  ;;  %v1388_v56 = vcombine.high %v1363_v51, %v1379_v53  ;;  %v1403_v57 = vcombine.low %v1370_v52, %v1386_v54  ;;  %v1404_v58 = vcombine.high %v1370_v52, %v1386_v54 }
 0x3fc   : > { %v1395_v60 = vrot.slane %v1387_v55, %v2522_v26  ;;  %v1402_v61 = vrot.slane %v1388_v56, %v2522_v26  ;;  %v1411_v62 = vrot.slane %v1403_v57, %v2522_v26  ;;  %v1418_v63 = vrot.slane %v1404_v58, %v2522_v26  ;;  %v1940_v56 = vld [vmem:[%s2783_s8 + $0x1] ss:$0 sm:$0xff]  ;;  %v1941_v58 = vld [vmem:[%s2783_s8 + $0x2] ss:$0 sm:$0xff] }
 0x3fe   : > { %v1423_v1 = vcombine.low %v1395_v60, %v1402_v61  ;;  %v1934_v2 = vcombine.high %v1395_v60, %v1402_v61  ;;  %v1439_v3 = vcombine.low %v1411_v62, %v1418_v63  ;;  %v1935_v4 = vcombine.high %v1411_v62, %v1418_v63  ;;  %v2157_v62 = vld [vmem:[%s2782_s7 + $0x8] sm:$0xff]   ;;  %v2158_v63 = vld [vmem:[%s2782_s7] sm:$0xff]  }
 0x400   : > { %v1430_v7 = vrot.slane %v1423_v1, %v2519_v21  ;;  %v1438_v8 = vrot.slane %v1934_v2, %v2519_v21  ;;  %v1446_v9 = vrot.slane %v1439_v3, %v2519_v21  ;;  %v1454_v10 = vrot.slane %v1935_v4, %v2519_v21  ;;  %v1942_v1 = vld [vmem:[%s2781_s6] ss:$0 sm:$0xff] }
 0x402   : > { %v1456_v11 = vcombine.high %v1430_v7, %v1438_v8  ;;  %v1472_v13 = vcombine.high %v1446_v9, %v1454_v10  ;;  %v1455_v14 = vcombine.low %v1430_v7, %v1438_v8  ;;  %v1471_v15 = vcombine.low %v1446_v9, %v1454_v10 }
 0x404   : > { %v1470_v16 = vrot.slane %v1456_v11, %v2522_v26  ;;  %v1486_v17 = vrot.slane %v1472_v13, %v2522_v26  ;;  %v1463_v19 = vrot.slane %v1455_v14, %v2522_v26  ;;  %v1479_v20 = vrot.slane %v1471_v15, %v2522_v26 }
 0x406   : > { %v1489_v22 = vcombine.low %v1470_v16, %v1486_v17  ;;  %v1488_v23 = vcombine.high %v1463_v19, %v1479_v20  ;;  %v1487_v24 = vcombine.low %v1463_v19, %v1479_v20  ;;  %v1490_v21 = vcombine.high %v1470_v16, %v1486_v17 }
 0x408   : > { %1496 = vrot.lane.b32.xlu1 %v1489_v22, %s2336_s15  ;;  %1492 = vrot.lane.b32.xlu0 %v1488_v23, %s2337_s16  ;;  %s1799_s15 = sshll.u32 %s413_s29, 4  ;;  %s1800_s15 = int_to_ptr.vmem [resolvable:$true] %s1799_s15 }
 0x409   : > { %s2239_s27 = scalar_lea.vmem %s1800_s15, 64  ;;  %p2246_p0 = scmp.lt.s32.totalorder %s1800_s15, %s2244_s28 }
 0x40a   : > { %p2240_p8 = scmp.ne.s32.totalorder %s1800_s15, %s2239_s27  ;;  %p2247_p6 = scmp.lt.s32.totalorder %s2245_s12, %s2239_s27 }
 0x40c   : > { %1500 = vrot.lane.b32.xlu0 %v1490_v21, %s2338_s18  ;;  %p2241_p11 = pnand %p2240_p8, %p2798_p10  ;;  %p2248_p7 = por %p2247_p6, %p2246_p0 }
 0x40e   : > { %p2242_p13 = pneg %p2241_p11 }
 0x410   : > { %p2249_p9 = pnand %p2248_p7, %p2242_p13 }
 0x47a   : > { %v1493_v25 = vpop.permute.xlu0 %1492  ;;  %v1497_v27 = vpop.permute.xlu1 %1496 }
 0x47b   : > { %v1503_v28 = vsel %vm442_vm0, %v1487_v24, %v1493_v25 }
 0x47c   : > { %v1505_v18 = vsel %vm1504_vm5, %v1503_v28, %v1497_v27 }
 0x47e   : > { %v1501_v29 = vpop.permute.xlu0 %1500 }
 0x47f   : > { %v1507_v26 = vsel %vm1506_vm6, %v1505_v18, %v1501_v29 }
 0x480   : > { %v1508_v30 = vpack.c.bf16 %v1507_v26, %v1507_v26 }
 0x482   : > { %2038 = vmatmul.mubr.msk.bf16.vlgmr.msra.gmra.mxu0 %vm1529_vm7, %v1508_v30  ;;  %v1952_v30 = vld [vmem:[%s2783_s8 + $0x4] ss:$0 sm:$0xff] }
 0x483   : > { %2057 = vmatprep.mubr.msk.bf16.mxu0 %vm2332_vm1, %v2331_v12  ;;  %2050 = vmatpush3.bf16.msra.mxu0 %v2155_v44 }
 0x484   : > { %2051 = vmatprep.subr.bf16.mxu0 %v2331_v12 }
 0x487   : > { %2052 = vmatpush3.bf16.msra.mxu0 %v2156_v45 }
 0x488   : > { %2053 = vmatprep.subr.bf16.mxu0 %v2331_v12 }
 0x48b   : > { %2054 = vmatpush3.bf16.msra.mxu0 %v2157_v62 }
 0x48c   : > { %2055 = vmatprep.subr.bf16.mxu0 %v2331_v12  ;;  %v1946_v12 = vld [vmem:[%s2783_s8 + $0x3] ss:$0 sm:$0xff] }
 0x48f   : > { %2056 = vmatpush3.bf16.msra.mxu0 %v2158_v63 }
 0x542   : > { %v1567_v34 = vpop.f32.mrf.mxu0 }
 0x543   : > { %v1568_v35 = vadd.f32 %v1936_v33, %v1567_v34 }
 0x544   : > { %v2039_v36 = vpop.f32.mrf.mxu0 }
 0x545   : > { %v1577_v37 = vadd.f32 %v1576_v0, %v1568_v35 }
 0x546   : > { %v1570_v38 = vpop.f32.mrf.mxu0 }
 0x547   : > { %v1578_v39 = vsel %vm1529_vm7, %v1577_v37, 0.0  ;;  %v1583_v40 = vmul.f32 %v1577_v37, %v1577_v37 }
 0x548   : > { %1579 = vadd.xlane.f32.xlu1 %v1578_v39  ;;  %v2040_v41 = vpop.f32.mrf.mxu0 }
 0x549   : > { %v1584_v42 = vsel %vm1529_vm7, %v1583_v40, 0.0 }
 0x54a   : > { %1585 = vadd.xlane.f32.xlu0 %v1584_v42 }
 0x5d1   : > { %v1580_v46 = vpop.xlane.xlu1 %1579 }
 0x5d2   : > { %v1582_v47 = vmul.f32 0.03125, %v1580_v46 }
 0x5d3   : > { %v1586_v48 = vpop.xlane.xlu0 %1585 }
 0x5d4   : > { %v1588_v49 = vmul.f32 %v1582_v47, %v1582_v47  ;;  %v1587_v50 = vmul.f32 0.03125, %v1586_v48  ;;  %v1591_v54 = vsub.f32 %v1577_v37, %v1582_v47 }
 0x5d6   : > { %v1589_v51 = vsub.f32 %v1587_v50, %v1588_v49 }
 0x5d8   : > { %v1590_v52 = vmax.f32 %v1589_v51, 0.0 }
 0x5da   : > { %v1592_v53 = vadd.f32 1e-05, %v1590_v52 }
 0x5dc   : > { %2183 = vrsqrt.f32 %v1592_v53 }
 0x5e9   : > { %v2184_v55 = vpop.eup %2183 }
 0x5ea   : > { %v1594_v57 = vmul.f32 %v2184_v55, %v1591_v54 }
 0x5ec   : > { %v1599_v59 = vmul.f32 %v1940_v56, %v1594_v57 }
 0x5ee   : > { %v1604_v60 = vadd.f32 %v1941_v58, %v1599_v59 }
 0x5f0   : > { %v1605_v61 = vpack.c.bf16 %v1604_v60, %v1604_v60 }
 0x5f2   : > { %2046 = vmatmul.mubr.msk.bf16.vlgmr.msra.gmra.mxu1 %vm1529_vm7, %v1605_v61 }
 0x6b2   : > { %v1666_v2 = vpop.f32.mrf.mxu1 }
 0x6b3   : > { %v1667_v3 = vadd.f32 %v1942_v1, %v1666_v2 }
 0x6b4   : > { %v2047_v4 = vpop.f32.mrf.mxu1 }
 0x6b5   : > { %v1672_v5 = vmax.f32 %v1667_v3, 0.0 }
 0x6b6   : > { %v1669_v7 = vpop.f32.mrf.mxu1 }
 0x6b7   : > { %v1673_v8 = vpack.c.bf16 %v1672_v5, %v1672_v5 }
 0x6b8   : > { %v2048_v9 = vpop.f32.mrf.mxu1 }
 0x6b9   : > { %2058 = vmatmul.mubr.msk.bf16.vlgmr.msra.gmra.mxu0 %vm1710_vm8, %v1673_v8 }
 0x779   : > { %v1748_v10 = vpop.f32.mrf.mxu0 }
 0x77a   : > { %v1749_v11 = vadd.f32 %v1946_v12, %v1748_v10 }
 0x77b   : > { %v2059_v13 = vpop.f32.mrf.mxu0 }
 0x77c   : > { %v1754_v14 = vadd.f32 %v1749_v11, %v1604_v60 }
 0x77d   : > { %v1751_v15 = vpop.f32.mrf.mxu0 }
 0x77e   : > { %v1755_v16 = vsel %vm1529_vm7, %v1754_v14, 0.0  ;;  %v1759_v17 = vmul.f32 %v1754_v14, %v1754_v14 }
 0x77f   : > { %1756 = vadd.xlane.f32.xlu0 %v1755_v16  ;;  %v2060_v19 = vpop.f32.mrf.mxu0 }
 0x780   : > { %v1760_v20 = vsel %vm1529_vm7, %v1759_v17, 0.0 }
 0x781   : > { %1761 = vadd.xlane.f32.xlu1 %v1760_v20 }
 0x808   : > { %v1757_v22 = vpop.xlane.xlu0 %1756 }
 0x809   : > { %v1758_v23 = vmul.f32 0.03125, %v1757_v22 }
 0x80a   : > { %v1762_v24 = vpop.xlane.xlu1 %1761 }
 0x80b   : > { %v1764_v21 = vmul.f32 %v1758_v23, %v1758_v23  ;;  %v1763_v25 = vmul.f32 0.03125, %v1762_v24  ;;  %v1767_v18 = vsub.f32 %v1754_v14, %v1758_v23 }
 0x80d   : > { %v1765_v27 = vsub.f32 %v1763_v25, %v1764_v21 }
 0x80f   : > { %v1766_v28 = vmax.f32 %v1765_v27, 0.0 }
 0x811   : > { %v1768_v29 = vadd.f32 1e-05, %v1766_v28 }
 0x813   : > { %2185 = vrsqrt.f32 %v1768_v29 }
 0x820   : > { %v2186_v26 = vpop.eup %2185 }
 0x821   : > { %v1770_v31 = vmul.f32 %v2186_v26, %v1767_v18 }
 0x823   : > { %v1775_v33 = vmul.f32 %v1952_v30, %v1770_v31 }
 0x825   : > { %v1780_v0 = vadd.f32 %v1953_v32, %v1775_v33 }
 0x827   : > { %v1781_v34 = vpack.c.bf16 %v1780_v0, %v1780_v0 }
 0x829   : > { %1783 = vst.msk [vmem:[%s413_s29] sm:$0xf] %vm1782_vm9, %v1781_v34 }
 0x82a   : > { %2252 = shalt.err (!%p2249_p9)
}
 0x82b   : > { %s2253_s25 = scalar_lea.hbm %s1797_s0, 64  ;;  %s2257_s29 = scalar_lea.hbm %s2784_s9, 128 }
 0x82c   : > { %p2254_p12 = scmp.ne.s32.totalorder %s1797_s0, %s2253_s25  ;;  %p2258_p3 = scmp.lt.s32.totalorder %s1797_s0, %s2784_s9 }
 0x82d   : > { %p2259_p5 = scmp.lt.s32.totalorder %s2257_s29, %s2253_s25 }
 0x82e   : > { %p2255_p1 = pnand %p2254_p12, %p2798_p10 }
 0x82f   : > { %p2260_p4 = por %p2259_p5, %p2258_p3 }
 0x830   : > { %p2256_p2 = pneg %p2255_p1 }
 0x832   : > { %p2261_p8 = pnand %p2260_p4, %p2256_p2 }
 0x834   : > { %2264 = shalt.err (!%p2261_p8)
}
 0x835   : > { %2069 = dma.vmem_to_hbm [thread:$0]  (%p2798_p10), %s1800_s15, 64, %s1797_s0, %s1785_s20  }
 0x836 PF: > { %p2086_p11 = scmp.ge.s32.totalorder %s2323_s14, 2  ;;  %s1811_s27 = sand.u32 1, %s2303_s30  }
 0x837   : > { %p2799_p13 = scmp.ne.s32.totalorder %s2791_s21, 0  ;;  %s1812_s26 = scalar_lea.sflag [#allocation8], %s1811_s27 }
 0x839   : > { %p2079_p0 = pnand %p2086_p11, %p2799_p13 }
 0x83b   : > { %p2080_p6 = pneg %p2079_p0 }
 0x83d   : > { %2298 = dma.done.wait (%p2080_p6), %s1812_s26, 64  }
 0x83e   : > { %2300 = vsyncadd (%p2080_p6), %s1812_s26, 4294967232  ;;  %s24_s14 = sadd.s32 1, %s2323_s14   ;;  %s2800_s30 = smov %s2307_s10 }
 0x83f   : > { %p21_p7 = scmp.ge.s32.totalorder %s24_s14, 4   ;;  %s2801_s10 = smov %s2311_s11 }
 0x840   : > { %s2802_s11 = smov %s2443_s22  ;;  %s2803_s12 = smov %s2319_s13 }
 0x841   : > { %s2804_s13 = smov %s2806_s17  ;;  %23 = sbr.rel (!%p21_p7) target bundleno = 8 (0x8), region = 113 }
 0x846   :  { %1817 = vsyncpa [#allocation7], 1 }
 0x847   :  { %1819 = vsyncpa [#allocation7 + $0x1], 1 }
 0x848   :  { %1820 = vsyncpa [#allocation10], 1 }
 0x849   :  { %1821 = vsyncpa [#allocation8], 1 }
 0x84a   :  { %1823 = vsyncpa [#allocation8 + $0x1], 1 }

// kernel: tpu_custom_call.1
= control target key start
LH: loop header
LB: loop body
LE: loop exit
PB: predicated region body
PF: predicated region fallthrough
CT: control target
= control target key end

     0   :  { %s2775_s0 = inlined_call_operand.vmem [shape: bf16[2,8,32], index: 0, kind: input, shape index: {}]   ;;  %s2776_s1 = inlined_call_operand.vmem [shape: bf16[2,8,32], index: 1, kind: input, shape index: {}]   ;;  %s2777_s2 = inlined_call_operand.hbm [shape: f32[8,32], index: 2, kind: input, shape index: {}]   ;;  %s2778_s3 = inlined_call_operand.hbm [shape: f32[8,32], index: 3, kind: input, shape index: {}]   ;;  %s2779_s4 = inlined_call_operand.vmem [shape: bf16[32,32], index: 4, kind: input, shape index: {}]   ;;  %s2780_s5 = inlined_call_operand.vmem [shape: bf16[32,64], index: 5, kind: input, shape index: {}]   ;;  %s2781_s6 = inlined_call_operand.vmem [shape: f32[1,64], index: 6, kind: input, shape index: {}]   ;;  %s2782_s7 = inlined_call_operand.vmem [shape: bf16[64,32], index: 7, kind: input, shape index: {}]   ;;  %s2783_s8 = inlined_call_operand.vmem [shape: f32[8,32], index: 8, kind: input, shape index: {}]   ;;  %s2784_s9 = inlined_call_operand.hbm [shape: bf16[2,8,32], index: 9, kind: output, shape index: {}]  }
   0x1   :  { %2789 = sst [smem:[#allocation15_spill]] %s2775_s0 }
   0x2   :  { %14 = vsyncpa [#allocation7], 0 }
   0x3   :  { %15 = vsyncpa [#allocation10], 0 }
   0x4   :  { %16 = vsyncpa [#allocation8], 0 }
   0x5   :  { %18 = vsyncpa [#allocation8 + $0x1], 0  ;;  %s2390_s30 = smov 0   ;;  %s2392_s10 = smov 0  }
   0x6   :  { %s2394_s11 = smov 0   ;;  %s2396_s12 = smov 0  }
   0x7   :  { %s2398_s13 = smov 0   ;;  %s2400_s14 = smov 0  }
   0x8 LB: > { %s1914_s15 = sadd.s32 4294967295, %s2323_s14   ;;  %s1915_s16 = sadd.s32 4294967294, %s2323_s14   ;;  %s2323_s14 = sphi %s2400_s14, %s24_s14   ;;  %s2319_s13 = sphi %s2398_s13, %s2804_s13   ;;  %s2315_s12 = sphi %s2396_s12, %s2803_s12   ;;  %s2311_s11 = sphi %s2394_s11, %s2802_s11   ;;  %s2307_s10 = sphi %s2392_s10, %s2801_s10   ;;  %s2303_s30 = sphi %s2390_s30, %s2800_s30  }
   0x9   : > { %s43_s17 = sadd.s32 1, %s2319_s13  ;;  %s265_s18 = sadd.s32 1, %s2311_s11 }
   0xa   : > { %p45_p0 = scmp.ge.s32.totalorder %s43_s17, 2  ;;  %p275_p1 = scmp.ne.s32.totalorder %s2311_s11, %s2307_s10 }
   0xb   : > { %p276_p2 = scmp.eq.s32.totalorder %s1914_s15, 1  ;;  %p281_p3 = scmp.ne.s32.totalorder %s2307_s10, %s2303_s30 }
   0xc   : > { %s2806_s17 = smov (%p45_p0, %s43_s17), 0  ;;  %p282_p5 = scmp.eq.s32.totalorder %s1915_s16, 1 }
   0xd   : > { %p2430_p4 = por %p276_p2, %p275_p1  ;;  %s260_s20 = ssub.s32 %s2319_s13, %s2806_s17 }
   0xe   : > { %p1916_p6 = scmp.ge.s32.totalorder %s2323_s14, 1  ;;  %p263_p7 = scmp.eq.s32.totalorder %s260_s20, 0 }
   0xf   : > { %s2790_s19 = scalar_select %p2430_p4, 1, 0 }
  0x10   : > { %p2437_p8 = por %p282_p5, %p281_p3  ;;  %p289_p9 = scmp.lt.s32.totalorder %s2323_s14, 3 }
  0x11   : > { %s2443_s22 = scalar_select %p263_p7, %s2311_s11, %s265_s18  }
  0x12   : > { %s2791_s21 = scalar_select %p2437_p8, 1, 0 }
  0x13   : > { %p2445_p10 = pnand %p1916_p6, %p289_p9  ;;  %p2449_p11 = scmp.eq.s32.totalorder %s1914_s15, 0 }
  0x14   : > { %s2325_s25 = smov [#allocation6]   ;;  %s2326_s27 = smov [#allocation9]  }
  0x15   : > { %s2792_s23 = scalar_select %p2445_p10, 1, 0 }
  0x16   : > { %s2793_s24 = scalar_select %p2449_p11, 1, 0 }
  0x17   : > { %p2071_p12 = pneg %p2445_p10  ;;  %s304_s26 = sshll.u32 %s2325_s25, 4  ;;  %s305_s26 = int_to_ptr.vmem [resolvable:$true] %s304_s26 }
  0x18   : > { %s317_s28 = sshll.u32 %s2326_s27, 4  ;;  %s2198_s15 = scalar_lea.vmem %s305_s26, 128  ;;  %s318_s28 = int_to_ptr.vmem [resolvable:$true] %s317_s28 }
  0x19   : > { %p2457_p13 = pnand %p2449_p11, %p2071_p12  ;;  %p2199_p1 = scmp.ne.s32.totalorder %s305_s26, %s2198_s15 }
  0x1a   : > { %p2206_p5 = scmp.lt.s32.totalorder %s305_s26, %s305_s26  ;;  %p2207_p6 = scmp.lt.s32.totalorder %s2198_s15, %s2198_s15 }
  0x1b   : > { %p2189_p0 = pneg %p2457_p13 }
  0x1c   : > { %p2208_p7 = por %p2207_p6, %p2206_p5 }
  0x1d   : > { %p2201_p2 = pnand %p2199_p1, %p2189_p0 }
  0x1f   : > { %p2202_p3 = pneg %p2201_p2 }
  0x21   : > { %p2209_p9 = pnand %p2208_p7, %p2202_p3 }
  0x23   : > { %2212 = shalt.err (!%p2209_p9)
}
  0x24   : > { %2074 = dma.hbm_to_vmem [thread:$0]  (!%p2457_p13), %s2777_s2, 128, %s305_s26, [#allocation7]  }
  0x25   : > { %s2224_s20 = scalar_lea.vmem %s318_s28, 128  ;;  %p2232_p1 = scmp.lt.s32.totalorder %s318_s28, %s318_s28 }
  0x26   : > { %p2225_p12 = scmp.ne.s32.totalorder %s318_s28, %s2224_s20  ;;  %p2233_p2 = scmp.lt.s32.totalorder %s2224_s20, %s2224_s20 }
  0x28   : > { %p2227_p8 = pnand %p2225_p12, %p2189_p0  ;;  %p2234_p11 = por %p2233_p2, %p2232_p1 }
  0x2a   : > { %p2228_p4 = pneg %p2227_p8 }
  0x2c   : > { %p2235_p10 = pnand %p2234_p11, %p2228_p4 }
  0x2e   : > { %2238 = shalt.err (!%p2235_p10)
}
  0x2f   : > { %2077 = dma.hbm_to_vmem [thread:$0]  (!%p2457_p13), %s2778_s3, 128, %s318_s28, [#allocation10]  }
  0x30   : > { %p2795_p3 = scmp.ne.s32.totalorder %s2792_s23, 0 }
  0x31   : > { %p2796_p5 = scmp.ne.s32.totalorder (!%p2795_p3), %s2793_s24, 0 }
  0x32   : > { %365 = sbr.rel (%p2795_p3) target bundleno = 2102 (0x836), region = 56 }
  0x37   : > { %2290 = dma.done.wait (%p2796_p5), [#allocation7], 128  }
  0x38   : > { %2292 = vsyncadd (%p2796_p5), [#allocation7], 4294967168 }
  0x39   : > { %2294 = dma.done.wait (%p2796_p5), [#allocation10], 128  }
  0x3a   : > { %2296 = vsyncadd (%p2796_p5), [#allocation10], 4294967168  ;;  %p414_p4 = scmp.lt.s32.totalorder %s2315_s12, 1  ;;  %v2327_v0 = vmov 0   ;;  %s2797_s0 = sld [smem:[#allocation15_spill]]  ;;  %v632_v2 = vld [vmem:[#allocation9] sm:$0xff]  ;;  %v463_v15 = vlaneseq }
  0x3b   : > { %2149 = vset.pattern.permute.xlu1 %v2327_v0  ;;  %2150 = vset.pattern.permute.xlu0 %v2327_v0  ;;  %v2502_v6 = vld [vmem:[#allocation6] sm:$0xff]  ;;  %s2328_s24 = smov 120   ;;  %s2329_s25 = smov 104   ;;  %vm442_vm0 = vcmask 64512   ;;  %v2331_v12 = vmov 0.0   ;;  %vm2332_vm1 = vmmov 0  }
  0x3c   : > { %s415_s26 = scalar_select %p414_p4, %s2315_s12, 1  ;;  %1985 = vmatprep.subr.bf16.mxu1 %v2331_v12  ;;  %443 = vst.msk [vmem:[#allocation4] sm:$0xff] %vm442_vm0, %v2331_v12  ;;  %444 = vst.msk [vmem:[#allocation4 + $0x8] sm:$0xff] %vm442_vm0, %v2331_v12  ;;  %1997 = vmatprep.subr.bf16.mxu0 %v2331_v12  ;;  %v2333_v13 = vmov 1983009808   ;;  %v464_v17 = vshrl.u32 %v463_v15, 7 }
  0x3d   : > { %s2330_s27 = smov 112   ;;  %445 = vst.msk [vmem:[#allocation4 + $0x10] sm:$0xff] %vm442_vm0, %v2331_v12  ;;  %446 = vst.msk [vmem:[#allocation4 + $0x18] sm:$0xff] %vm442_vm0, %v2331_v12  ;;  %1987 = vmatprep.mubr.msk.bf16.mxu1 %vm2332_vm1, %v2331_v12  ;;  %1999 = vmatprep.mubr.msk.bf16.mxu0 %vm2332_vm1, %v2331_v12  ;;  %v461_v14 = vunpack.c.l.s4 %v2333_v13  ;;  %v2334_v18 = vmov 1934713408   ;;  %vm625_vm2 = vcmask 60416  }
  0x3e   : > { %s1924_s28 = sshll.u32 %s415_s26, 2  ;;  %v478_v19 = vunpack.c.l.s4 %v2334_v18  ;;  %vm1124_vm3 = vcmask 1043456   ;;  %vm433_vm4 = vcmask 7168   ;;  %s2337_s16 = smov 8   ;;  %vm1504_vm5 = vcmask 130048  }
  0x3f   : > { %s427_s15 = scalar_lea.vmem %s2776_s1, %s1924_s28  ;;  %v462_v16 = vunpack.c.0.s8 %v461_v14  ;;  %438 = vst.msk [vmem:[#allocation3] sm:$0xff] %vm433_vm4, %v2331_v12  ;;  %439 = vst.msk [vmem:[#allocation3 + $0x8] sm:$0xff] %vm433_vm4, %v2331_v12  ;;  %s2338_s18 = smov 24   ;;  %vm1506_vm6 = vcmask 195584   ;;  %vm1529_vm7 = vcmask 261120   ;;  %vm1710_vm8 = vcmask 523264  }
  0x40   : > { %s2499_s20 = scalar_lea.vmem %s2797_s0, %s1924_s28  ;;  %v630_v1 = vld [vmem:[%s427_s15] sm:$0xf]  ;;  %v479_v22 = vunpack.c.0.s8 %v478_v19  ;;  %440 = vst.msk [vmem:[#allocation3 + $0x10] sm:$0xff] %vm433_vm4, %v2331_v12  ;;  %441 = vst.msk [vmem:[#allocation3 + $0x18] sm:$0xff] %vm433_vm4, %v2331_v12  ;;  %s2336_s15 = smov 16   ;;  %vm1782_vm9 = vcmask 257024  }
  0x41   : > { %v447_v3 = vld [vmem:[%s2499_s20] sm:$0xf]  ;;  %v631_v4 = vunpack.c.l.bf16 %v630_v1  ;;  %v2519_v21 = vsub.s32 %v462_v16, %v464_v17  ;;  %s1955_s23 = sshll.u32 %s2315_s12, 6  ;;  %p2798_p10 = scmp.ne.s32.totalorder %s2790_s19, 0 }
  0x42   : > { %v448_v5 = vunpack.c.l.bf16 %v447_v3  ;;  %v2522_v26 = vsub.s32 %v479_v22, %v464_v17  ;;  %s1797_s0 = scalar_lea.hbm %s2784_s9, %s1955_s23  ;;  %s2339_s26 = smov [#allocation11]  }
  0x43   : > { %v633_v7 = vadd.f32 %v632_v2, %v631_v4  ;;  %s2243_s28 = sshll.u32 %s2339_s26, 4  ;;  %s2244_s28 = int_to_ptr.vmem [resolvable:$false] %s2243_s28 }
  0x44   : > { %v450_v8 = vadd.f32 %v2502_v6, %v448_v5  ;;  %s2245_s12 = scalar_lea.vmem %s2244_s28, 128 }
  0x45   : > { %v634_v9 = vpack.c.bf16 %v633_v7, %v633_v7 }
  0x46   : > { %v451_v10 = vmul.f32 0.17677669, %v450_v8 }
  0x47   : > { %636 = vrot.lane.b32.xlu1 %v634_v9, %s2328_s24  ;;  %v648_v45 = vrot.slane %v634_v9, %v2519_v21 }
  0x48   : > { %v452_v11 = vpack.c.bf16 %v451_v10, %v451_v10 }
  0x4a   : > { %454 = vrot.lane.b32.xlu0 %v452_v11, %s2328_s24  ;;  %v466_v28 = vrot.slane %v452_v11, %v2519_v21  ;;  %s411_s24 = sand.u32 1, %s2307_s10  }
  0x4b   : > { %458 = vrot.lane.b32.xlu1 %v452_v11, %s2329_s25 }
  0x4e   : > { %456 = vrot.lane.b32.xlu0 %v452_v11, %s2330_s27 }
  0x4f   : > { %640 = vrot.lane.b32.xlu1 %v634_v9, %s2329_s25  ;;  %s1923_s25 = sshll.u32 %s411_s24, 2 }
  0x50   : > { %s413_s29 = scalar_lea.vmem [#allocation11], %s1923_s25 }
  0x52   : > { %638 = vrot.lane.b32.xlu0 %v634_v9, %s2330_s27 }
  0xb9   : > { %v637_v20 = vpop.permute.xlu1 %636 }
  0xba   : > { %v682_v39 = vrot.slane %v637_v20, %v2519_v21 }
  0xbc   : > { %v455_v23 = vpop.permute.xlu0 %454 }
  0xbd   : > { %v459_v24 = vpop.permute.xlu1 %458  ;;  %v500_v25 = vrot.slane %v455_v23, %v2519_v21 }
  0xbe   : > { %v508_v27 = vrot.slane %v459_v24, %v2519_v21 }
  0xc0   : > { %v457_v29 = vpop.permute.xlu0 %456  ;;  %v509_v30 = vcombine.low %v500_v25, %v508_v27  ;;  %v510_v31 = vcombine.high %v500_v25, %v508_v27 }
  0xc1   : > { %v474_v32 = vrot.slane %v457_v29, %v2519_v21  ;;  %v641_v33 = vpop.permute.xlu1 %640 }
  0xc2   : > { %v517_v34 = vrot.slane %v509_v30, %v2522_v26  ;;  %v524_v35 = vrot.slane %v510_v31, %v2522_v26  ;;  %v690_v38 = vrot.slane %v641_v33, %v2519_v21 }
  0xc3   : > { %v475_v36 = vcombine.low %v466_v28, %v474_v32  ;;  %v476_v37 = vcombine.high %v466_v28, %v474_v32 }
  0xc4   : > { %v525_v40 = vcombine.high %v517_v34, %v2327_v0  ;;  %v526_v41 = vcombine.high %v524_v35, %v2327_v0  ;;  %v532_v42 = vshrl.u32 %v517_v34, 16  ;;  %v639_v46 = vpop.permute.xlu0 %638  ;;  %v548_v48 = vshrl.u32 %v524_v35, 16 }
  0xc5   : > { %v483_v43 = vrot.slane %v475_v36, %v2522_v26  ;;  %v490_v44 = vrot.slane %v476_v37, %v2522_v26  ;;  %v691_v49 = vcombine.low %v682_v39, %v690_v38  ;;  %v692_v50 = vcombine.high %v682_v39, %v690_v38 }
  0xc6   : > { %v540_v47 = vshrl.u32 %v525_v40, 16  ;;  %v556_v55 = vshrl.u32 %v526_v41, 16  ;;  %v656_v58 = vrot.slane %v639_v46, %v2519_v21 }
  0xc7   : > { %v491_v51 = vcombine.high %v483_v43, %v2327_v0  ;;  %v492_v52 = vcombine.high %v490_v44, %v2327_v0  ;;  %v529_v53 = vpack.i.b16 %v517_v34, %v483_v43  ;;  %v531_v54 = vshrl.u32 %v483_v43, 16 }
  0xc8   : > { %v545_v56 = vpack.i.b16 %v524_v35, %v490_v44  ;;  %v547_v57 = vshrl.u32 %v490_v44, 16  ;;  %v699_v3 = vrot.slane %v691_v49, %v2522_v26  ;;  %v706_v7 = vrot.slane %v692_v50, %v2522_v26 }
  0xc9   : > { %v533_v59 = vpack.i.b16 %v532_v42, %v531_v54  ;;  %v537_v60 = vpack.i.b16 %v525_v40, %v491_v51  ;;  %v539_v61 = vshrl.u32 %v491_v51, 16  ;;  %v553_v62 = vpack.i.b16 %v526_v41, %v492_v52 }
  0xca   : > { %v549_v63 = vpack.i.b16 %v548_v48, %v547_v57  ;;  %v555_v1 = vshrl.u32 %v492_v52, 16  ;;  %v559_v2 = vcombine.low %v529_v53, %v545_v56  ;;  %v657_v13 = vcombine.low %v648_v45, %v656_v58 }
  0xcb   : > { %v541_v4 = vpack.i.b16 %v540_v47, %v539_v61  ;;  %v567_v5 = vcombine.low %v537_v60, %v553_v62  ;;  %v707_v15 = vcombine.high %v699_v3, %v2327_v0  ;;  %v658_v16 = vcombine.high %v648_v45, %v656_v58 }
  0xcc   : > { %v557_v8 = vpack.i.b16 %v556_v55, %v555_v1  ;;  %v584_v9 = vcombine.low %v533_v59, %v549_v63  ;;  %v566_v10 = vrot.slane %v559_v2, %v2519_v21  ;;  %v708_v18 = vcombine.high %v706_v7, %v2327_v0 }
  0xcd   : > { %v574_v11 = vrot.slane %v567_v5, %v2519_v21  ;;  %v714_v19 = vshrl.u32 %v699_v3, 16  ;;  %v665_v20 = vrot.slane %v657_v13, %v2522_v26  ;;  %v730_v24 = vshrl.u32 %v706_v7, 16 }
  0xce   : > { %v592_v14 = vcombine.low %v541_v4, %v557_v8  ;;  %v591_v22 = vrot.slane %v584_v9, %v2519_v21  ;;  %v672_v25 = vrot.slane %v658_v16, %v2522_v26  ;;  %v722_v36 = vshrl.u32 %v707_v15, 16 }
  0xcf   : > { %v575_v17 = vcombine.low %v566_v10, %v574_v11  ;;  %v673_v28 = vcombine.high %v665_v20, %v2327_v0  ;;  %v711_v29 = vpack.i.b16 %v699_v3, %v665_v20  ;;  %v713_v30 = vshrl.u32 %v665_v20, 16 }
  0xd0   : > { %v599_v23 = vrot.slane %v592_v14, %v2519_v21  ;;  %v674_v32 = vcombine.high %v672_v25, %v2327_v0  ;;  %v727_v33 = vpack.i.b16 %v706_v7, %v672_v25  ;;  %v729_v34 = vshrl.u32 %v672_v25, 16 }
  0xd1   : > { %v582_v27 = vrot.slane %v575_v17, %v2522_v26  ;;  %v715_v37 = vpack.i.b16 %v714_v19, %v713_v30  ;;  %v719_v38 = vpack.i.b16 %v707_v15, %v673_v28  ;;  %v721_v40 = vshrl.u32 %v673_v28, 16 }
  0xd2   : > { %v600_v31 = vcombine.low %v591_v22, %v599_v23  ;;  %v731_v41 = vpack.i.b16 %v730_v24, %v729_v34  ;;  %v735_v42 = vpack.i.b16 %v708_v18, %v674_v32  ;;  %v738_v44 = vshrl.u32 %v708_v18, 16 }
  0xd3   : > { %v583_v35 = vcombine.high %v582_v27, %v2327_v0  ;;  %v613_v43 = vshrl.u32 %v582_v27, 16  ;;  %v737_v45 = vshrl.u32 %v674_v32, 16  ;;  %v741_v46 = vcombine.low %v711_v29, %v727_v33 }
  0xd4   : > { %v607_v39 = vrot.slane %v600_v31, %v2522_v26  ;;  %v723_v50 = vpack.i.b16 %v722_v36, %v721_v40  ;;  %v749_v52 = vcombine.low %v719_v38, %v735_v42  ;;  %v766_v53 = vcombine.low %v715_v37, %v731_v41 }
  0xd5   : > { %v739_v51 = vpack.i.b16 %v738_v44, %v737_v45  ;;  %v621_v56 = vshrl.u32 %v583_v35, 16  ;;  %v748_v58 = vrot.slane %v741_v46, %v2519_v21  ;;  %v2335_v30 = vmov -inf  }
  0xd6   : > { %v608_v47 = vcombine.high %v607_v39, %v2327_v0  ;;  %v611_v48 = vpack.i.b16 %v607_v39, %v582_v27  ;;  %v614_v49 = vshrl.u32 %v607_v39, 16  ;;  %v756_v59 = vrot.slane %v749_v52, %v2519_v21  ;;  %434 = vst.msk [vmem:[#allocation2] sm:$0xff] %vm433_vm4, %v2335_v30  ;;  %435 = vst.msk [vmem:[#allocation2 + $0x8] sm:$0xff] %vm433_vm4, %v2335_v30 }
  0xd7   : > { %v774_v60 = vcombine.low %v723_v50, %v739_v51  ;;  %v773_v63 = vrot.slane %v766_v53, %v2519_v21  ;;  %436 = vst.msk [vmem:[#allocation2 + $0x10] sm:$0xff] %vm433_vm4, %v2335_v30  ;;  %437 = vst.msk [vmem:[#allocation2 + $0x18] sm:$0xff] %vm433_vm4, %v2335_v30 }
  0xd8   : > { %v615_v54 = vpack.i.b16 %v614_v49, %v613_v43  ;;  %v619_v55 = vpack.i.b16 %v608_v47, %v583_v35  ;;  %v622_v57 = vshrl.u32 %v608_v47, 16  ;;  %626 = vst.msk [vmem:[#allocation5] sm:$0xf] %vm625_vm2, %v611_v48  ;;  %v757_v62 = vcombine.low %v748_v58, %v756_v59 }
  0xd9   : > { %v781_v1 = vrot.slane %v774_v60, %v2519_v21 }
  0xda   : > { %v623_v61 = vpack.i.b16 %v622_v57, %v621_v56  ;;  %627 = vst.msk [vmem:[#allocation5 + $0x4] sm:$0xf] %vm625_vm2, %v615_v54  ;;  %628 = vst.msk [vmem:[#allocation5 + $0x8] sm:$0xf] %vm625_vm2, %v619_v55  ;;  %v764_v2 = vrot.slane %v757_v62, %v2522_v26 }
  0xdb   : > { %v782_v3 = vcombine.low %v773_v63, %v781_v1 }
  0xdc   : > { %629 = vst.msk [vmem:[#allocation5 + $0xc] sm:$0xf] %vm625_vm2, %v623_v61  ;;  %v765_v5 = vcombine.high %v764_v2, %v2327_v0  ;;  %v794_v16 = vshrl.u32 %v764_v2, 16 }
  0xdd   : > { %v789_v4 = vrot.slane %v782_v3, %v2522_v26  ;;  %v2613_v51 = vld [vmem:[#allocation2] sm:$0xff]  ;;  %v993_v58 = vld [vmem:[#allocation2 + $0x8] sm:$0xff] }
  0xde   : > { %v800_v9 = vshrl.u32 %v765_v5, 16  ;;  %v2616_v54 = vld [vmem:[#allocation2 + $0x10] sm:$0xff]  ;;  %v995_v63 = vld [vmem:[#allocation2 + $0x18] sm:$0xff] }
  0xdf   : > { %v793_v7 = vpack.i.b16 %v789_v4, %v764_v2  ;;  %v790_v8 = vcombine.high %v789_v4, %v2327_v0  ;;  %v795_v14 = vshrl.u32 %v789_v4, 16  ;;  %v803_v20 = vld [vmem:[#allocation5] sm:$0xf] }
  0xe1   : > { %v812_v10 = vsel %vm442_vm0, %v793_v7, 0  ;;  %v799_v11 = vpack.i.b16 %v790_v8, %v765_v5  ;;  %v801_v13 = vshrl.u32 %v790_v8, 16  ;;  %v796_v19 = vpack.i.b16 %v795_v14, %v794_v16  ;;  %v805_v23 = vld [vmem:[#allocation5 + $0x8] sm:$0xf]  ;;  %v804_v25 = vld [vmem:[#allocation5 + $0x4] sm:$0xf] }
  0xe2   : > { %1986 = vmatpush3.bf16.xpose.msra.mxu1 %v812_v10  ;;  %v1125_v24 = vsel %vm1124_vm3, %v793_v7, 0 }
  0xe3   : > { %v904_v15 = vsel %vm442_vm0, %v799_v11, 0  ;;  %1991 = vmatprep.subr.bf16.mxu1 %v2331_v12  ;;  %v802_v17 = vpack.i.b16 %v801_v13, %v800_v9  ;;  %v2571_v18 = vsel %vm1124_vm3, %v799_v11, 0  ;;  %v858_v22 = vsel %vm442_vm0, %v796_v19, 0  ;;  %v806_v28 = vld [vmem:[#allocation5 + $0xc] sm:$0xf] }
  0xe4   : > { %1998 = vmatpush3.bf16.xpose.msra.mxu0 %v904_v15  ;;  %v1170_v29 = vsel %vm1124_vm3, %v796_v19, 0 }
  0xe5   : > { %2009 = vmatprep.subr.bf16.mxu0 %v2331_v12  ;;  %v2575_v0 = vsel %vm1124_vm3, %v802_v17, 0  ;;  %v950_v27 = vsel %vm442_vm0, %v802_v17, 0 }
  0xe9   : > { %1988 = vmatmul.mubr.msk.bf16.vlgmr.msra.gmra.mxu1 %vm442_vm0, %v803_v20 }
  0xea   : > { %1992 = vmatpush3.bf16.xpose.msra.mxu1 %v858_v22  ;;  %1993 = vmatprep.mubr.msk.bf16.mxu1 %vm2332_vm1, %v2331_v12 }
  0xeb   : > { %2000 = vmatmul.mubr.msk.bf16.vlgmr.msra.gmra.mxu0 %vm442_vm0, %v805_v23  ;;  %2003 = vmatprep.subr.bf16.mxu1 %v2331_v12 }
  0xec   : > { %2010 = vmatpush3.bf16.msra.mxu0 %v1125_v24  ;;  %2011 = vmatprep.mubr.msk.bf16.mxu0 %vm2332_vm1, %v2331_v12 }
  0xed   : > { %2021 = vmatprep.subr.bf16.mxu0 %v2331_v12 }
  0xf1   : > { %1994 = vmatmul.mubr.msk.bf16.vlgmr.msra.gmra.mxu1 %vm442_vm0, %v804_v25 }
  0xf2   : > { %2004 = vmatpush3.bf16.xpose.msra.mxu1 %v950_v27  ;;  %2005 = vmatprep.mubr.msk.bf16.mxu1 %vm2332_vm1, %v2331_v12 }
  0xf3   : > { %2015 = vmatprep.subr.bf16.mxu1 %v2331_v12 }
  0xf9   : > { %2006 = vmatmul.mubr.msk.bf16.vlgmr.msra.gmra.mxu1 %vm442_vm0, %v806_v28 }
  0xfa   : > { %2016 = vmatpush3.bf16.msra.mxu1 %v1170_v29  ;;  %2017 = vmatprep.mubr.msk.bf16.mxu1 %vm2332_vm1, %v2331_v12 }
  0xfb   : > { %2027 = vmatprep.subr.bf16.mxu1 %v2331_v12 }
 0x1a9   : > { %v848_v31 = vpop.f32.mrf.mxu1 }
 0x1aa   : > { %v996_v32 = vsel %vm442_vm0, %v848_v31, -inf }
 0x1ab   : > { %997 = vmax.xlane.f32.xlu0 %v996_v32  ;;  %v1989_v33 = vpop.f32.mrf.mxu1  ;;  %v940_v34 = vpop.f32.mrf.mxu0 }
 0x1ac   : > { %v1002_v37 = vsel %vm442_vm0, %v940_v34, -inf }
 0x1ad   : > { %v851_v35 = vpop.f32.mrf.mxu1  ;;  %v2001_v36 = vpop.f32.mrf.mxu0 }
 0x1af   : > { %v1990_v38 = vpop.f32.mrf.mxu1  ;;  %1003 = vmax.xlane.f32.xlu0 %v1002_v37  ;;  %v943_v39 = vpop.f32.mrf.mxu0 }
 0x1b0   : > { %v1068_v39 = vld [vmem:[#allocation3] sm:$0xff] }
 0x1b1   : > { %v894_v40 = vpop.f32.mrf.mxu1  ;;  %v2002_v41 = vpop.f32.mrf.mxu0 }
 0x1b2   : > { %v999_v42 = vsel %vm442_vm0, %v894_v40, -inf }
 0x1b3   : > { %1000 = vmax.xlane.f32.xlu1 %v999_v42  ;;  %v1995_v43 = vpop.f32.mrf.mxu1  ;;  %v1070_v42 = vld [vmem:[#allocation3 + $0x10] sm:$0xff] }
 0x1b5   : > { %v897_v44 = vpop.f32.mrf.mxu1 }
 0x1b7   : > { %v1996_v45 = vpop.f32.mrf.mxu1 }
 0x1b9   : > { %v986_v46 = vpop.f32.mrf.mxu1 }
 0x1ba   : > { %v1005_v47 = vsel %vm442_vm0, %v986_v46, -inf }
 0x1bb   : > { %v2007_v48 = vpop.f32.mrf.mxu1  ;;  %1006 = vmax.xlane.f32.xlu0 %v1005_v47 }
 0x1bd   : > { %v989_v49 = vpop.f32.mrf.mxu1 }
 0x1bf   : > { %v2008_v50 = vpop.f32.mrf.mxu1 }
 0x234   : > { %v998_v52 = vpop.xlane.xlu0 %997 }
 0x235   : > { %v1008_v53 = vmax.f32 %v2613_v51, %v998_v52  ;;  %v1071_v52 = vld [vmem:[#allocation3 + $0x18] sm:$0xff] }
 0x237   : > { %v1012_v55 = vsub.f32 %v2613_v51, %v1008_v53  ;;  %1085 = vst.msk [vmem:[#allocation2] sm:$0xff] %vm433_vm4, %v1008_v53  ;;  %1026 = vperm.xlu1 %2149, %v1008_v53  }
 0x238   : > { %v1004_v56 = vpop.xlane.xlu0 %1003 }
 0x239   : > { %v2621_v57 = vmax.f32 %v2616_v54, %v1004_v56 }
 0x23b   : > { %v1014_v59 = vsub.f32 %v2616_v54, %v2621_v57  ;;  %1087 = vst.msk [vmem:[#allocation2 + $0x10] sm:$0xff] %vm433_vm4, %v2621_v57  ;;  %1036 = vperm.xlu1 %2149, %v2621_v57  }
 0x23c   : > { %v1001_v60 = vpop.xlane.xlu1 %1000 }
 0x23d   : > { %v1009_v61 = vmax.f32 %v993_v58, %v1001_v60 }
 0x23f   : > { %v1013_v62 = vsub.f32 %v993_v58, %v1009_v61  ;;  %1086 = vst.msk [vmem:[#allocation2 + $0x8] sm:$0xff] %vm433_vm4, %v1009_v61  ;;  %1031 = vperm.xlu0 %2150, %v1009_v61  }
 0x244   : > { %v1007_v1 = vpop.xlane.xlu0 %1006 }
 0x245   : > { %v1011_v2 = vmax.f32 %v995_v63, %v1007_v1 }
 0x247   : > { %v1015_v3 = vsub.f32 %v995_v63, %v1011_v2  ;;  %1088 = vst.msk [vmem:[#allocation2 + $0x18] sm:$0xff] %vm433_vm4, %v1011_v2  ;;  %1041 = vperm.xlu1 %2149, %v1011_v2   ;;  %v1089_v63 = vld [vmem:[#allocation4] sm:$0xff] }
 0x2b2   : > { %v1027_v4 = vpop.permute.xlu1 %1026 }
 0x2b3   : > { %v1044_v5 = vsub.f32 %v848_v31, %v1027_v4  ;;  %v1016_v31 = vmul.f32 1.442695, %v1012_v55 }
 0x2b5   : > { %v1048_v7 = vmul.f32 1.442695, %v1044_v5 }
 0x2b6   : > { %v1037_v8 = vpop.permute.xlu1 %1036 }
 0x2b7   : > { %2159 = vpow2.f32 %v1048_v7  ;;  %v1046_v9 = vsub.f32 %v940_v34, %v1037_v8  ;;  %v1022_v34 = vmul.f32 1.442695, %v1015_v3  ;;  %v1090_v8 = vld [vmem:[#allocation4 + $0x8] sm:$0xff] }
 0x2b9   : > { %v1052_v10 = vmul.f32 1.442695, %v1046_v9  ;;  %v1091_v9 = vld [vmem:[#allocation4 + $0x10] sm:$0xff] }
 0x2ba   : > { %v1032_v11 = vpop.permute.xlu0 %1031 }
 0x2bb   : > { %2161 = vpow2.f32 %v1052_v10  ;;  %v1045_v13 = vsub.f32 %v894_v40, %v1032_v11 }
 0x2bd   : > { %v1050_v14 = vmul.f32 1.442695, %v1045_v13 }
 0x2bf   : > { %2163 = vpow2.f32 %v1050_v14 }
 0x2c2   : > { %v1042_v15 = vpop.permute.xlu1 %1041 }
 0x2c3   : > { %v1047_v16 = vsub.f32 %v986_v46, %v1042_v15  ;;  %v1069_v46 = vld [vmem:[#allocation3 + $0x8] sm:$0xff] }
 0x2c4   : > { %v2160_v17 = vpop.eup %2159 }
 0x2c5   : > { %v1054_v19 = vmul.f32 1.442695, %v1047_v16  ;;  %v1056_v20 = vsel %vm442_vm0, %v2160_v17, 0.0  ;;  %v1117_v22 = vpack.c.bf16 %v2160_v17, %v2160_v17 }
 0x2c6   : > { %1057 = vadd.xlane.f32.xlu1 %v1056_v20 }
 0x2c7   : > { %2165 = vpow2.f32 %v1054_v19  ;;  %2012 = vmatmul.mubr.msk.bf16.vlgmr.msra.gmra.mxu0 %vm442_vm0, %v1117_v22 }
 0x2c8   : > { %v2162_v23 = vpop.eup %2161  ;;  %2022 = vmatpush3.bf16.msra.mxu0 %v2571_v18  ;;  %2023 = vmatprep.mubr.msk.bf16.mxu0 %vm2332_vm1, %v2331_v12  ;;  %v1018_v18 = vmul.f32 1.442695, %v1013_v62 }
 0x2c9   : > { %v1062_v24 = vsel %vm442_vm0, %v2162_v23, 0.0  ;;  %2033 = vmatprep.subr.bf16.mxu0 %v2331_v12  ;;  %v1119_v29 = vpack.c.bf16 %v2162_v23, %v2162_v23 }
 0x2ca   : > { %1063 = vadd.xlane.f32.xlu1 %v1062_v24  ;;  %2167 = vpow2.f32 %v1018_v18 }
 0x2cb   : > { %2169 = vpow2.f32 %v1016_v31 }
 0x2cc   : > { %v2164_v25 = vpop.eup %2163 }
 0x2cd   : > { %v1059_v27 = vsel %vm442_vm0, %v2164_v25, 0.0  ;;  %v1118_v28 = vpack.c.bf16 %v2164_v25, %v2164_v25  ;;  %v1092_v25 = vld [vmem:[#allocation4 + $0x18] sm:$0xff] }
 0x2ce   : > { %1060 = vadd.xlane.f32.xlu0 %v1059_v27 }
 0x2cf   : > { %2018 = vmatmul.mubr.msk.bf16.vlgmr.msra.gmra.mxu1 %vm442_vm0, %v1118_v28  ;;  %2024 = vmatmul.mubr.msk.bf16.vlgmr.msra.gmra.mxu0 %vm442_vm0, %v1119_v29 }
 0x2d0   : > { %2028 = vmatpush3.bf16.msra.mxu1 %v2575_v0  ;;  %2029 = vmatprep.mubr.msk.bf16.mxu1 %vm2332_vm1, %v2331_v12  ;;  %v1020_v0 = vmul.f32 1.442695, %v1014_v59 }
 0x2d1   : > { %2037 = vmatprep.mubr.msk.bf16.mxu0 %vm2332_vm1, %v2331_v12  ;;  %2041 = vmatprep.subr.bf16.mxu1 %v2331_v12 }
 0x2d2   : > { %2171 = vpow2.f32 %v1020_v0 }
 0x2d3   : > { %2173 = vpow2.f32 %v1022_v34 }
 0x2d4   : > { %v2166_v30 = vpop.eup %2165 }
 0x2d5   : > { %v1065_v32 = vsel %vm442_vm0, %v2166_v30, 0.0  ;;  %v1120_v33 = vpack.c.bf16 %v2166_v30, %v2166_v30 }
 0x2d6   : > { %1066 = vadd.xlane.f32.xlu1 %v1065_v32 }
 0x2d7   : > { %2030 = vmatmul.mubr.msk.bf16.vlgmr.msra.gmra.mxu1 %vm442_vm0, %v1120_v33  ;;  %v2168_v35 = vpop.eup %2167 }
 0x2d8   : > { %2045 = vmatprep.mubr.msk.bf16.mxu1 %vm2332_vm1, %v2331_v12  ;;  %v2170_v36 = vpop.eup %2169  ;;  %v1073_v48 = vmul.f32 %v2168_v35, %v1069_v46 }
 0x2d9   : > { %v1072_v40 = vmul.f32 %v2170_v36, %v1068_v39 }
 0x2df   : > { %v2172_v37 = vpop.eup %2171 }
 0x2e0   : > { %v2174_v38 = vpop.eup %2173  ;;  %v1074_v44 = vmul.f32 %v2172_v37, %v1070_v42 }
 0x2e1   : > { %v1075_v54 = vmul.f32 %v2174_v38, %v1071_v52 }
 0x2e4   : > { %1100 = vperm.xlu0 %2150, %v2168_v35  }
 0x2e7   : > { %1095 = vperm.xlu1 %2149, %v2170_v36  }
 0x2eb   : > { %1105 = vperm.xlu1 %2149, %v2172_v37  }
 0x2ef   : > { %1110 = vperm.xlu1 %2149, %v2174_v38  }
 0x34f   : > { %v1058_v41 = vpop.xlane.xlu1 %1057 }
 0x350   : > { %v1076_v43 = vadd.f32 %v1072_v40, %v1058_v41 }
 0x352   : > { %1081 = vst.msk [vmem:[#allocation3] sm:$0xff] %vm433_vm4, %v1076_v43 }
 0x353   : > { %v1064_v45 = vpop.xlane.xlu1 %1063 }
 0x354   : > { %v1078_v47 = vadd.f32 %v1074_v44, %v1064_v45 }
 0x356   : > { %1083 = vst.msk [vmem:[#allocation3 + $0x10] sm:$0xff] %vm433_vm4, %v1078_v47 }
 0x357   : > { %v1061_v49 = vpop.xlane.xlu0 %1060 }
 0x358   : > { %v1077_v50 = vadd.f32 %v1073_v48, %v1061_v49 }
 0x359   : > { %v1319_v51 = vld [vmem:[#allocation3] sm:$0xff] }
 0x35a   : > { %1082 = vst.msk [vmem:[#allocation3 + $0x8] sm:$0xff] %vm433_vm4, %v1077_v50  ;;  %2175 = vrcp.f32 %v1319_v51 }
 0x35d   : > { %v1321_v53 = vld [vmem:[#allocation3 + $0x10] sm:$0xff] }
 0x35e   : > { %2177 = vrcp.f32 %v1321_v53 }
 0x35f   : > { %v1067_v55 = vpop.xlane.xlu1 %1066  ;;  %v1101_v7 = vpop.permute.xlu0 %1100 }
 0x360   : > { %v1079_v56 = vadd.f32 %v1075_v54, %v1067_v55  ;;  %v1114_v14 = vmul.f32 %v1101_v7, %v1090_v8 }
 0x361   : > { %v1320_v57 = vld [vmem:[#allocation3 + $0x8] sm:$0xff] }
 0x362   : > { %1084 = vst.msk [vmem:[#allocation3 + $0x18] sm:$0xff] %vm433_vm4, %v1079_v56  ;;  %2179 = vrcp.f32 %v1320_v57 }
 0x363   : > { %v1096_v1 = vpop.permute.xlu1 %1095 }
 0x364   : > { %v1113_v2 = vmul.f32 %v1096_v1, %v1089_v63 }
 0x367   : > { %v2176_v58 = vpop.eup %2175  ;;  %v1106_v10 = vpop.permute.xlu1 %1105 }
 0x368   : > { %1333 = vperm.xlu1 %2149, %v2176_v58   ;;  %v1115_v15 = vmul.f32 %v1106_v10, %v1091_v9 }
 0x369   : > { %v1322_v59 = vld [vmem:[#allocation3 + $0x18] sm:$0xff] }
 0x36a   : > { %2181 = vrcp.f32 %v1322_v59  ;;  %v2151_v59 = vld [vmem:[%s2779_s4 + $0x8] sm:$0xff]  }
 0x36b   : > { %v2178_v60 = vpop.eup %2177  ;;  %v1111_v24 = vpop.permute.xlu1 %1110  ;;  %2034 = vmatpush3.bf16.msra.mxu0 %v2151_v59 }
 0x36c   : > { %1343 = vperm.xlu0 %2150, %v2178_v60   ;;  %v1116_v30 = vmul.f32 %v1111_v24, %v1092_v25  ;;  %2035 = vmatprep.subr.bf16.mxu0 %v2331_v12 }
 0x36f   : > { %v2180_v61 = vpop.eup %2179 }
 0x370   : > { %1338 = vperm.xlu1 %2149, %v2180_v61  }
 0x377   : > { %v2182_v62 = vpop.eup %2181 }
 0x378   : > { %1348 = vperm.xlu1 %2149, %v2182_v62  }
 0x387   : > { %v1161_v3 = vpop.f32.mrf.mxu0 }
 0x388   : > { %v1302_v4 = vadd.f32 %v1161_v3, %v1113_v2 }
 0x389   : > { %v2013_v5 = vpop.f32.mrf.mxu0 }
 0x38a   : > { %1306 = vst.msk [vmem:[#allocation4] sm:$0xff] %vm442_vm0, %v1302_v4  ;;  %v2152_v5 = vld [vmem:[%s2779_s4] sm:$0xff]  }
 0x38b   : > { %v1164_v11 = vpop.f32.mrf.mxu0  ;;  %2036 = vmatpush3.bf16.msra.mxu0 %v2152_v5 }
 0x38c   : > { %2049 = vmatprep.subr.bf16.mxu0 %v2331_v12 }
 0x38d   : > { %v2014_v13 = vpop.f32.mrf.mxu0 }
 0x38f   : > { %v1206_v16 = vpop.f32.mrf.mxu1  ;;  %v1251_v17 = vpop.f32.mrf.mxu0 }
 0x390   : > { %v1303_v19 = vadd.f32 %v1206_v16, %v1114_v14  ;;  %v1304_v20 = vadd.f32 %v1251_v17, %v1115_v15 }
 0x391   : > { %v2019_v22 = vpop.f32.mrf.mxu1  ;;  %v2025_v23 = vpop.f32.mrf.mxu0  ;;  %v1327_v40 = vld [vmem:[#allocation4] sm:$0xff] }
 0x392   : > { %1307 = vst.msk [vmem:[#allocation4 + $0x8] sm:$0xff] %vm442_vm0, %v1303_v19  ;;  %1308 = vst.msk [vmem:[#allocation4 + $0x10] sm:$0xff] %vm442_vm0, %v1304_v20 }
 0x393   : > { %v1209_v27 = vpop.f32.mrf.mxu1  ;;  %v1254_v28 = vpop.f32.mrf.mxu0 }
 0x395   : > { %v2020_v29 = vpop.f32.mrf.mxu1  ;;  %v2026_v18 = vpop.f32.mrf.mxu0 }
 0x397   : > { %v1296_v31 = vpop.f32.mrf.mxu1 }
 0x398   : > { %v1305_v32 = vadd.f32 %v1296_v31, %v1116_v30  ;;  %v1573_v31 = vld [vmem:[%s2499_s20] sm:$0xf]  ;;  %s1785_s20 = scalar_lea.sflag [#allocation8], %s411_s24 }
 0x399   : > { %v2031_v33 = vpop.f32.mrf.mxu1  ;;  %v1329_v37 = vld [vmem:[#allocation4 + $0x10] sm:$0xff]  ;;  %v1328_v42 = vld [vmem:[#allocation4 + $0x8] sm:$0xff] }
 0x39a   : > { %1309 = vst.msk [vmem:[#allocation4 + $0x18] sm:$0xff] %vm442_vm0, %v1305_v32  ;;  %v1574_v32 = vunpack.c.l.bf16 %v1573_v31  ;;  %v1936_v33 = vld [vmem:[%s2783_s8] ss:$0 sm:$0xff] }
 0x39b   : > { %v1299_v0 = vpop.f32.mrf.mxu1 }
 0x39c   : > { %v1576_v0 = vadd.f32 %v1574_v32, %v2502_v6  ;;  %v2154_v6 = vld [vmem:[%s2780_s5] sm:$0xff]  }
 0x39d   : > { %v2032_v34 = vpop.f32.mrf.mxu1  ;;  %v1953_v32 = vld [vmem:[%s2783_s8 + $0x5] ss:$0 sm:$0xff] }
 0x3a1   : > { %v1330_v43 = vld [vmem:[#allocation4 + $0x18] sm:$0xff] }
 0x3e3   : > { %v1334_v35 = vpop.permute.xlu1 %1333 }
 0x3e4   : > { %v1351_v41 = vmul.f32 %v1334_v35, %v1327_v40 }
 0x3e7   : > { %v1344_v36 = vpop.permute.xlu0 %1343 }
 0x3e8   : > { %v1353_v39 = vmul.f32 %v1344_v36, %v1329_v37 }
 0x3ea   : > { %v1355_v45 = vcombine.low %v1351_v41, %v1353_v39  ;;  %v1356_v46 = vcombine.high %v1351_v41, %v1353_v39 }
 0x3eb   : > { %v1339_v38 = vpop.permute.xlu1 %1338 }
 0x3ec   : > { %v1352_v47 = vmul.f32 %v1339_v38, %v1328_v42  ;;  %v1363_v51 = vrot.slane %v1355_v45, %v2519_v21  ;;  %v1370_v52 = vrot.slane %v1356_v46, %v2519_v21  ;;  %v2156_v45 = vld [vmem:[%s2782_s7 + $0x10] sm:$0xff]  }
 0x3f3   : > { %v1349_v44 = vpop.permute.xlu1 %1348 }
 0x3f4   : > { %v1354_v48 = vmul.f32 %v1349_v44, %v1330_v43  ;;  %v2153_v43 = vld [vmem:[%s2780_s5 + $0x8] sm:$0xff]   ;;  %v2155_v44 = vld [vmem:[%s2782_s7 + $0x18] sm:$0xff]  }
 0x3f5   : > { %2042 = vmatpush3.bf16.msra.mxu1 %v2153_v43 }
 0x3f6   : > { %v1371_v49 = vcombine.low %v1352_v47, %v1354_v48  ;;  %v1372_v50 = vcombine.high %v1352_v47, %v1354_v48  ;;  %2043 = vmatprep.subr.bf16.mxu1 %v2331_v12 }
 0x3f8   : > { %v1379_v53 = vrot.slane %v1371_v49, %v2519_v21  ;;  %v1386_v54 = vrot.slane %v1372_v50, %v2519_v21 }
 0x3f9   : > { %2044 = vmatpush3.bf16.msra.mxu1 %v2154_v6 }
 0x3fa   : > { %v1387_v55 = vcombine.low %v1363_v51, %v1379_v53  ;;  %v1388_v56 = vcombine.high %v1363_v51, %v1379_v53  ;;  %v1403_v57 = vcombine.low %v1370_v52, %v1386_v54  ;;  %v1404_v58 = vcombine.high %v1370_v52, %v1386_v54 }
 0x3fc   : > { %v1395_v60 = vrot.slane %v1387_v55, %v2522_v26  ;;  %v1402_v61 = vrot.slane %v1388_v56, %v2522_v26  ;;  %v1411_v62 = vrot.slane %v1403_v57, %v2522_v26  ;;  %v1418_v63 = vrot.slane %v1404_v58, %v2522_v26  ;;  %v1940_v56 = vld [vmem:[%s2783_s8 + $0x1] ss:$0 sm:$0xff]  ;;  %v1941_v58 = vld [vmem:[%s2783_s8 + $0x2] ss:$0 sm:$0xff] }
 0x3fe   : > { %v1423_v1 = vcombine.low %v1395_v60, %v1402_v61  ;;  %v1934_v2 = vcombine.high %v1395_v60, %v1402_v61  ;;  %v1439_v3 = vcombine.low %v1411_v62, %v1418_v63  ;;  %v1935_v4 = vcombine.high %v1411_v62, %v1418_v63  ;;  %v2157_v62 = vld [vmem:[%s2782_s7 + $0x8] sm:$0xff]   ;;  %v2158_v63 = vld [vmem:[%s2782_s7] sm:$0xff]  }
 0x400   : > { %v1430_v7 = vrot.slane %v1423_v1, %v2519_v21  ;;  %v1438_v8 = vrot.slane %v1934_v2, %v2519_v21  ;;  %v1446_v9 = vrot.slane %v1439_v3, %v2519_v21  ;;  %v1454_v10 = vrot.slane %v1935_v4, %v2519_v21  ;;  %v1942_v1 = vld [vmem:[%s2781_s6] ss:$0 sm:$0xff] }
 0x402   : > { %v1456_v11 = vcombine.high %v1430_v7, %v1438_v8  ;;  %v1472_v13 = vcombine.high %v1446_v9, %v1454_v10  ;;  %v1455_v14 = vcombine.low %v1430_v7, %v1438_v8  ;;  %v1471_v15 = vcombine.low %v1446_v9, %v1454_v10 }
 0x404   : > { %v1470_v16 = vrot.slane %v1456_v11, %v2522_v26  ;;  %v1486_v17 = vrot.slane %v1472_v13, %v2522_v26  ;;  %v1463_v19 = vrot.slane %v1455_v14, %v2522_v26  ;;  %v1479_v20 = vrot.slane %v1471_v15, %v2522_v26 }
 0x406   : > { %v1489_v22 = vcombine.low %v1470_v16, %v1486_v17  ;;  %v1488_v23 = vcombine.high %v1463_v19, %v1479_v20  ;;  %v1487_v24 = vcombine.low %v1463_v19, %v1479_v20  ;;  %v1490_v21 = vcombine.high %v1470_v16, %v1486_v17 }
 0x408   : > { %1496 = vrot.lane.b32.xlu1 %v1489_v22, %s2336_s15  ;;  %1492 = vrot.lane.b32.xlu0 %v1488_v23, %s2337_s16  ;;  %s1799_s15 = sshll.u32 %s413_s29, 4  ;;  %s1800_s15 = int_to_ptr.vmem [resolvable:$true] %s1799_s15 }
 0x409   : > { %s2239_s27 = scalar_lea.vmem %s1800_s15, 64  ;;  %p2246_p0 = scmp.lt.s32.totalorder %s1800_s15, %s2244_s28 }
 0x40a   : > { %p2240_p8 = scmp.ne.s32.totalorder %s1800_s15, %s2239_s27  ;;  %p2247_p6 = scmp.lt.s32.totalorder %s2245_s12, %s2239_s27 }
 0x40c   : > { %1500 = vrot.lane.b32.xlu0 %v1490_v21, %s2338_s18  ;;  %p2241_p11 = pnand %p2240_p8, %p2798_p10  ;;  %p2248_p7 = por %p2247_p6, %p2246_p0 }
 0x40e   : > { %p2242_p13 = pneg %p2241_p11 }
 0x410   : > { %p2249_p9 = pnand %p2248_p7, %p2242_p13 }
 0x47a   : > { %v1493_v25 = vpop.permute.xlu0 %1492  ;;  %v1497_v27 = vpop.permute.xlu1 %1496 }
 0x47b   : > { %v1503_v28 = vsel %vm442_vm0, %v1487_v24, %v1493_v25 }
 0x47c   : > { %v1505_v18 = vsel %vm1504_vm5, %v1503_v28, %v1497_v27 }
 0x47e   : > { %v1501_v29 = vpop.permute.xlu0 %1500 }
 0x47f   : > { %v1507_v26 = vsel %vm1506_vm6, %v1505_v18, %v1501_v29 }
 0x480   : > { %v1508_v30 = vpack.c.bf16 %v1507_v26, %v1507_v26 }
 0x482   : > { %2038 = vmatmul.mubr.msk.bf16.vlgmr.msra.gmra.mxu0 %vm1529_vm7, %v1508_v30  ;;  %v1952_v30 = vld [vmem:[%s2783_s8 + $0x4] ss:$0 sm:$0xff] }
 0x483   : > { %2057 = vmatprep.mubr.msk.bf16.mxu0 %vm2332_vm1, %v2331_v12  ;;  %2050 = vmatpush3.bf16.msra.mxu0 %v2155_v44 }
 0x484   : > { %2051 = vmatprep.subr.bf16.mxu0 %v2331_v12 }
 0x487   : > { %2052 = vmatpush3.bf16.msra.mxu0 %v2156_v45 }
 0x488   : > { %2053 = vmatprep.subr.bf16.mxu0 %v2331_v12 }
 0x48b   : > { %2054 = vmatpush3.bf16.msra.mxu0 %v2157_v62 }
 0x48c   : > { %2055 = vmatprep.subr.bf16.mxu0 %v2331_v12  ;;  %v1946_v12 = vld [vmem:[%s2783_s8 + $0x3] ss:$0 sm:$0xff] }
 0x48f   : > { %2056 = vmatpush3.bf16.msra.mxu0 %v2158_v63 }
 0x542   : > { %v1567_v34 = vpop.f32.mrf.mxu0 }
 0x543   : > { %v1568_v35 = vadd.f32 %v1936_v33, %v1567_v34 }
 0x544   : > { %v2039_v36 = vpop.f32.mrf.mxu0 }
 0x545   : > { %v1577_v37 = vadd.f32 %v1576_v0, %v1568_v35 }
 0x546   : > { %v1570_v38 = vpop.f32.mrf.mxu0 }
 0x547   : > { %v1578_v39 = vsel %vm1529_vm7, %v1577_v37, 0.0  ;;  %v1583_v40 = vmul.f32 %v1577_v37, %v1577_v37 }
 0x548   : > { %1579 = vadd.xlane.f32.xlu1 %v1578_v39  ;;  %v2040_v41 = vpop.f32.mrf.mxu0 }
 0x549   : > { %v1584_v42 = vsel %vm1529_vm7, %v1583_v40, 0.0 }
 0x54a   : > { %1585 = vadd.xlane.f32.xlu0 %v1584_v42 }
 0x5d1   : > { %v1580_v46 = vpop.xlane.xlu1 %1579 }
 0x5d2   : > { %v1582_v47 = vmul.f32 0.03125, %v1580_v46 }
 0x5d3   : > { %v1586_v48 = vpop.xlane.xlu0 %1585 }
 0x5d4   : > { %v1588_v49 = vmul.f32 %v1582_v47, %v1582_v47  ;;  %v1587_v50 = vmul.f32 0.03125, %v1586_v48  ;;  %v1591_v54 = vsub.f32 %v1577_v37, %v1582_v47 }
 0x5d6   : > { %v1589_v51 = vsub.f32 %v1587_v50, %v1588_v49 }
 0x5d8   : > { %v1590_v52 = vmax.f32 %v1589_v51, 0.0 }
 0x5da   : > { %v1592_v53 = vadd.f32 1e-05, %v1590_v52 }
 0x5dc   : > { %2183 = vrsqrt.f32 %v1592_v53 }
 0x5e9   : > { %v2184_v55 = vpop.eup %2183 }
 0x5ea   : > { %v1594_v57 = vmul.f32 %v2184_v55, %v1591_v54 }
 0x5ec   : > { %v1599_v59 = vmul.f32 %v1940_v56, %v1594_v57 }
 0x5ee   : > { %v1604_v60 = vadd.f32 %v1941_v58, %v1599_v59 }
 0x5f0   : > { %v1605_v61 = vpack.c.bf16 %v1604_v60, %v1604_v60 }
 0x5f2   : > { %2046 = vmatmul.mubr.msk.bf16.vlgmr.msra.gmra.mxu1 %vm1529_vm7, %v1605_v61 }
 0x6b2   : > { %v1666_v2 = vpop.f32.mrf.mxu1 }
 0x6b3   : > { %v1667_v3 = vadd.f32 %v1942_v1, %v1666_v2 }
 0x6b4   : > { %v2047_v4 = vpop.f32.mrf.mxu1 }
 0x6b5   : > { %v1672_v5 = vmax.f32 %v1667_v3, 0.0 }
 0x6b6   : > { %v1669_v7 = vpop.f32.mrf.mxu1 }
 0x6b7   : > { %v1673_v8 = vpack.c.bf16 %v1672_v5, %v1672_v5 }
 0x6b8   : > { %v2048_v9 = vpop.f32.mrf.mxu1 }
 0x6b9   : > { %2058 = vmatmul.mubr.msk.bf16.vlgmr.msra.gmra.mxu0 %vm1710_vm8, %v1673_v8 }
 0x779   : > { %v1748_v10 = vpop.f32.mrf.mxu0 }
 0x77a   : > { %v1749_v11 = vadd.f32 %v1946_v12, %v1748_v10 }
 0x77b   : > { %v2059_v13 = vpop.f32.mrf.mxu0 }
 0x77c   : > { %v1754_v14 = vadd.f32 %v1749_v11, %v1604_v60 }
 0x77d   : > { %v1751_v15 = vpop.f32.mrf.mxu0 }
 0x77e   : > { %v1755_v16 = vsel %vm1529_vm7, %v1754_v14, 0.0  ;;  %v1759_v17 = vmul.f32 %v1754_v14, %v1754_v14 }
 0x77f   : > { %1756 = vadd.xlane.f32.xlu0 %v1755_v16  ;;  %v2060_v19 = vpop.f32.mrf.mxu0 }
 0x780   : > { %v1760_v20 = vsel %vm1529_vm7, %v1759_v17, 0.0 }
 0x781   : > { %1761 = vadd.xlane.f32.xlu1 %v1760_v20 }
 0x808   : > { %v1757_v22 = vpop.xlane.xlu0 %1756 }
 0x809   : > { %v1758_v23 = vmul.f32 0.03125, %v1757_v22 }
 0x80a   : > { %v1762_v24 = vpop.xlane.xlu1 %1761 }
 0x80b   : > { %v1764_v21 = vmul.f32 %v1758_v23, %v1758_v23  ;;  %v1763_v25 = vmul.f32 0.03125, %v1762_v24  ;;  %v1767_v18 = vsub.f32 %v1754_v14, %v1758_v23 }
 0x80d   : > { %v1765_v27 = vsub.f32 %v1763_v25, %v1764_v21 }
 0x80f   : > { %v1766_v28 = vmax.f32 %v1765_v27, 0.0 }
 0x811   : > { %v1768_v29 = vadd.f32 1e-05, %v1766_v28 }
 0x813   : > { %2185 = vrsqrt.f32 %v1768_v29 }
 0x820   : > { %v2186_v26 = vpop.eup %2185 }
 0x821   : > { %v1770_v31 = vmul.f32 %v2186_v26, %v1767_v18 }
 0x823   : > { %v1775_v33 = vmul.f32 %v1952_v30, %v1770_v31 }
 0x825   : > { %v1780_v0 = vadd.f32 %v1953_v32, %v1775_v33 }
 0x827   : > { %v1781_v34 = vpack.c.bf16 %v1780_v0, %v1780_v0 }
 0x829   : > { %1783 = vst.msk [vmem:[%s413_s29] sm:$0xf] %vm1782_vm9, %v1781_v34 }
 0x82a   : > { %2252 = shalt.err (!%p2249_p9)
}
 0x82b   : > { %s2253_s25 = scalar_lea.hbm %s1797_s0, 64  ;;  %s2257_s29 = scalar_lea.hbm %s2784_s9, 128 }
 0x82c   : > { %p2254_p12 = scmp.ne.s32.totalorder %s1797_s0, %s2253_s25  ;;  %p2258_p3 = scmp.lt.s32.totalorder %s1797_s0, %s2784_s9 }
 0x82d   : > { %p2259_p5 = scmp.lt.s32.totalorder %s2257_s29, %s2253_s25 }
 0x82e   : > { %p2255_p1 = pnand %p2254_p12, %p2798_p10 }
 0x82f   : > { %p2260_p4 = por %p2259_p5, %p2258_p3 }
 0x830   : > { %p2256_p2 = pneg %p2255_p1 }
 0x832   : > { %p2261_p8 = pnand %p2260_p4, %p2256_p2 }
 0x834   : > { %2264 = shalt.err (!%p2261_p8)
}
 0x835   : > { %2069 = dma.vmem_to_hbm [thread:$0]  (%p2798_p10), %s1800_s15, 64, %s1797_s0, %s1785_s20  }
 0x836 PF: > { %p2086_p11 = scmp.ge.s32.totalorder %s2323_s14, 2  ;;  %s1811_s27 = sand.u32 1, %s2303_s30  }
 0x837   : > { %p2799_p13 = scmp.ne.s32.totalorder %s2791_s21, 0  ;;  %s1812_s26 = scalar_lea.sflag [#allocation8], %s1811_s27 }
 0x839   : > { %p2079_p0 = pnand %p2086_p11, %p2799_p13 }
 0x83b   : > { %p2080_p6 = pneg %p2079_p0 }
 0x83d   : > { %2298 = dma.done.wait (%p2080_p6), %s1812_s26, 64  }
 0x83e   : > { %2300 = vsyncadd (%p2080_p6), %s1812_s26, 4294967232  ;;  %s24_s14 = sadd.s32 1, %s2323_s14   ;;  %s2800_s30 = smov %s2307_s10 }
 0x83f   : > { %p21_p7 = scmp.ge.s32.totalorder %s24_s14, 4   ;;  %s2801_s10 = smov %s2311_s11 }
 0x840   : > { %s2802_s11 = smov %s2443_s22  ;;  %s2803_s12 = smov %s2319_s13 }
 0x841   : > { %s2804_s13 = smov %s2806_s17  ;;  %23 = sbr.rel (!%p21_p7) target bundleno = 8 (0x8), region = 113 }
 0x846   :  { %1817 = vsyncpa [#allocation7], 1 }
 0x847   :  { %1819 = vsyncpa [#allocation7 + $0x1], 1 }
 0x848   :  { %1820 = vsyncpa [#allocation10], 1 }
 0x849   :  { %1821 = vsyncpa [#allocation8], 1 }
 0x84a   :  { %1823 = vsyncpa [#allocation8 + $0x1], 1 }

</bundles_post_ra>
